<compile_context>
chip_gen: v5e
topology: v5e:2x2
jax: 0.10.0
libtpu: 0.0.40
codegen_flags: <defaults>
</compile_context>

<pallas_src>
import functools

import jax
import jax.numpy as jnp
from jax.experimental import pallas as pl
from jax.experimental.pallas import tpu as pltpu

IN_DIM = 784
HID_DIM = 400
LAT_DIM = 30
LEAKY_SLOPE = 0.2

# Lane-padded sizes (multiples of 128).
IN_PAD = 896       # 784 -> 896
HID_PAD = 512      # 400 -> 512
LAT_PAD = 128      # 30  -> 128
ML_PAD = 2 * LAT_PAD  # fused [mu | logvar] width


def _round_up(n, m):
    return ((n + m - 1) // m) * m


def _leaky_relu(v):
    # For slope in (0,1): max(v, slope*v) == LeakyReLU(v).  2 VPU ops/elem.
    return jnp.maximum(v, LEAKY_SLOPE * v)


def vae_kernel(x_ref, eps_ref,
               we_ref, be_ref,
               w2122_ref, b2122_ref,
               wd1_ref, bd1_ref,
               wd2_ref, bd2_ref,
               out_ref, ml_ref,
               *, num_splits, split_rows):
    # Process the batch tile as `num_splits` independent half-tiles: the four
    # matmuls of one half are data-independent of the elementwise epilogue of
    # the other half, so the LLO scheduler can co-issue MXU and VPU/EUP slots.
    for s in range(num_splits):
        rows = pl.ds(s * split_rows, split_rows)

        # ---- encoder: Linear(784,400) + LeakyReLU(0.2)  (bf16 in, f32 acc) ----
        h = jnp.dot(x_ref[rows, :], we_ref[...],
                    preferred_element_type=jnp.float32) + be_ref[...]
        h = _leaky_relu(h)                                  # f32 (rows, 512)

        # ---- bottleneck: fused fc21|fc22 in one MXU pass -> [mu | logvar] ----
        ml = jnp.dot(h.astype(jnp.bfloat16), w2122_ref[...],
                     preferred_element_type=jnp.float32) + b2122_ref[...]
        mu = ml[:, :LAT_PAD]        # 128-lane-aligned slices, no relayout
        logvar = ml[:, LAT_PAD:]

        # ---- reparametrize: z = eps * exp(0.5*logvar) + mu ----
        # Pad lanes: W2122/b2122 and eps are zero-padded, so exp(0)*0+0 = 0
        # and nothing leaks into z's padded columns.
        z = eps_ref[rows, :] * jnp.exp(0.5 * logvar) + mu

        # ---- decoder: Linear(30,400)+LReLU -> Linear(400,784)+LReLU -> Tanh ----
        d1 = _leaky_relu(jnp.dot(z.astype(jnp.bfloat16), wd1_ref[...],
                                 preferred_element_type=jnp.float32) + bd1_ref[...])
        d2 = _leaky_relu(jnp.dot(d1.astype(jnp.bfloat16), wd2_ref[...],
                                 preferred_element_type=jnp.float32) + bd2_ref[...])

        # bf16 reconstruction halves the dominant HBM write stream; tanh ∈ [-1,1].
        out_ref[rows, :] = jnp.tanh(d2).astype(jnp.bfloat16)
        # Single wide f32 store for [mu | logvar]; split happens in the wrapper.
        ml_ref[rows, :] = ml


def init_params(key):
    """Torch-style init. Weights stored as (in_features, out_features) = W.T;
    biases as (1, out_features). U(-1/sqrt(fan_in), 1/sqrt(fan_in)), f32."""
    def linear(k, fan_in, fan_out):
        kw, kb = jax.random.split(k)
        bound = 1.0 / jnp.sqrt(fan_in)
        w = jax.random.uniform(kw, (fan_in, fan_out), jnp.float32, -bound, bound)
        b = jax.random.uniform(kb, (1, fan_out), jnp.float32, -bound, bound)
        return w, b

    k1, k2, k3, k4, k5 = jax.random.split(key, 5)
    we, be = linear(k1, IN_DIM, HID_DIM)      # encoder Linear(784, 400)
    w21, b21 = linear(k2, HID_DIM, LAT_DIM)   # fc21 Linear(400, 30)
    w22, b22 = linear(k3, HID_DIM, LAT_DIM)   # fc22 Linear(400, 30)
    wd1, bd1 = linear(k4, LAT_DIM, HID_DIM)   # decoder Linear(30, 400)
    wd2, bd2 = linear(k5, HID_DIM, IN_DIM)    # decoder Linear(400, 784)
    return dict(we=we, be=be, w21=w21, b21=b21, w22=w22, b22=b22,
                wd1=wd1, bd1=bd1, wd2=wd2, bd2=bd2)


def prepare_params(p):
    """Zero-pad all dims to lane multiples, fuse fc21|fc22, cast weights to
    bf16 (biases stay f32 and are added post-accumulation).

    Invariant: the padded columns of w2122/b2122 MUST stay exactly zero so the
    padded mu/logvar lanes are 0 and the reparametrization on pad lanes is
    exp(0)*0 + 0 = 0 (no garbage flows into z / the decoder)."""
    def pad_w(w, r, c):
        return jax.lax.pad(w, jnp.zeros((), jnp.float32),
                           ((0, r - w.shape[0], 0), (0, c - w.shape[1], 0)))

    def pad_b(b, c):
        return jax.lax.pad(b, jnp.zeros((), jnp.float32),
                           ((0, 0, 0), (0, c - b.shape[1], 0)))

    we = pad_w(p["we"], IN_PAD, HID_PAD).astype(jnp.bfloat16)
    be = pad_b(p["be"], HID_PAD)

    # fused bottleneck weight: [W21 (pad to 128) | W22 (pad to 128)]
    w2122 = jnp.zeros((HID_PAD, ML_PAD), jnp.float32)
    w2122 = w2122.at[:HID_DIM, :LAT_DIM].set(p["w21"])
    w2122 = w2122.at[:HID_DIM, LAT_PAD:LAT_PAD + LAT_DIM].set(p["w22"])
    b2122 = jnp.zeros((1, ML_PAD), jnp.float32)
    b2122 = b2122.at[:, :LAT_DIM].set(p["b21"])
    b2122 = b2122.at[:, LAT_PAD:LAT_PAD + LAT_DIM].set(p["b22"])

    wd1 = pad_w(p["wd1"], LAT_PAD, HID_PAD).astype(jnp.bfloat16)
    bd1 = pad_b(p["bd1"], HID_PAD)
    wd2 = pad_w(p["wd2"], HID_PAD, IN_PAD).astype(jnp.bfloat16)
    bd2 = pad_b(p["bd2"], IN_PAD)

    return dict(we=we, be=be,
                w2122=w2122.astype(jnp.bfloat16), b2122=b2122,
                wd1=wd1, bd1=bd1, wd2=wd2, bd2=bd2)


def mnist_vae_forward(x, eps, params, *, tile_b=512):
    """Full VAE forward in one batch-tiled Pallas kernel.

    x: (B, 784) f32, eps: (B, 30) f32.
    Returns (out (B,784) bf16, mu (B,30) f32, logvar (B,30) f32).
    The reconstruction stays bf16 end-to-end (tanh range) to avoid a second
    full-size f32 HBM pass; cast at the consumer if f32 is required.
    """
    B = x.shape[0]
    pp = prepare_params(params)

    B8 = _round_up(B, 8)
    tile_b = max(8, min(tile_b, B8))
    # v7x megacore: guarantee >=2 grid steps (one per TensorCore) once the
    # batch supports two >=128-row tiles; keep tiles >=128 rows for the MXU.
    if B8 >= 256:
        tile_b = min(tile_b, _round_up((B8 + 1) // 2, 128))
    b_pad = _round_up(B, tile_b)
    grid = (b_pad // tile_b,)

    # Split each tile into two half-tiles when the halves stay 16-row aligned
    # (bf16 sublane packing), so MXU and VPU/EUP epilogues can overlap.
    num_splits = 2 if (tile_b >= 32 and tile_b % 32 == 0) else 1
    split_rows = tile_b // num_splits

    # Single fused pad + cast per input (no zeros().at[].set() round trip).
    x_p = jax.lax.pad(x.astype(jnp.bfloat16), jnp.zeros((), jnp.bfloat16),
                      ((0, b_pad - B, 0), (0, IN_PAD - IN_DIM, 0)))
    eps_p = jax.lax.pad(eps.astype(jnp.float32), jnp.zeros((), jnp.float32),
                        ((0, b_pad - B, 0), (0, LAT_PAD - LAT_DIM, 0)))

    def act_spec(feat):
        return pl.BlockSpec((tile_b, feat), lambda i: (i, 0))

    def res_spec(shape):
        # Constant block index -> VMEM-resident across all grid steps;
        # single-buffered (the default second pipeline buffer would be dead).
        return pl.BlockSpec(shape, lambda i: (0, 0),
                            pipeline_mode=pl.Buffered(1))

    in_specs = [
        act_spec(IN_PAD),                      # x
        act_spec(LAT_PAD),                     # eps
        res_spec((IN_PAD, HID_PAD)),           # We
        res_spec((1, HID_PAD)),                # be
        res_spec((HID_PAD, ML_PAD)),           # W21|W22
        res_spec((1, ML_PAD)),                 # b21|b22
        res_spec((LAT_PAD, HID_PAD)),          # Wd1
        res_spec((1, HID_PAD)),                # bd1
        res_spec((HID_PAD, IN_PAD)),           # Wd2
        res_spec((1, IN_PAD)),                 # bd2
    ]
    out_specs = (act_spec(IN_PAD), act_spec(ML_PAD))
    out_shapes = (
        jax.ShapeDtypeStruct((b_pad, IN_PAD), jnp.bfloat16),  # reconstruction
        jax.ShapeDtypeStruct((b_pad, ML_PAD), jnp.float32),   # [mu | logvar]
    )

    kernel = functools.partial(vae_kernel,
                               num_splits=num_splits, split_rows=split_rows)

    out_p, ml_p = pl.pallas_call(
        kernel,
        out_shape=out_shapes,
        grid_spec=pl.GridSpec(grid=grid, in_specs=in_specs, out_specs=out_specs),
        compiler_params=pltpu.CompilerParams(
            dimension_semantics=("parallel",)),
    )(x_p, eps_p,
      pp["we"], pp["be"], pp["w2122"], pp["b2122"],
      pp["wd1"], pp["bd1"], pp["wd2"], pp["bd2"])

    out = out_p[:B, :IN_DIM]                       # stays bf16 (cheap slice)
    mu = ml_p[:B, :LAT_DIM]
    logvar = ml_p[:B, LAT_PAD:LAT_PAD + LAT_DIM]
    return out, mu, logvar


def mnist_vae_forward_ref(x, eps, p):
    """Pure-JAX reference with the same mixed precision (bf16 matmul inputs,
    f32 accumulation, f32 elementwise) for a tight correctness check.
    Note: the original torch module is f32 end-to-end; the bf16 matmul inputs
    here introduce ~1e-2-level deviation from exact torch output."""
    def mm(a, w):
        return jnp.dot(a.astype(jnp.bfloat16), w.astype(jnp.bfloat16),
                       preferred_element_type=jnp.float32)

    h = _leaky_relu(mm(x, p["we"]) + p["be"])
    mu = mm(h, p["w21"]) + p["b21"]
    logvar = mm(h, p["w22"]) + p["b22"]
    z = eps * jnp.exp(0.5 * logvar) + mu
    d1 = _leaky_relu(mm(z, p["wd1"]) + p["bd1"])
    d2 = _leaky_relu(mm(d1, p["wd2"]) + p["bd2"])
    return jnp.tanh(d2), mu, logvar


if __name__ == "__main__":
    key = jax.random.PRNGKey(0)
    k_param, k_x, k_eps = jax.random.split(key, 3)

    B = 16
    params = init_params(k_param)
    x = jax.random.normal(k_x, (B, IN_DIM), jnp.float32)
    eps = jax.random.normal(k_eps, (B, LAT_DIM), jnp.float32)

    # Small demo batch: single 16-row tile (production default is tile_b=512).
    fwd = jax.jit(functools.partial(mnist_vae_forward, tile_b=16))
    out, mu, logvar = fwd(x, eps, params)
    jax.block_until_ready((out, mu, logvar))

    ref_out, ref_mu, ref_logvar = mnist_vae_forward_ref(x, eps, params)
    assert out.shape == (B, IN_DIM) and out.dtype == jnp.bfloat16
    assert mu.shape == (B, LAT_DIM) and logvar.shape == (B, LAT_DIM)
    assert jnp.allclose(out.astype(jnp.float32), ref_out, atol=1e-2, rtol=1e-2)
    assert jnp.allclose(mu, ref_mu, atol=2e-3, rtol=2e-3)
    assert jnp.allclose(logvar, ref_logvar, atol=2e-3, rtol=2e-3)

    print("KERNEL_OK")
</pallas_src>

<mosaic_0001>
module attributes {stable_mosaic.version = 11 : i64} {
  func.func @vae_kernel(%arg0: i32, %arg1: memref<16x896xbf16, #tpu.memory_space<vmem>>, %arg2: memref<16x128xf32, #tpu.memory_space<vmem>>, %arg3: memref<896x512xbf16, #tpu.memory_space<vmem>>, %arg4: memref<1x512xf32, #tpu.memory_space<vmem>>, %arg5: memref<512x256xbf16, #tpu.memory_space<vmem>>, %arg6: memref<1x256xf32, #tpu.memory_space<vmem>>, %arg7: memref<128x512xbf16, #tpu.memory_space<vmem>>, %arg8: memref<1x512xf32, #tpu.memory_space<vmem>>, %arg9: memref<512x896xbf16, #tpu.memory_space<vmem>>, %arg10: memref<1x896xf32, #tpu.memory_space<vmem>>, %arg11: memref<16x896xbf16, #tpu.memory_space<vmem>>, %arg12: memref<16x256xf32, #tpu.memory_space<vmem>>) attributes {dimension_semantics = [#tpu.dimension_semantics<parallel>], iteration_bounds = array<i64: 1>, scalar_prefetch = 0 : i64, scratch_operands = 0 : i64, tpu.core_type = #tpu.core_type<tc>, window_params = [{transform_indices = @transform_0, window_bounds = array<i64: 16, 896>}, {transform_indices = @transform_1, window_bounds = array<i64: 16, 128>}, {pipeline_mode = #tpu.pipeline_mode<synchronous>, transform_indices = @transform_2, window_bounds = array<i64: 896, 512>}, {pipeline_mode = #tpu.pipeline_mode<synchronous>, transform_indices = @transform_3, window_bounds = array<i64: 1, 512>}, {pipeline_mode = #tpu.pipeline_mode<synchronous>, transform_indices = @transform_4, window_bounds = array<i64: 512, 256>}, {pipeline_mode = #tpu.pipeline_mode<synchronous>, transform_indices = @transform_5, window_bounds = array<i64: 1, 256>}, {pipeline_mode = #tpu.pipeline_mode<synchronous>, transform_indices = @transform_6, window_bounds = array<i64: 128, 512>}, {pipeline_mode = #tpu.pipeline_mode<synchronous>, transform_indices = @transform_7, window_bounds = array<i64: 1, 512>}, {pipeline_mode = #tpu.pipeline_mode<synchronous>, transform_indices = @transform_8, window_bounds = array<i64: 512, 896>}, {pipeline_mode = #tpu.pipeline_mode<synchronous>, transform_indices = @transform_9, window_bounds = array<i64: 1, 896>}, {transform_indices = @transform_10, window_bounds = array<i64: 16, 896>}, {transform_indices = @transform_11, window_bounds = array<i64: 16, 256>}]} {
    %c0 = arith.constant 0 : index
    %c0_0 = arith.constant 0 : index
    %0 = vector.load %arg1[%c0, %c0_0] : memref<16x896xbf16, #tpu.memory_space<vmem>>, vector<16x896xbf16>
    %c0_1 = arith.constant 0 : index
    %c0_2 = arith.constant 0 : index
    %1 = vector.load %arg3[%c0_1, %c0_2] : memref<896x512xbf16, #tpu.memory_space<vmem>>, vector<896x512xbf16>
    %cst = arith.constant dense<0.000000e+00> : vector<16x512xf32>
    %2 = tpu.matmul %0, %1, %cst {dimension_numbers = #tpu.dot_dimension_numbers<[1], [0], [0], [1], [0, 0, 1, 1], [], []>} : vector<16x896xbf16>, vector<896x512xbf16>, vector<16x512xf32> -> vector<16x512xf32>
    %c0_3 = arith.constant 0 : index
    %c0_4 = arith.constant 0 : index
    %3 = vector.load %arg4[%c0_3, %c0_4] : memref<1x512xf32, #tpu.memory_space<vmem>>, vector<1x512xf32>
    %4 = vector.broadcast %3 : vector<1x512xf32> to vector<16x512xf32>
    %5 = arith.addf %2, %4 : vector<16x512xf32>
    %cst_5 = arith.constant 2.000000e-01 : f32
    %6 = vector.broadcast %cst_5 : f32 to vector<16x512xf32>
    %7 = arith.mulf %6, %5 : vector<16x512xf32>
    %8 = arith.maximumf %5, %7 : vector<16x512xf32>
    %9 = arith.truncf %8 : vector<16x512xf32> to vector<16x512xbf16>
    %c0_6 = arith.constant 0 : index
    %c0_7 = arith.constant 0 : index
    %10 = vector.load %arg5[%c0_6, %c0_7] : memref<512x256xbf16, #tpu.memory_space<vmem>>, vector<512x256xbf16>
    %cst_8 = arith.constant dense<0.000000e+00> : vector<16x256xf32>
    %11 = tpu.matmul %9, %10, %cst_8 {dimension_numbers = #tpu.dot_dimension_numbers<[1], [0], [0], [1], [0, 0, 1, 1], [], []>} : vector<16x512xbf16>, vector<512x256xbf16>, vector<16x256xf32> -> vector<16x256xf32>
    %c0_9 = arith.constant 0 : index
    %c0_10 = arith.constant 0 : index
    %12 = vector.load %arg6[%c0_9, %c0_10] : memref<1x256xf32, #tpu.memory_space<vmem>>, vector<1x256xf32>
    %13 = vector.broadcast %12 : vector<1x256xf32> to vector<16x256xf32>
    %14 = arith.addf %11, %13 : vector<16x256xf32>
    %15 = vector.extract_strided_slice %14 {offsets = [0, 0], sizes = [16, 128], strides = [1, 1]} : vector<16x256xf32> to vector<16x128xf32>
    %16 = vector.extract_strided_slice %14 {offsets = [0, 128], sizes = [16, 128], strides = [1, 1]} : vector<16x256xf32> to vector<16x128xf32>
    %c0_11 = arith.constant 0 : index
    %c0_12 = arith.constant 0 : index
    %17 = vector.load %arg2[%c0_11, %c0_12] : memref<16x128xf32, #tpu.memory_space<vmem>>, vector<16x128xf32>
    %cst_13 = arith.constant 5.000000e-01 : f32
    %18 = vector.broadcast %cst_13 : f32 to vector<16x128xf32>
    %19 = arith.mulf %18, %16 : vector<16x128xf32>
    %20 = math.exp %19 : vector<16x128xf32>
    %21 = arith.mulf %17, %20 : vector<16x128xf32>
    %22 = arith.addf %21, %15 : vector<16x128xf32>
    %23 = arith.truncf %22 : vector<16x128xf32> to vector<16x128xbf16>
    %c0_14 = arith.constant 0 : index
    %c0_15 = arith.constant 0 : index
    %24 = vector.load %arg7[%c0_14, %c0_15] : memref<128x512xbf16, #tpu.memory_space<vmem>>, vector<128x512xbf16>
    %cst_16 = arith.constant dense<0.000000e+00> : vector<16x512xf32>
    %25 = tpu.matmul %23, %24, %cst_16 {dimension_numbers = #tpu.dot_dimension_numbers<[1], [0], [0], [1], [0, 0, 1, 1], [], []>} : vector<16x128xbf16>, vector<128x512xbf16>, vector<16x512xf32> -> vector<16x512xf32>
    %c0_17 = arith.constant 0 : index
    %c0_18 = arith.constant 0 : index
    %26 = vector.load %arg8[%c0_17, %c0_18] : memref<1x512xf32, #tpu.memory_space<vmem>>, vector<1x512xf32>
    %27 = vector.broadcast %26 : vector<1x512xf32> to vector<16x512xf32>
    %28 = arith.addf %25, %27 : vector<16x512xf32>
    %cst_19 = arith.constant 2.000000e-01 : f32
    %29 = vector.broadcast %cst_19 : f32 to vector<16x512xf32>
    %30 = arith.mulf %29, %28 : vector<16x512xf32>
    %31 = arith.maximumf %28, %30 : vector<16x512xf32>
    %32 = arith.truncf %31 : vector<16x512xf32> to vector<16x512xbf16>
    %c0_20 = arith.constant 0 : index
    %c0_21 = arith.constant 0 : index
    %33 = vector.load %arg9[%c0_20, %c0_21] : memref<512x896xbf16, #tpu.memory_space<vmem>>, vector<512x896xbf16>
    %cst_22 = arith.constant dense<0.000000e+00> : vector<16x896xf32>
    %34 = tpu.matmul %32, %33, %cst_22 {dimension_numbers = #tpu.dot_dimension_numbers<[1], [0], [0], [1], [0, 0, 1, 1], [], []>} : vector<16x512xbf16>, vector<512x896xbf16>, vector<16x896xf32> -> vector<16x896xf32>
    %c0_23 = arith.constant 0 : index
    %c0_24 = arith.constant 0 : index
    %35 = vector.load %arg10[%c0_23, %c0_24] : memref<1x896xf32, #tpu.memory_space<vmem>>, vector<1x896xf32>
    %36 = vector.broadcast %35 : vector<1x896xf32> to vector<16x896xf32>
    %37 = arith.addf %34, %36 : vector<16x896xf32>
    %cst_25 = arith.constant 2.000000e-01 : f32
    %38 = vector.broadcast %cst_25 : f32 to vector<16x896xf32>
    %39 = arith.mulf %38, %37 : vector<16x896xf32>
    %40 = arith.maximumf %37, %39 : vector<16x896xf32>
    %41 = math.tanh %40 : vector<16x896xf32>
    %42 = arith.truncf %41 : vector<16x896xf32> to vector<16x896xbf16>
    %c0_26 = arith.constant 0 : index
    %c0_27 = arith.constant 0 : index
    %43 = vector.load %arg11[%c0_26, %c0_27] : memref<16x896xbf16, #tpu.memory_space<vmem>>, vector<16x896xbf16>
    tpu.vector_store %arg11[%c0_26, %c0_27], %42 {strides = array<i32>} : memref<16x896xbf16, #tpu.memory_space<vmem>>, vector<16x896xbf16>,
    %c0_28 = arith.constant 0 : index
    %c0_29 = arith.constant 0 : index
    %44 = vector.load %arg12[%c0_28, %c0_29] : memref<16x256xf32, #tpu.memory_space<vmem>>, vector<16x256xf32>
    tpu.vector_store %arg12[%c0_28, %c0_29], %14 {strides = array<i32>} : memref<16x256xf32, #tpu.memory_space<vmem>>, vector<16x256xf32>,
    return
  }
  func.func @transform_0(%arg0: i32) -> (i32, i32) {
    %c0_i32 = arith.constant 0 : i32
    %c0_i32_0 = arith.constant 0 : i32
    return %arg0, %c0_i32 : i32, i32
  }
  func.func @transform_1(%arg0: i32) -> (i32, i32) {
    %c0_i32 = arith.constant 0 : i32
    %c0_i32_0 = arith.constant 0 : i32
    return %arg0, %c0_i32 : i32, i32
  }
  func.func @transform_2(%arg0: i32) -> (i32, i32) {
    %c0_i32 = arith.constant 0 : i32
    %c0_i32_0 = arith.constant 0 : i32
    %c0_i32_1 = arith.constant 0 : i32
    return %c0_i32, %c0_i32_0 : i32, i32
  }
  func.func @transform_3(%arg0: i32) -> (i32, i32) {
    %c0_i32 = arith.constant 0 : i32
    %c0_i32_0 = arith.constant 0 : i32
    %c0_i32_1 = arith.constant 0 : i32
    return %c0_i32, %c0_i32_0 : i32, i32
  }
  func.func @transform_4(%arg0: i32) -> (i32, i32) {
    %c0_i32 = arith.constant 0 : i32
    %c0_i32_0 = arith.constant 0 : i32
    %c0_i32_1 = arith.constant 0 : i32
    return %c0_i32, %c0_i32_0 : i32, i32
  }
  func.func @transform_5(%arg0: i32) -> (i32, i32) {
    %c0_i32 = arith.constant 0 : i32
    %c0_i32_0 = arith.constant 0 : i32
    %c0_i32_1 = arith.constant 0 : i32
    return %c0_i32, %c0_i32_0 : i32, i32
  }
  func.func @transform_6(%arg0: i32) -> (i32, i32) {
    %c0_i32 = arith.constant 0 : i32
    %c0_i32_0 = arith.constant 0 : i32
    %c0_i32_1 = arith.constant 0 : i32
    return %c0_i32, %c0_i32_0 : i32, i32
  }
  func.func @transform_7(%arg0: i32) -> (i32, i32) {
    %c0_i32 = arith.constant 0 : i32
    %c0_i32_0 = arith.constant 0 : i32
    %c0_i32_1 = arith.constant 0 : i32
    return %c0_i32, %c0_i32_0 : i32, i32
  }
  func.func @transform_8(%arg0: i32) -> (i32, i32) {
    %c0_i32 = arith.constant 0 : i32
    %c0_i32_0 = arith.constant 0 : i32
    %c0_i32_1 = arith.constant 0 : i32
    return %c0_i32, %c0_i32_0 : i32, i32
  }
  func.func @transform_9(%arg0: i32) -> (i32, i32) {
    %c0_i32 = arith.constant 0 : i32
    %c0_i32_0 = arith.constant 0 : i32
    %c0_i32_1 = arith.constant 0 : i32
    return %c0_i32, %c0_i32_0 : i32, i32
  }
  func.func @transform_10(%arg0: i32) -> (i32, i32) {
    %c0_i32 = arith.constant 0 : i32
    %c0_i32_0 = arith.constant 0 : i32
    return %arg0, %c0_i32 : i32, i32
  }
  func.func @transform_11(%arg0: i32) -> (i32, i32) {
    %c0_i32 = arith.constant 0 : i32
    %c0_i32_0 = arith.constant 0 : i32
    return %arg0, %c0_i32 : i32, i32
  }
}

</mosaic_0001>

<bundles_post_ra>
// kernel: mnist_vae_forward.1
= control target key start
LH: loop header
LB: loop body
LE: loop exit
PB: predicated region body
PF: predicated region fallthrough
CT: control target
= control target key end

     0   :  { %s10890_s0 = inlined_call_operand.vmem [shape: bf16[16,896], index: 0, kind: input, shape index: {}]   ;;  %s10891_s1 = inlined_call_operand.vmem [shape: f32[16,128], index: 1, kind: input, shape index: {}]   ;;  %s10892_s2 = inlined_call_operand.vmem [shape: bf16[896,512], index: 2, kind: input, shape index: {}]   ;;  %s10893_s3 = inlined_call_operand.vmem [shape: f32[1,512], index: 3, kind: input, shape index: {}]   ;;  %s10894_s4 = inlined_call_operand.vmem [shape: bf16[512,256], index: 4, kind: input, shape index: {}]   ;;  %s10895_s5 = inlined_call_operand.vmem [shape: f32[1,256], index: 5, kind: input, shape index: {}]   ;;  %s10896_s6 = inlined_call_operand.vmem [shape: bf16[128,512], index: 6, kind: input, shape index: {}]   ;;  %s10897_s7 = inlined_call_operand.vmem [shape: f32[1,512], index: 7, kind: input, shape index: {}]   ;;  %s10898_s8 = inlined_call_operand.vmem [shape: bf16[512,896], index: 8, kind: input, shape index: {}]   ;;  %s10899_s9 = inlined_call_operand.vmem [shape: f32[1,896], index: 9, kind: input, shape index: {}]   ;;  %s10900_s10 = inlined_call_operand.hbm [shape: bf16[16,896], index: 10, kind: output, shape index: {0}]   ;;  %s10901_s11 = inlined_call_operand.vmem [shape: f32[16,256], index: 11, kind: output, shape index: {1}]  }
   0x1   :  { %v4683_v0 = vld [vmem:[%s10892_s2 + $0xe0] sm:$0xf]  ;;  %v6782_v1 = vld [vmem:[%s10892_s2 + $0xec] sm:$0xf0] }
   0x2   :  { %v4811_v2 = vld [vmem:[%s10892_s2 + $0x1e0] sm:$0xf]  ;;  %v4684_v3 = vor.u32 %v6782_v1, %v4683_v0  ;;  %v6814_v4 = vld [vmem:[%s10892_s2 + $0x1ec] sm:$0xf0] }
   0x3   :  { %v4939_v5 = vld [vmem:[%s10892_s2 + $0x2e0] sm:$0xf]  ;;  %v6846_v6 = vld [vmem:[%s10892_s2 + $0x2ec] sm:$0xf0]  ;;  %v4812_v7 = vor.u32 %v6814_v4, %v4811_v2 }
   0x4   :  { %v4940_v8 = vor.u32 %v6846_v6, %v4939_v5  ;;  %v5067_v9 = vld [vmem:[%s10892_s2 + $0x3e0] sm:$0xf]  ;;  %v6878_v10 = vld [vmem:[%s10892_s2 + $0x3ec] sm:$0xf0]  ;;  %1436 = vmatpush.bf16.msra.mxu0 %v4684_v3 }
   0x5   :  { %v4667_v11 = vld [vmem:[%s10892_s2 + $0xc0] sm:$0xf]  ;;  %v5068_v12 = vor.u32 %v6878_v10, %v5067_v9  ;;  %v6778_v13 = vld [vmem:[%s10892_s2 + $0xcc] sm:$0xf0]  ;;  %1450 = vmatpush.bf16.msra.mxu1 %v4812_v7 }
   0x6   :  { %v4795_v14 = vld [vmem:[%s10892_s2 + $0x1c0] sm:$0xf]  ;;  %v6810_v15 = vld [vmem:[%s10892_s2 + $0x1cc] sm:$0xf0]  ;;  %1464 = vmatpush.bf16.msra.mxu2 %v4940_v8  ;;  %v4668_v16 = vor.u32 %v6778_v13, %v4667_v11 }
   0x7   :  { %v4796_v17 = vor.u32 %v6810_v15, %v4795_v14  ;;  %v4923_v18 = vld [vmem:[%s10892_s2 + $0x2c0] sm:$0xf]  ;;  %v6842_v19 = vld [vmem:[%s10892_s2 + $0x2cc] sm:$0xf0]  ;;  %1478 = vmatpush.bf16.msra.mxu3 %v5068_v12 }
   0x8   :  { %v5051_v20 = vld [vmem:[%s10892_s2 + $0x3c0] sm:$0xf]  ;;  %v4924_v21 = vor.u32 %v6842_v19, %v4923_v18  ;;  %v6874_v22 = vld [vmem:[%s10892_s2 + $0x3cc] sm:$0xf0]  ;;  %1437 = vmatpush.bf16.msra.mxu0 %v4668_v16 }
   0x9   :  { %v4651_v23 = vld [vmem:[%s10892_s2 + $0xa0] sm:$0xf]  ;;  %v6774_v24 = vld [vmem:[%s10892_s2 + $0xac] sm:$0xf0]  ;;  %v5052_v25 = vor.u32 %v6874_v22, %v5051_v20  ;;  %1451 = vmatpush.bf16.msra.mxu1 %v4796_v17 }
   0xa   :  { %v4779_v26 = vld [vmem:[%s10892_s2 + $0x1a0] sm:$0xf]  ;;  %v6806_v27 = vld [vmem:[%s10892_s2 + $0x1ac] sm:$0xf0]  ;;  %v4652_v29 = vor.u32 %v6774_v24, %v4651_v23  ;;  %1465 = vmatpush.bf16.msra.mxu2 %v4924_v21 }
   0xb   :  { %v4907_v28 = vld [vmem:[%s10892_s2 + $0x2a0] sm:$0xf]  ;;  %v6838_v30 = vld [vmem:[%s10892_s2 + $0x2ac] sm:$0xf0]  ;;  %v4780_v33 = vor.u32 %v6806_v27, %v4779_v26  ;;  %1479 = vmatpush.bf16.msra.mxu3 %v5052_v25 }
   0xc   :  { %v5035_v31 = vld [vmem:[%s10892_s2 + $0x3a0] sm:$0xf]  ;;  %v6870_v32 = vld [vmem:[%s10892_s2 + $0x3ac] sm:$0xf0]  ;;  %v4908_v34 = vor.u32 %v6838_v30, %v4907_v28  ;;  %1438 = vmatpush.bf16.msra.mxu0 %v4652_v29 }
   0xd   :  { %v4635_v35 = vld [vmem:[%s10892_s2 + $0x80] sm:$0xf]  ;;  %v6770_v36 = vld [vmem:[%s10892_s2 + $0x8c] sm:$0xf0]  ;;  %v5036_v38 = vor.u32 %v6870_v32, %v5035_v31  ;;  %1452 = vmatpush.bf16.msra.mxu1 %v4780_v33 }
   0xe   :  { %v4763_v37 = vld [vmem:[%s10892_s2 + $0x180] sm:$0xf]  ;;  %v6802_v39 = vld [vmem:[%s10892_s2 + $0x18c] sm:$0xf0]  ;;  %v4636_v44 = vor.u32 %v6770_v36, %v4635_v35  ;;  %1466 = vmatpush.bf16.msra.mxu2 %v4908_v34 }
   0xf   :  { %v4891_v40 = vld [vmem:[%s10892_s2 + $0x280] sm:$0xf]  ;;  %v6834_v41 = vld [vmem:[%s10892_s2 + $0x28c] sm:$0xf0]  ;;  %v4764_v45 = vor.u32 %v6802_v39, %v4763_v37  ;;  %1480 = vmatpush.bf16.msra.mxu3 %v5036_v38  ;;  %v6780_v37 = vld [vmem:[%s10892_s2 + $0xe4] sm:$0xf] }
  0x10   :  { %v5019_v42 = vld [vmem:[%s10892_s2 + $0x380] sm:$0xf]  ;;  %v6866_v43 = vld [vmem:[%s10892_s2 + $0x38c] sm:$0xf0]  ;;  %v4892_v46 = vor.u32 %v6834_v41, %v4891_v40  ;;  %1439 = vmatpush.bf16.msra.mxu0 %v4636_v44  ;;  %v4685_v38 = vld [vmem:[%s10892_s2 + $0xf0] sm:$0xf0] }
  0x11   :  { %v4619_v47 = vld [vmem:[%s10892_s2 + $0x60] sm:$0xf]  ;;  %v6766_v48 = vld [vmem:[%s10892_s2 + $0x6c] sm:$0xf0]  ;;  %v5020_v50 = vor.u32 %v6866_v43, %v5019_v42  ;;  %1453 = vmatpush.bf16.msra.mxu1 %v4764_v45 }
  0x12   :  { %v4747_v49 = vld [vmem:[%s10892_s2 + $0x160] sm:$0xf]  ;;  %v6798_v51 = vld [vmem:[%s10892_s2 + $0x16c] sm:$0xf0]  ;;  %v4620_v56 = vor.u32 %v6766_v48, %v4619_v47  ;;  %1467 = vmatpush.bf16.msra.mxu2 %v4892_v46  ;;  %v4688_v48 = vor.u32 %v6780_v37, %v4685_v38 }
  0x13   :  { %v4875_v52 = vld [vmem:[%s10892_s2 + $0x260] sm:$0xf]  ;;  %v6830_v53 = vld [vmem:[%s10892_s2 + $0x26c] sm:$0xf0]  ;;  %v4748_v57 = vor.u32 %v6798_v51, %v4747_v49  ;;  %1481 = vmatpush.bf16.msra.mxu3 %v5020_v50  ;;  %v6776_v50 = vld [vmem:[%s10892_s2 + $0xc4] sm:$0xf] }
  0x14   :  { %v5003_v54 = vld [vmem:[%s10892_s2 + $0x360] sm:$0xf]  ;;  %v6862_v55 = vld [vmem:[%s10892_s2 + $0x36c] sm:$0xf0]  ;;  %v4876_v58 = vor.u32 %v6830_v53, %v4875_v52  ;;  %1440 = vmatpush.bf16.msra.mxu0 %v4620_v56  ;;  %v4669_v51 = vld [vmem:[%s10892_s2 + $0xd0] sm:$0xf0] }
  0x15   :  { %v4603_v59 = vld [vmem:[%s10892_s2 + $0x40] sm:$0xf]  ;;  %v6762_v60 = vld [vmem:[%s10892_s2 + $0x4c] sm:$0xf0]  ;;  %v5004_v62 = vor.u32 %v6862_v55, %v5003_v54  ;;  %1454 = vmatpush.bf16.msra.mxu1 %v4748_v57  ;;  %v6748_v53 = vld [vmem:[%s10890_s0 + $0x18] sm:$0xf0] }
  0x16   :  { %v4731_v61 = vld [vmem:[%s10892_s2 + $0x140] sm:$0xf]  ;;  %v6794_v63 = vld [vmem:[%s10892_s2 + $0x14c] sm:$0xf0]  ;;  %v4604_v4 = vor.u32 %v6762_v60, %v4603_v59  ;;  %1468 = vmatpush.bf16.msra.mxu2 %v4876_v58  ;;  %v4551_v54 = vld [vmem:[%s10890_s0 + $0x8] sm:$0xf] }
  0x17   :  { %v4859_v0 = vld [vmem:[%s10892_s2 + $0x240] sm:$0xf]  ;;  %v6826_v1 = vld [vmem:[%s10892_s2 + $0x24c] sm:$0xf0]  ;;  %v4732_v5 = vor.u32 %v6794_v63, %v4731_v61  ;;  %1482 = vmatpush.bf16.msra.mxu3 %v5004_v62  ;;  %v6749_v58 = vld [vmem:[%s10890_s0 + $0x20] sm:$0xf0] }
  0x18   :  { %v4987_v2 = vld [vmem:[%s10892_s2 + $0x340] sm:$0xf]  ;;  %v6858_v3 = vld [vmem:[%s10892_s2 + $0x34c] sm:$0xf0]  ;;  %v4860_v6 = vor.u32 %v6826_v1, %v4859_v0  ;;  %1441 = vmatpush.bf16.msra.mxu0 %v4604_v4  ;;  %v7686_v0 = vor.u32 %v6749_v58, %v4551_v54  ;;  %v4672_v1 = vor.u32 %v6776_v50, %v4669_v51  ;;  %v6772_v4 = vld [vmem:[%s10892_s2 + $0xa4] sm:$0xf] }
  0x19   :  { %v4587_v7 = vld [vmem:[%s10892_s2 + $0x20] sm:$0xf]  ;;  %v6758_v8 = vld [vmem:[%s10892_s2 + $0x2c] sm:$0xf0]  ;;  %v4988_v10 = vor.u32 %v6858_v3, %v4987_v2  ;;  %1455 = vmatpush.bf16.msra.mxu1 %v4732_v5  ;;  %v4653_v5 = vld [vmem:[%s10892_s2 + $0xb0] sm:$0xf0] }
  0x1a   :  { %v4715_v9 = vld [vmem:[%s10892_s2 + $0x120] sm:$0xf]  ;;  %v6790_v11 = vld [vmem:[%s10892_s2 + $0x12c] sm:$0xf0]  ;;  %v4588_v16 = vor.u32 %v6758_v8, %v4587_v7  ;;  %1469 = vmatpush.bf16.msra.mxu2 %v4860_v6  ;;  %v6745_v6 = vld [vmem:[%s10890_s0 + $0x4] sm:$0xf] }
  0x1b   :  { %v4843_v12 = vld [vmem:[%s10892_s2 + $0x220] sm:$0xf]  ;;  %v6822_v13 = vld [vmem:[%s10892_s2 + $0x22c] sm:$0xf0]  ;;  %v4716_v19 = vor.u32 %v6790_v11, %v4715_v9  ;;  %1483 = vmatpush.bf16.msra.mxu3 %v4988_v10 }
  0x1c   :  { %v4971_v14 = vld [vmem:[%s10892_s2 + $0x320] sm:$0xf]  ;;  %v6854_v15 = vld [vmem:[%s10892_s2 + $0x32c] sm:$0xf0]  ;;  %v4844_v20 = vor.u32 %v6822_v13, %v4843_v12  ;;  %1442 = vmatpush.bf16.msra.mxu0 %v4588_v16 }
  0x1d   :  { %v4571_v17 = vld [vmem:[%s10892_s2] sm:$0xf]  ;;  %v6754_v18 = vld [vmem:[%s10892_s2 + $0xc] sm:$0xf0]  ;;  %v4972_v24 = vor.u32 %v6854_v15, %v4971_v14  ;;  %1456 = vmatpush.bf16.msra.mxu1 %v4716_v19  ;;  %v6746_v19 = vld [vmem:[%s10890_s0 + $0xc] sm:$0xf] }
  0x1e   :  { %v4699_v21 = vld [vmem:[%s10892_s2 + $0x100] sm:$0xf]  ;;  %v6786_v22 = vld [vmem:[%s10892_s2 + $0x10c] sm:$0xf0]  ;;  %v4572_v31 = vor.u32 %v6754_v18, %v4571_v17  ;;  %1470 = vmatpush.bf16.msra.mxu2 %v4844_v20  ;;  %v4656_v17 = vor.u32 %v6772_v4, %v4653_v5  ;;  %v4553_v20 = vld [vmem:[%s10890_s0 + $0x24] sm:$0xf0] }
  0x1f   :  { %v4827_v23 = vld [vmem:[%s10892_s2 + $0x200] sm:$0xf]  ;;  %v6818_v25 = vld [vmem:[%s10892_s2 + $0x20c] sm:$0xf0]  ;;  %v4700_v35 = vor.u32 %v6786_v22, %v4699_v21  ;;  %1484 = vmatpush.bf16.msra.mxu3 %v4972_v24  ;;  %v6768_v21 = vld [vmem:[%s10892_s2 + $0x84] sm:$0xf] }
  0x20   :  { %v4955_v26 = vld [vmem:[%s10892_s2 + $0x300] sm:$0xf]  ;;  %v6850_v27 = vld [vmem:[%s10892_s2 + $0x30c] sm:$0xf0]  ;;  %v4828_v36 = vor.u32 %v6818_v25, %v4827_v23  ;;  %1443 = vmatpush.bf16.msra.mxu0 %v4572_v31  ;;  %v4637_v22 = vld [vmem:[%s10892_s2 + $0x90] sm:$0xf0]  ;;  %v7741_v23 = vor.u32 %v6746_v19, %v4553_v20 }
  0x21   :  { %v5195_v28 = vld [vmem:[%s10892_s2 + $0x4e0] sm:$0xf]  ;;  %v6910_v29 = vld [vmem:[%s10892_s2 + $0x4ec] sm:$0xf0]  ;;  %v4956_v39 = vor.u32 %v6850_v27, %v4955_v26  ;;  %1457 = vmatpush.bf16.msra.mxu1 %v4700_v35  ;;  %v4621_v35 = vld [vmem:[%s10892_s2 + $0x70] sm:$0xf0] }
  0x22   :  { %v5323_v30 = vld [vmem:[%s10892_s2 + $0x5e0] sm:$0xf]  ;;  %v6942_v32 = vld [vmem:[%s10892_s2 + $0x5ec] sm:$0xf0]  ;;  %v5196_v40 = vor.u32 %v6910_v29, %v5195_v28  ;;  %1471 = vmatpush.bf16.msra.mxu2 %v4828_v36  ;;  %v5197_v19 = vld [vmem:[%s10892_s2 + $0x4f0] sm:$0xf0] }
  0x23   :  { %v5451_v33 = vld [vmem:[%s10892_s2 + $0x6e0] sm:$0xf]  ;;  %v6974_v34 = vld [vmem:[%s10892_s2 + $0x6ec] sm:$0xf0]  ;;  %v5324_v43 = vor.u32 %v6942_v32, %v5323_v30  ;;  %1485 = vmatpush.bf16.msra.mxu3 %v4956_v39  ;;  %v4640_v30 = vor.u32 %v6768_v21, %v4637_v22 }
  0x24   :  { %v5179_v41 = vld [vmem:[%s10892_s2 + $0x4c0] sm:$0xf]  ;;  %v6906_v42 = vld [vmem:[%s10892_s2 + $0x4cc] sm:$0xf0]  ;;  %v5452_v44 = vor.u32 %v6974_v34, %v5451_v33  ;;  %1492 = vmatpush.bf16.msrb.mxu0 %v5196_v40  ;;  %v6764_v34 = vld [vmem:[%s10892_s2 + $0x64] sm:$0xf] }
  0x25   :  { %v5307_v45 = vld [vmem:[%s10892_s2 + $0x5c0] sm:$0xf]  ;;  %v6938_v46 = vld [vmem:[%s10892_s2 + $0x5cc] sm:$0xf0]  ;;  %v5180_v55 = vor.u32 %v6906_v42, %v5179_v41  ;;  %1506 = vmatpush.bf16.msrb.mxu1 %v5324_v43  ;;  %1472 = vmatmul.bf16.vlgmr.msra.gmra.mxu2 %v7686_v0  ;;  %v4624_v42 = vor.u32 %v6764_v34, %v4621_v35  ;;  %v4797_v34 = vld [vmem:[%s10892_s2 + $0x1d0] sm:$0xf0] }
  0x26   :  { %v5435_v47 = vld [vmem:[%s10892_s2 + $0x6c0] sm:$0xf]  ;;  %v6970_v49 = vld [vmem:[%s10892_s2 + $0x6cc] sm:$0xf0]  ;;  %1520 = vmatpush.bf16.msrb.mxu2 %v5452_v44  ;;  %v5308_v59 = vor.u32 %v6938_v46, %v5307_v45  ;;  %1486 = vmatmul.bf16.vlgmr.msra.gmra.mxu3 %v7741_v23  ;;  %v6760_v46 = vld [vmem:[%s10892_s2 + $0x44] sm:$0xf] }
  0x27   :  { %v4543_v52 = vld [vmem:[%s10890_s0] sm:$0xf]  ;;  %v5436_v60 = vor.u32 %v6970_v49, %v5435_v47  ;;  %v6902_v61 = vld [vmem:[%s10892_s2 + $0x4ac] sm:$0xf0]  ;;  %1534 = vmatpush.bf16.msrb.mxu3 %v4688_v48  ;;  %v4605_v47 = vld [vmem:[%s10892_s2 + $0x50] sm:$0xf0] }
  0x28   :  { %v5163_v56 = vld [vmem:[%s10892_s2 + $0x4a0] sm:$0xf]  ;;  %v7672_v57 = vor.u32 %v6748_v53, %v4543_v52  ;;  %v6934_v63 = vld [vmem:[%s10892_s2 + $0x5ac] sm:$0xf0]  ;;  %1493 = vmatpush.bf16.msrb.mxu0 %v5180_v55  ;;  %v4608_v54 = vor.u32 %v6760_v46, %v4605_v47  ;;  %v6840_v35 = vld [vmem:[%s10892_s2 + $0x2c4] sm:$0xf] }
  0x29   :  { %v5291_v62 = vld [vmem:[%s10892_s2 + $0x5a0] sm:$0xf]  ;;  %v6966_v3 = vld [vmem:[%s10892_s2 + $0x6ac] sm:$0xf0]  ;;  %v5164_v8 = vor.u32 %v6902_v61, %v5163_v56  ;;  %1507 = vmatpush.bf16.msrb.mxu1 %v5308_v59  ;;  %v6756_v59 = vld [vmem:[%s10892_s2 + $0x24] sm:$0xf] }
  0x2a   :  { %v5419_v2 = vld [vmem:[%s10892_s2 + $0x6a0] sm:$0xf]  ;;  %1444 = vmatmul.bf16.vlgmr.msra.gmra.mxu0 %v7672_v57  ;;  %v6898_v10 = vld [vmem:[%s10892_s2 + $0x48c] sm:$0xf0]  ;;  %1521 = vmatpush.bf16.msrb.mxu2 %v5436_v60  ;;  %v5292_v12 = vor.u32 %v6934_v63, %v5291_v62  ;;  %v4589_v60 = vld [vmem:[%s10892_s2 + $0x30] sm:$0xf0] }
  0x2b   :  { %v4545_v7 = vld [vmem:[%s10890_s0 + $0x1c] sm:$0xf0]  ;;  %v5420_v13 = vor.u32 %v6966_v3, %v5419_v2  ;;  %v6930_v15 = vld [vmem:[%s10892_s2 + $0x58c] sm:$0xf0]  ;;  %1535 = vmatpush.bf16.msrb.mxu3 %v4672_v1 }
  0x2c   :  { %v5147_v9 = vld [vmem:[%s10892_s2 + $0x480] sm:$0xf]  ;;  %v7714_v11 = vor.u32 %v6745_v6, %v4545_v7  ;;  %v6962_v18 = vld [vmem:[%s10892_s2 + $0x68c] sm:$0xf0]  ;;  %1494 = vmatpush.bf16.msrb.mxu0 %v5164_v8  ;;  %v6752_v7 = vld [vmem:[%s10892_s2 + $0x4] sm:$0xf]  ;;  %v4592_v8 = vor.u32 %v6756_v59, %v4589_v60 }
  0x2d   :  { %v5275_v14 = vld [vmem:[%s10892_s2 + $0x580] sm:$0xf]  ;;  %v5148_v24 = vor.u32 %v6898_v10, %v5147_v9  ;;  %1508 = vmatpush.bf16.msrb.mxu1 %v5292_v12  ;;  %v6894_v28 = vld [vmem:[%s10892_s2 + $0x46c] sm:$0xf0]  ;;  %v4573_v9 = vld [vmem:[%s10892_s2 + $0x10] sm:$0xf0] }
  0x2e   :  { %v5403_v16 = vld [vmem:[%s10892_s2 + $0x680] sm:$0xf]  ;;  %1458 = vmatmul.bf16.vlgmr.msra.gmra.mxu1 %v7714_v11  ;;  %1522 = vmatpush.bf16.msrb.mxu2 %v5420_v13  ;;  %v5276_v25 = vor.u32 %v6930_v15, %v5275_v14  ;;  %v6926_v31 = vld [vmem:[%s10892_s2 + $0x56c] sm:$0xf0]  ;;  %v6812_v10 = vld [vmem:[%s10892_s2 + $0x1e4] sm:$0xf] }
  0x2f   :  { %v5404_v26 = vor.u32 %v6962_v18, %v5403_v16  ;;  %v5131_v27 = vld [vmem:[%s10892_s2 + $0x460] sm:$0xf]  ;;  %1536 = vmatpush.bf16.msrb.mxu3 %v4656_v17  ;;  %v6958_v33 = vld [vmem:[%s10892_s2 + $0x66c] sm:$0xf0]  ;;  %v4813_v12 = vld [vmem:[%s10892_s2 + $0x1f0] sm:$0xf0] }
  0x30   :  { %v5259_v29 = vld [vmem:[%s10892_s2 + $0x560] sm:$0xf]  ;;  %1495 = vmatpush.bf16.msrb.mxu0 %v5148_v24  ;;  %v5132_v36 = vor.u32 %v6894_v28, %v5131_v27  ;;  %v6890_v40 = vld [vmem:[%s10892_s2 + $0x44c] sm:$0xf0]  ;;  %v6844_v13 = vld [vmem:[%s10892_s2 + $0x2e4] sm:$0xf]  ;;  %v4816_v27 = vor.u32 %v6812_v10, %v4813_v12 }
  0x31   :  { %v5387_v32 = vld [vmem:[%s10892_s2 + $0x660] sm:$0xf]  ;;  %1509 = vmatpush.bf16.msrb.mxu1 %v5276_v25  ;;  %v5260_v37 = vor.u32 %v6926_v31, %v5259_v29  ;;  %v6922_v43 = vld [vmem:[%s10892_s2 + $0x54c] sm:$0xf0]  ;;  %v4941_v14 = vld [vmem:[%s10892_s2 + $0x2f0] sm:$0xf0] }
  0x32   :  { %1523 = vmatpush.bf16.msrb.mxu2 %v5404_v26  ;;  %v5388_v38 = vor.u32 %v6958_v33, %v5387_v32  ;;  %v5115_v39 = vld [vmem:[%s10892_s2 + $0x440] sm:$0xf]  ;;  %v6954_v45 = vld [vmem:[%s10892_s2 + $0x64c] sm:$0xf0]  ;;  %v6876_v15 = vld [vmem:[%s10892_s2 + $0x3e4] sm:$0xf]  ;;  %v4576_v26 = vor.u32 %v6752_v7, %v4573_v9  ;;  %v4944_v31 = vor.u32 %v6844_v13, %v4941_v14 }
  0x33   :  { %v5243_v41 = vld [vmem:[%s10892_s2 + $0x540] sm:$0xf]  ;;  %1537 = vmatpush.bf16.msrb.mxu3 %v4640_v30  ;;  %v5116_v48 = vor.u32 %v6890_v40, %v5115_v39  ;;  %v6886_v52 = vld [vmem:[%s10892_s2 + $0x42c] sm:$0xf0]  ;;  %v5069_v17 = vld [vmem:[%s10892_s2 + $0x3f0] sm:$0xf0] }
  0x34   :  { %v5371_v44 = vld [vmem:[%s10892_s2 + $0x640] sm:$0xf]  ;;  %1496 = vmatpush.bf16.msrb.mxu0 %v5132_v36  ;;  %v5244_v49 = vor.u32 %v6922_v43, %v5243_v41  ;;  %v6918_v55 = vld [vmem:[%s10892_s2 + $0x52c] sm:$0xf0]  ;;  %v6908_v18 = vld [vmem:[%s10892_s2 + $0x4e4] sm:$0xf]  ;;  %v5072_v32 = vor.u32 %v6876_v15, %v5069_v17 }
  0x35   :  { %1510 = vmatpush.bf16.msrb.mxu1 %v5260_v37  ;;  %v5372_v50 = vor.u32 %v6954_v45, %v5371_v44  ;;  %v5099_v51 = vld [vmem:[%s10892_s2 + $0x420] sm:$0xf]  ;;  %v6950_v58 = vld [vmem:[%s10892_s2 + $0x62c] sm:$0xf0]  ;;  %v6750_v24 = vld [vmem:[%s10890_s0 + $0x28] sm:$0xf0]  ;;  %v5200_v36 = vor.u32 %v6908_v18, %v5197_v19 }
  0x36   :  { %1524 = vmatpush.bf16.msrb.mxu2 %v5388_v38  ;;  %v5227_v53 = vld [vmem:[%s10892_s2 + $0x520] sm:$0xf]  ;;  %v5100_v62 = vor.u32 %v6886_v52, %v5099_v51  ;;  %v6882_v63 = vld [vmem:[%s10892_s2 + $0x40c] sm:$0xf0]  ;;  %v4567_v25 = vld [vmem:[%s10890_s0 + $0x18] sm:$0xf] }
  0x37   :  { %1538 = vmatpush.bf16.msrb.mxu3 %v4624_v42  ;;  %v5355_v56 = vld [vmem:[%s10892_s2 + $0x620] sm:$0xf]  ;;  %v6914_v2 = vld [vmem:[%s10892_s2 + $0x50c] sm:$0xf0]  ;;  %v5228_v3 = vor.u32 %v6918_v55, %v5227_v53  ;;  %v6751_v28 = vld [vmem:[%s10890_s0 + $0x30] sm:$0xf0] }
  0x38   :  { %v5083_v61 = vld [vmem:[%s10892_s2 + $0x400] sm:$0xf]  ;;  %1497 = vmatpush.bf16.msrb.mxu0 %v5116_v48  ;;  %v5356_v4 = vor.u32 %v6950_v58, %v5355_v56  ;;  %v6946_v6 = vld [vmem:[%s10892_s2 + $0x60c] sm:$0xf0]  ;;  %v6747_v29 = vld [vmem:[%s10890_s0 + $0x14] sm:$0xf]  ;;  %v7902_v41 = vor.u32 %v6751_v28, %v4567_v25 }
  0x39   :  { %v5211_v1 = vld [vmem:[%s10892_s2 + $0x500] sm:$0xf]  ;;  %1511 = vmatpush.bf16.msrb.mxu1 %v5244_v49  ;;  %v5084_v16 = vor.u32 %v6882_v63, %v5083_v61  ;;  %v4559_v22 = vld [vmem:[%s10890_s0 + $0x10] sm:$0xf]  ;;  %v6808_v33 = vld [vmem:[%s10892_s2 + $0x1c4] sm:$0xf] }
  0x3a   :  { %1525 = vmatpush.bf16.msrb.mxu2 %v5372_v50  ;;  %v5339_v5 = vld [vmem:[%s10892_s2 + $0x600] sm:$0xf]  ;;  %v5212_v20 = vor.u32 %v6914_v2, %v5211_v1  ;;  %v4561_v30 = vld [vmem:[%s10890_s0 + $0x2c] sm:$0xf0]  ;;  %v7891_v37 = vor.u32 %v6750_v24, %v4559_v22  ;;  %v4925_v38 = vld [vmem:[%s10892_s2 + $0x2d0] sm:$0xf0]  ;;  %v4800_v45 = vor.u32 %v6808_v33, %v4797_v34 }
  0x3b   :  { %1539 = vmatpush.bf16.msrb.mxu3 %v4608_v54  ;;  %v5340_v21 = vor.u32 %v6946_v6, %v5339_v5  ;;  %v6872_v39 = vld [vmem:[%s10892_s2 + $0x3c4] sm:$0xf]  ;;  %v5053_v40 = vld [vmem:[%s10892_s2 + $0x3d0] sm:$0xf0]  ;;  %v7904_v42 = vor.u32 %v6747_v29, %v4561_v30  ;;  %v4928_v46 = vor.u32 %v6840_v35, %v4925_v38 }
  0x3c   :  { %1498 = vmatpush.bf16.msrb.mxu0 %v5100_v62  ;;  %v6904_v43 = vld [vmem:[%s10892_s2 + $0x4c4] sm:$0xf]  ;;  %v5181_v44 = vld [vmem:[%s10892_s2 + $0x4d0] sm:$0xf0]  ;;  %v5056_v47 = vor.u32 %v6872_v39, %v5053_v40 }
  0x3d   :  { %1512 = vmatpush.bf16.msrb.mxu1 %v5228_v3  ;;  %v6804_v48 = vld [vmem:[%s10892_s2 + $0x1a4] sm:$0xf]  ;;  %v4781_v49 = vld [vmem:[%s10892_s2 + $0x1b0] sm:$0xf0]  ;;  %v5184_v51 = vor.u32 %v6904_v43, %v5181_v44 }
  0x3e   :  { %1526 = vmatpush.bf16.msrb.mxu2 %v5356_v4  ;;  %v6836_v50 = vld [vmem:[%s10892_s2 + $0x2a4] sm:$0xf]  ;;  %v4909_v52 = vld [vmem:[%s10892_s2 + $0x2b0] sm:$0xf0]  ;;  %v4784_v58 = vor.u32 %v6804_v48, %v4781_v49 }
  0x3f   :  { %1540 = vmatpush.bf16.msrb.mxu3 %v4592_v8  ;;  %v6868_v53 = vld [vmem:[%s10892_s2 + $0x3a4] sm:$0xf]  ;;  %v5037_v54 = vld [vmem:[%s10892_s2 + $0x3b0] sm:$0xf0]  ;;  %v4912_v59 = vor.u32 %v6836_v50, %v4909_v52 }
  0x40   :  { %1499 = vmatpush.bf16.msrb.mxu0 %v5084_v16  ;;  %v6900_v55 = vld [vmem:[%s10892_s2 + $0x4a4] sm:$0xf]  ;;  %v5165_v56 = vld [vmem:[%s10892_s2 + $0x4b0] sm:$0xf0]  ;;  %v5040_v60 = vor.u32 %v6868_v53, %v5037_v54 }
  0x41   :  { %1513 = vmatpush.bf16.msrb.mxu1 %v5212_v20  ;;  %v6800_v61 = vld [vmem:[%s10892_s2 + $0x184] sm:$0xf]  ;;  %v4765_v62 = vld [vmem:[%s10892_s2 + $0x190] sm:$0xf0]  ;;  %v5168_v1 = vor.u32 %v6900_v55, %v5165_v56 }
  0x42   :  { %1527 = vmatpush.bf16.msrb.mxu2 %v5340_v21  ;;  %v6832_v63 = vld [vmem:[%s10892_s2 + $0x284] sm:$0xf]  ;;  %v4893_v2 = vld [vmem:[%s10892_s2 + $0x290] sm:$0xf0]  ;;  %v4768_v7 = vor.u32 %v6800_v61, %v4765_v62 }
  0x43   :  { %1541 = vmatpush.bf16.msrb.mxu3 %v4576_v26  ;;  %1500 = vmatmul.bf16.vlgmr.msrb.gmra.mxu0 %v7891_v37  ;;  %v6864_v3 = vld [vmem:[%s10892_s2 + $0x384] sm:$0xf]  ;;  %v5021_v4 = vld [vmem:[%s10892_s2 + $0x390] sm:$0xf0]  ;;  %v4896_v8 = vor.u32 %v6832_v63, %v4893_v2 }
  0x44   :  { %1548 = vmatpush.bf16.msra.mxu0 %v4816_v27  ;;  %1514 = vmatmul.bf16.vlgmr.msrb.gmra.mxu1 %v7904_v42  ;;  %v6896_v5 = vld [vmem:[%s10892_s2 + $0x484] sm:$0xf]  ;;  %v5149_v6 = vld [vmem:[%s10892_s2 + $0x490] sm:$0xf0]  ;;  %v5024_v9 = vor.u32 %v6864_v3, %v5021_v4  ;;  %v4691_v3 = vld [vmem:[%s10892_s2 + $0xe8] sm:$0xf] }
  0x45   :  { %1562 = vmatpush.bf16.msra.mxu1 %v4944_v31  ;;  %1528 = vmatmul.bf16.vlgmr.msrb.gmra.mxu2 %v7902_v41  ;;  %v6796_v10 = vld [vmem:[%s10892_s2 + $0x164] sm:$0xf]  ;;  %v4749_v12 = vld [vmem:[%s10892_s2 + $0x170] sm:$0xf0]  ;;  %v5152_v14 = vor.u32 %v6896_v5, %v5149_v6  ;;  %v6783_v4 = vld [vmem:[%s10892_s2 + $0xf4] sm:$0xf0] }
  0x46   :  { %1576 = vmatpush.bf16.msra.mxu2 %v5072_v32  ;;  %1542 = vmatmul.bf16.vlgmr.msrb.gmra.mxu3 %v7672_v57  ;;  %v6828_v13 = vld [vmem:[%s10892_s2 + $0x264] sm:$0xf]  ;;  %v4877_v15 = vld [vmem:[%s10892_s2 + $0x270] sm:$0xf0]  ;;  %v4752_v20 = vor.u32 %v6796_v10, %v4749_v12 }
  0x47   :  { %1590 = vmatpush.bf16.msra.mxu3 %v5200_v36  ;;  %v6860_v16 = vld [vmem:[%s10892_s2 + $0x364] sm:$0xf]  ;;  %v5005_v17 = vld [vmem:[%s10892_s2 + $0x370] sm:$0xf0]  ;;  %v4880_v21 = vor.u32 %v6828_v13, %v4877_v15  ;;  %v4692_v13 = vor.u32 %v6783_v4, %v4691_v3 }
  0x48   :  { %1549 = vmatpush.bf16.msra.mxu0 %v4800_v45  ;;  %v6892_v18 = vld [vmem:[%s10892_s2 + $0x464] sm:$0xf]  ;;  %v5133_v19 = vld [vmem:[%s10892_s2 + $0x470] sm:$0xf0]  ;;  %v5008_v22 = vor.u32 %v6860_v16, %v5005_v17 }
  0x49   :  { %1563 = vmatpush.bf16.msra.mxu1 %v4928_v46  ;;  %v6792_v24 = vld [vmem:[%s10892_s2 + $0x144] sm:$0xf]  ;;  %v4733_v25 = vld [vmem:[%s10892_s2 + $0x150] sm:$0xf0]  ;;  %v5136_v27 = vor.u32 %v6892_v18, %v5133_v19  ;;  %v4675_v19 = vld [vmem:[%s10892_s2 + $0xc8] sm:$0xf] }
  0x4a   :  { %1577 = vmatpush.bf16.msra.mxu2 %v5056_v47  ;;  %v6824_v26 = vld [vmem:[%s10892_s2 + $0x244] sm:$0xf]  ;;  %v4861_v28 = vld [vmem:[%s10892_s2 + $0x250] sm:$0xf0]  ;;  %v4736_v33 = vor.u32 %v6792_v24, %v4733_v25 }
  0x4b   :  { %1591 = vmatpush.bf16.msra.mxu3 %v5184_v51  ;;  %v6856_v29 = vld [vmem:[%s10892_s2 + $0x344] sm:$0xf]  ;;  %v4989_v30 = vld [vmem:[%s10892_s2 + $0x350] sm:$0xf0]  ;;  %v4864_v34 = vor.u32 %v6824_v26, %v4861_v28 }
  0x4c   :  { %1550 = vmatpush.bf16.msra.mxu0 %v4784_v58  ;;  %v6888_v31 = vld [vmem:[%s10892_s2 + $0x444] sm:$0xf]  ;;  %v5117_v32 = vld [vmem:[%s10892_s2 + $0x450] sm:$0xf0]  ;;  %v4992_v35 = vor.u32 %v6856_v29, %v4989_v30 }
  0x4d   :  { %1564 = vmatpush.bf16.msra.mxu1 %v4912_v59  ;;  %v6788_v36 = vld [vmem:[%s10892_s2 + $0x124] sm:$0xf]  ;;  %v4717_v38 = vld [vmem:[%s10892_s2 + $0x130] sm:$0xf0]  ;;  %v5120_v40 = vor.u32 %v6888_v31, %v5117_v32 }
  0x4e   :  { %1578 = vmatpush.bf16.msra.mxu2 %v5040_v60  ;;  %v6820_v39 = vld [vmem:[%s10892_s2 + $0x224] sm:$0xf]  ;;  %v4845_v43 = vld [vmem:[%s10892_s2 + $0x230] sm:$0xf0]  ;;  %v4720_v48 = vor.u32 %v6788_v36, %v4717_v38 }
  0x4f   :  { %1592 = vmatpush.bf16.msra.mxu3 %v5168_v1  ;;  %v6852_v44 = vld [vmem:[%s10892_s2 + $0x324] sm:$0xf]  ;;  %v4973_v45 = vld [vmem:[%s10892_s2 + $0x330] sm:$0xf0]  ;;  %v4848_v51 = vor.u32 %v6820_v39, %v4845_v43 }
  0x50   :  { %1551 = vmatpush.bf16.msra.mxu0 %v4768_v7  ;;  %v6884_v46 = vld [vmem:[%s10892_s2 + $0x424] sm:$0xf]  ;;  %v5101_v47 = vld [vmem:[%s10892_s2 + $0x430] sm:$0xf0]  ;;  %v4976_v52 = vor.u32 %v6852_v44, %v4973_v45  ;;  %v4819_v7 = vld [vmem:[%s10892_s2 + $0x1e8] sm:$0xf] }
  0x51   :  { %1565 = vmatpush.bf16.msra.mxu1 %v4896_v8  ;;  %v6784_v49 = vld [vmem:[%s10892_s2 + $0x104] sm:$0xf]  ;;  %v4701_v50 = vld [vmem:[%s10892_s2 + $0x110] sm:$0xf0]  ;;  %v5104_v56 = vor.u32 %v6884_v46, %v5101_v47  ;;  %v6815_v8 = vld [vmem:[%s10892_s2 + $0x1f4] sm:$0xf0] }
  0x52   :  { %1579 = vmatpush.bf16.msra.mxu2 %v5024_v9  ;;  %v6816_v53 = vld [vmem:[%s10892_s2 + $0x204] sm:$0xf]  ;;  %v4829_v54 = vld [vmem:[%s10892_s2 + $0x210] sm:$0xf0]  ;;  %v4704_v1 = vor.u32 %v6784_v49, %v4701_v50  ;;  %v4820_v17 = vor.u32 %v6815_v8, %v4819_v7 }
  0x53   :  { %1593 = vmatpush.bf16.msra.mxu3 %v5152_v14  ;;  %v6848_v55 = vld [vmem:[%s10892_s2 + $0x304] sm:$0xf]  ;;  %v4957_v58 = vld [vmem:[%s10892_s2 + $0x310] sm:$0xf0]  ;;  %v4832_v5 = vor.u32 %v6816_v53, %v4829_v54 }
  0x54   :  { %1552 = vmatpush.bf16.msra.mxu0 %v4752_v20  ;;  %v6880_v59 = vld [vmem:[%s10892_s2 + $0x404] sm:$0xf]  ;;  %v5085_v60 = vld [vmem:[%s10892_s2 + $0x410] sm:$0xf0]  ;;  %v4960_v6 = vor.u32 %v6848_v55, %v4957_v58  ;;  %v6779_v20 = vld [vmem:[%s10892_s2 + $0xd4] sm:$0xf0] }
  0x55   :  { %1566 = vmatpush.bf16.msra.mxu1 %v4880_v21  ;;  %v6940_v61 = vld [vmem:[%s10892_s2 + $0x5e4] sm:$0xf]  ;;  %v5325_v62 = vld [vmem:[%s10892_s2 + $0x5f0] sm:$0xf0]  ;;  %v5088_v9 = vor.u32 %v6880_v59, %v5085_v60  ;;  %v4803_v21 = vld [vmem:[%s10892_s2 + $0x1c8] sm:$0xf] }
  0x56   :  { %1580 = vmatpush.bf16.msra.mxu2 %v5008_v22  ;;  %v6972_v63 = vld [vmem:[%s10892_s2 + $0x6e4] sm:$0xf]  ;;  %v5453_v2 = vld [vmem:[%s10892_s2 + $0x6f0] sm:$0xf0]  ;;  %v5328_v10 = vor.u32 %v6940_v61, %v5325_v62  ;;  %v6811_v22 = vld [vmem:[%s10892_s2 + $0x1d4] sm:$0xf0] }
  0x57   :  { %1594 = vmatpush.bf16.msra.mxu3 %v5136_v27  ;;  %v5456_v12 = vor.u32 %v6972_v63, %v5453_v2  ;;  %v6936_v14 = vld [vmem:[%s10892_s2 + $0x5c4] sm:$0xf]  ;;  %v5309_v15 = vld [vmem:[%s10892_s2 + $0x5d0] sm:$0xf0] }
  0x58   :  { %1553 = vmatpush.bf16.msra.mxu0 %v4736_v33  ;;  %v6968_v16 = vld [vmem:[%s10892_s2 + $0x6c4] sm:$0xf]  ;;  %v5437_v18 = vld [vmem:[%s10892_s2 + $0x6d0] sm:$0xf0] }
  0x59   :  { %1567 = vmatpush.bf16.msra.mxu1 %v4864_v34 }
  0x5a   :  { %1581 = vmatpush.bf16.msra.mxu2 %v4992_v35 }
  0x5b   :  { %1595 = vmatpush.bf16.msra.mxu3 %v5120_v40 }
  0x5c   :  { %1554 = vmatpush.bf16.msra.mxu0 %v4720_v48 }
  0x5d   :  { %1568 = vmatpush.bf16.msra.mxu1 %v4848_v51 }
  0x5e   :  { %1582 = vmatpush.bf16.msra.mxu2 %v4976_v52 }
  0x5f   :  { %1596 = vmatpush.bf16.msra.mxu3 %v5104_v56 }
  0x60   :  { %1555 = vmatpush.bf16.msra.mxu0 %v4704_v1 }
  0x61   :  { %1569 = vmatpush.bf16.msra.mxu1 %v4832_v5 }
  0x62   :  { %1583 = vmatpush.bf16.msra.mxu2 %v4960_v6 }
  0x63   :  { %17 = vsyncpa [#allocation3], 0  ;;  %1597 = vmatpush.bf16.msra.mxu3 %v5088_v9  ;;  %v5312_v24 = vor.u32 %v6936_v14, %v5309_v15  ;;  %v5440_v25 = vor.u32 %v6968_v16, %v5437_v18  ;;  %v4676_v26 = vor.u32 %v6779_v20, %v4675_v19  ;;  %v6932_v27 = vld [vmem:[%s10892_s2 + $0x5a4] sm:$0xf]  ;;  %v5293_v28 = vld [vmem:[%s10892_s2 + $0x5b0] sm:$0xf0]  ;;  %1556 = vmatmul.bf16.vlgmr.msra.gmra.mxu0 %v7714_v11 }
  0x64   :  { %1604 = vmatpush.bf16.msrb.mxu0 %v5328_v10  ;;  %v6964_v29 = vld [vmem:[%s10892_s2 + $0x6a4] sm:$0xf]  ;;  %v4804_v30 = vor.u32 %v6811_v22, %v4803_v21  ;;  %v5421_v31 = vld [vmem:[%s10892_s2 + $0x6b0] sm:$0xf0]  ;;  %v4659_v32 = vld [vmem:[%s10892_s2 + $0xa8] sm:$0xf]  ;;  %1570 = vmatmul.bf16.vlgmr.msra.gmra.mxu1 %v7686_v0  ;;  %v5296_v36 = vor.u32 %v6932_v27, %v5293_v28 }
  0x65   :  { %1618 = vmatpush.bf16.msrb.mxu1 %v5456_v12  ;;  %v6775_v33 = vld [vmem:[%s10892_s2 + $0xb4] sm:$0xf0]  ;;  %1584 = vmatmul.bf16.vlgmr.msra.gmra.mxu2 %v7741_v23  ;;  %v4787_v34 = vld [vmem:[%s10892_s2 + $0x1a8] sm:$0xf]  ;;  %v5424_v38 = vor.u32 %v6964_v29, %v5421_v31  ;;  %v6928_v40 = vld [vmem:[%s10892_s2 + $0x584] sm:$0xf] }
  0x66   :  { %1632 = vmatpush.bf16.msrb.mxu2 %v4692_v13  ;;  %v6807_v35 = vld [vmem:[%s10892_s2 + $0x1b4] sm:$0xf0]  ;;  %1598 = vmatmul.bf16.vlgmr.msra.gmra.mxu3 %v7891_v37  ;;  %v4660_v39 = vor.u32 %v6775_v33, %v4659_v32  ;;  %v5277_v43 = vld [vmem:[%s10892_s2 + $0x590] sm:$0xf0]  ;;  %v6960_v44 = vld [vmem:[%s10892_s2 + $0x684] sm:$0xf] }
  0x67   :  { %1646 = vmatpush.bf16.msrb.mxu3 %v4820_v17  ;;  %v4788_v45 = vor.u32 %v6807_v35, %v4787_v34  ;;  %v5405_v46 = vld [vmem:[%s10892_s2 + $0x690] sm:$0xf0]  ;;  %v4643_v47 = vld [vmem:[%s10892_s2 + $0x88] sm:$0xf]  ;;  %v6771_v48 = vld [vmem:[%s10892_s2 + $0x94] sm:$0xf0]  ;;  %v5280_v51 = vor.u32 %v6928_v40, %v5277_v43 }
  0x68   :  { %1605 = vmatpush.bf16.msrb.mxu0 %v5312_v24  ;;  %v4771_v49 = vld [vmem:[%s10892_s2 + $0x188] sm:$0xf]  ;;  %v6803_v50 = vld [vmem:[%s10892_s2 + $0x194] sm:$0xf0]  ;;  %v5408_v52 = vor.u32 %v6960_v44, %v5405_v46  ;;  %v4644_v53 = vor.u32 %v6771_v48, %v4643_v47  ;;  %v6924_v54 = vld [vmem:[%s10892_s2 + $0x564] sm:$0xf] }
  0x69   :  { %1619 = vmatpush.bf16.msrb.mxu1 %v5440_v25  ;;  %v5261_v55 = vld [vmem:[%s10892_s2 + $0x570] sm:$0xf0]  ;;  %v6956_v56 = vld [vmem:[%s10892_s2 + $0x664] sm:$0xf]  ;;  %v4772_v58 = vor.u32 %v6803_v50, %v4771_v49  ;;  %v4627_v60 = vld [vmem:[%s10892_s2 + $0x68] sm:$0xf] }
  0x6a   :  { %1633 = vmatpush.bf16.msrb.mxu2 %v4676_v26  ;;  %v5389_v59 = vld [vmem:[%s10892_s2 + $0x670] sm:$0xf0]  ;;  %v6767_v61 = vld [vmem:[%s10892_s2 + $0x74] sm:$0xf0]  ;;  %v4755_v62 = vld [vmem:[%s10892_s2 + $0x168] sm:$0xf]  ;;  %v5264_v1 = vor.u32 %v6924_v54, %v5261_v55 }
  0x6b   :  { %1647 = vmatpush.bf16.msrb.mxu3 %v4804_v30  ;;  %v6799_v63 = vld [vmem:[%s10892_s2 + $0x174] sm:$0xf0]  ;;  %v5392_v2 = vor.u32 %v6956_v56, %v5389_v59  ;;  %v4628_v3 = vor.u32 %v6767_v61, %v4627_v60  ;;  %v6920_v4 = vld [vmem:[%s10892_s2 + $0x544] sm:$0xf]  ;;  %v5245_v5 = vld [vmem:[%s10892_s2 + $0x550] sm:$0xf0] }
  0x6c   :  { %1606 = vmatpush.bf16.msrb.mxu0 %v5296_v36  ;;  %v6952_v6 = vld [vmem:[%s10892_s2 + $0x644] sm:$0xf]  ;;  %v4756_v7 = vor.u32 %v6799_v63, %v4755_v62  ;;  %v5373_v8 = vld [vmem:[%s10892_s2 + $0x650] sm:$0xf0]  ;;  %v4611_v9 = vld [vmem:[%s10892_s2 + $0x48] sm:$0xf]  ;;  %v5248_v14 = vor.u32 %v6920_v4, %v5245_v5 }
  0x6d   :  { %1620 = vmatpush.bf16.msrb.mxu1 %v5424_v38  ;;  %v6763_v10 = vld [vmem:[%s10892_s2 + $0x54] sm:$0xf0]  ;;  %v4739_v12 = vld [vmem:[%s10892_s2 + $0x148] sm:$0xf]  ;;  %v5376_v15 = vor.u32 %v6952_v6, %v5373_v8  ;;  %v6916_v17 = vld [vmem:[%s10892_s2 + $0x524] sm:$0xf] }
  0x6e   :  { %1634 = vmatpush.bf16.msrb.mxu2 %v4660_v39  ;;  %v6795_v13 = vld [vmem:[%s10892_s2 + $0x154] sm:$0xf0]  ;;  %v4612_v16 = vor.u32 %v6763_v10, %v4611_v9  ;;  %v5229_v18 = vld [vmem:[%s10892_s2 + $0x530] sm:$0xf0]  ;;  %v6948_v19 = vld [vmem:[%s10892_s2 + $0x624] sm:$0xf] }
  0x6f   :  { %1648 = vmatpush.bf16.msrb.mxu3 %v4788_v45  ;;  %v4740_v20 = vor.u32 %v6795_v13, %v4739_v12  ;;  %v5357_v21 = vld [vmem:[%s10892_s2 + $0x630] sm:$0xf0]  ;;  %v4595_v22 = vld [vmem:[%s10892_s2 + $0x28] sm:$0xf]  ;;  %v6759_v24 = vld [vmem:[%s10892_s2 + $0x34] sm:$0xf0]  ;;  %v5232_v27 = vor.u32 %v6916_v17, %v5229_v18 }
  0x70   :  { %1607 = vmatpush.bf16.msrb.mxu0 %v5280_v51  ;;  %v4723_v25 = vld [vmem:[%s10892_s2 + $0x128] sm:$0xf]  ;;  %v6791_v26 = vld [vmem:[%s10892_s2 + $0x134] sm:$0xf0]  ;;  %v6912_v28 = vld [vmem:[%s10892_s2 + $0x504] sm:$0xf]  ;;  %v5360_v30 = vor.u32 %v6948_v19, %v5357_v21  ;;  %v4596_v31 = vor.u32 %v6759_v24, %v4595_v22 }
  0x71   :  { %1621 = vmatpush.bf16.msrb.mxu1 %v5408_v52  ;;  %v5213_v29 = vld [vmem:[%s10892_s2 + $0x510] sm:$0xf0]  ;;  %v6944_v32 = vld [vmem:[%s10892_s2 + $0x604] sm:$0xf]  ;;  %v4579_v34 = vld [vmem:[%s10892_s2 + $0x8] sm:$0xf]  ;;  %v4724_v35 = vor.u32 %v6791_v26, %v4723_v25 }
  0x72   :  { %1635 = vmatpush.bf16.msrb.mxu2 %v4644_v53  ;;  %v5341_v33 = vld [vmem:[%s10892_s2 + $0x610] sm:$0xf0]  ;;  %v6755_v36 = vld [vmem:[%s10892_s2 + $0x14] sm:$0xf0]  ;;  %v4707_v38 = vld [vmem:[%s10892_s2 + $0x108] sm:$0xf]  ;;  %v5216_v45 = vor.u32 %v6912_v28, %v5213_v29 }
  0x73   :  { %1649 = vmatpush.bf16.msrb.mxu3 %v4772_v58  ;;  %v6787_v39 = vld [vmem:[%s10892_s2 + $0x114] sm:$0xf0]  ;;  %v4947_v40 = vld [vmem:[%s10892_s2 + $0x2e8] sm:$0xf]  ;;  %v5344_v49 = vor.u32 %v6944_v32, %v5341_v33  ;;  %v4580_v50 = vor.u32 %v6755_v36, %v4579_v34 }
  0x74   :  { %1608 = vmatpush.bf16.msrb.mxu0 %v5264_v1  ;;  %v6847_v43 = vld [vmem:[%s10892_s2 + $0x2f4] sm:$0xf0]  ;;  %v5075_v44 = vld [vmem:[%s10892_s2 + $0x3e8] sm:$0xf]  ;;  %v4708_v53 = vor.u32 %v6787_v39, %v4707_v38 }
  0x75   :  { %1622 = vmatpush.bf16.msrb.mxu1 %v5392_v2  ;;  %v6879_v46 = vld [vmem:[%s10892_s2 + $0x3f4] sm:$0xf0]  ;;  %v5203_v47 = vld [vmem:[%s10892_s2 + $0x4e8] sm:$0xf]  ;;  %v4948_v54 = vor.u32 %v6847_v43, %v4947_v40 }
  0x76   :  { %1636 = vmatpush.bf16.msrb.mxu2 %v4628_v3  ;;  %v6911_v48 = vld [vmem:[%s10892_s2 + $0x4f4] sm:$0xf0]  ;;  %v5331_v51 = vld [vmem:[%s10892_s2 + $0x5e8] sm:$0xf]  ;;  %v5076_v55 = vor.u32 %v6879_v46, %v5075_v44 }
  0x77   :  { %1650 = vmatpush.bf16.msrb.mxu3 %v4756_v7  ;;  %v6943_v52 = vld [vmem:[%s10892_s2 + $0x5f4] sm:$0xf0]  ;;  %v5204_v56 = vor.u32 %v6911_v48, %v5203_v47  ;;  %v4931_v58 = vld [vmem:[%s10892_s2 + $0x2c8] sm:$0xf] }
  0x78   :  { %1609 = vmatpush.bf16.msrb.mxu0 %v5248_v14  ;;  %v6843_v59 = vld [vmem:[%s10892_s2 + $0x2d4] sm:$0xf0]  ;;  %v5059_v60 = vld [vmem:[%s10892_s2 + $0x3c8] sm:$0xf]  ;;  %v5332_v61 = vor.u32 %v6943_v52, %v5331_v51 }
  0x79   :  { %1623 = vmatpush.bf16.msrb.mxu1 %v5376_v15  ;;  %v6875_v62 = vld [vmem:[%s10892_s2 + $0x3d4] sm:$0xf0]  ;;  %v5187_v63 = vld [vmem:[%s10892_s2 + $0x4c8] sm:$0xf]  ;;  %v4932_v4 = vor.u32 %v6843_v59, %v4931_v58 }
  0x7a   :  { %1637 = vmatpush.bf16.msrb.mxu2 %v4612_v16  ;;  %v6907_v1 = vld [vmem:[%s10892_s2 + $0x4d4] sm:$0xf0]  ;;  %v5315_v2 = vld [vmem:[%s10892_s2 + $0x5c8] sm:$0xf]  ;;  %v5060_v5 = vor.u32 %v6875_v62, %v5059_v60 }
  0x7b   :  { %1651 = vmatpush.bf16.msrb.mxu3 %v4740_v20  ;;  %v6939_v3 = vld [vmem:[%s10892_s2 + $0x5d4] sm:$0xf0]  ;;  %v5188_v6 = vor.u32 %v6907_v1, %v5187_v63  ;;  %v4915_v7 = vld [vmem:[%s10892_s2 + $0x2a8] sm:$0xf] }
  0x7c   :  { %1610 = vmatpush.bf16.msrb.mxu0 %v5232_v27  ;;  %v6839_v8 = vld [vmem:[%s10892_s2 + $0x2b4] sm:$0xf0]  ;;  %v5043_v9 = vld [vmem:[%s10892_s2 + $0x3a8] sm:$0xf]  ;;  %v5316_v10 = vor.u32 %v6939_v3, %v5315_v2 }
  0x7d   :  { %1624 = vmatpush.bf16.msrb.mxu1 %v5360_v30  ;;  %v6871_v12 = vld [vmem:[%s10892_s2 + $0x3b4] sm:$0xf0]  ;;  %v5171_v13 = vld [vmem:[%s10892_s2 + $0x4a8] sm:$0xf]  ;;  %v4916_v17 = vor.u32 %v6839_v8, %v4915_v7 }
  0x7e   :  { %1638 = vmatpush.bf16.msrb.mxu2 %v4596_v31  ;;  %v6903_v14 = vld [vmem:[%s10892_s2 + $0x4b4] sm:$0xf0]  ;;  %v5299_v15 = vld [vmem:[%s10892_s2 + $0x5a8] sm:$0xf]  ;;  %v5044_v18 = vor.u32 %v6871_v12, %v5043_v9 }
  0x7f   :  { %1652 = vmatpush.bf16.msrb.mxu3 %v4724_v35  ;;  %v6935_v16 = vld [vmem:[%s10892_s2 + $0x5b4] sm:$0xf0]  ;;  %v5172_v19 = vor.u32 %v6903_v14, %v5171_v13  ;;  %v4899_v20 = vld [vmem:[%s10892_s2 + $0x288] sm:$0xf] }
  0x80   :  { %1611 = vmatpush.bf16.msrb.mxu0 %v5216_v45  ;;  %v6835_v21 = vld [vmem:[%s10892_s2 + $0x294] sm:$0xf0]  ;;  %v5027_v22 = vld [vmem:[%s10892_s2 + $0x388] sm:$0xf]  ;;  %v5300_v24 = vor.u32 %v6935_v16, %v5299_v15 }
  0x81   :  { %1625 = vmatpush.bf16.msrb.mxu1 %v5344_v49  ;;  %v6867_v25 = vld [vmem:[%s10892_s2 + $0x394] sm:$0xf0]  ;;  %v5155_v26 = vld [vmem:[%s10892_s2 + $0x488] sm:$0xf]  ;;  %v4900_v30 = vor.u32 %v6835_v21, %v4899_v20 }
  0x82   :  { %1639 = vmatpush.bf16.msrb.mxu2 %v4580_v50  ;;  %v6899_v27 = vld [vmem:[%s10892_s2 + $0x494] sm:$0xf0]  ;;  %v5283_v28 = vld [vmem:[%s10892_s2 + $0x588] sm:$0xf]  ;;  %v5028_v31 = vor.u32 %v6867_v25, %v5027_v22  ;;  %v6781_v22 = vld [vmem:[%s10892_s2 + $0xec] sm:$0xf] }
  0x83   :  { %1653 = vmatpush.bf16.msrb.mxu3 %v4708_v53  ;;  %1612 = vmatmul.bf16.vlgmr.msrb.gmra.mxu0 %v7904_v42  ;;  %v6931_v29 = vld [vmem:[%s10892_s2 + $0x594] sm:$0xf0]  ;;  %v5156_v32 = vor.u32 %v6899_v27, %v5155_v26  ;;  %v4883_v33 = vld [vmem:[%s10892_s2 + $0x268] sm:$0xf]  ;;  %v4693_v25 = vld [vmem:[%s10892_s2 + $0xf8] sm:$0xf0] }
  0x84   :  { %1660 = vmatpush.bf16.msra.mxu0 %v4948_v54  ;;  %1626 = vmatmul.bf16.vlgmr.msrb.gmra.mxu1 %v7902_v41  ;;  %v6831_v34 = vld [vmem:[%s10892_s2 + $0x274] sm:$0xf0]  ;;  %v5011_v35 = vld [vmem:[%s10892_s2 + $0x368] sm:$0xf]  ;;  %v5284_v36 = vor.u32 %v6931_v29, %v5283_v28  ;;  %v6813_v26 = vld [vmem:[%s10892_s2 + $0x1ec] sm:$0xf] }
  0x85   :  { %1674 = vmatpush.bf16.msra.mxu1 %v5076_v55  ;;  %1640 = vmatmul.bf16.vlgmr.msrb.gmra.mxu2 %v7672_v57  ;;  %v6863_v38 = vld [vmem:[%s10892_s2 + $0x374] sm:$0xf0]  ;;  %v5139_v39 = vld [vmem:[%s10892_s2 + $0x468] sm:$0xf]  ;;  %v4884_v45 = vor.u32 %v6831_v34, %v4883_v33  ;;  %v4821_v27 = vld [vmem:[%s10892_s2 + $0x1f8] sm:$0xf0]  ;;  %v4696_v34 = vor.u32 %v6781_v22, %v4693_v25 }
  0x86   :  { %1688 = vmatpush.bf16.msra.mxu2 %v5204_v56  ;;  %1654 = vmatmul.bf16.vlgmr.msrb.gmra.mxu3 %v7714_v11  ;;  %v6895_v40 = vld [vmem:[%s10892_s2 + $0x474] sm:$0xf0]  ;;  %v5267_v43 = vld [vmem:[%s10892_s2 + $0x568] sm:$0xf]  ;;  %v5012_v46 = vor.u32 %v6863_v38, %v5011_v35  ;;  %v4824_v35 = vor.u32 %v6813_v26, %v4821_v27  ;;  %v4885_v22 = vld [vmem:[%s10892_s2 + $0x278] sm:$0xf0] }
  0x87   :  { %1702 = vmatpush.bf16.msra.mxu3 %v5332_v61  ;;  %v6927_v44 = vld [vmem:[%s10892_s2 + $0x574] sm:$0xf0]  ;;  %v5140_v47 = vor.u32 %v6895_v40, %v5139_v39  ;;  %v4867_v48 = vld [vmem:[%s10892_s2 + $0x248] sm:$0xf]  ;;  %v6777_v39 = vld [vmem:[%s10892_s2 + $0xcc] sm:$0xf] }
  0x88   :  { %1661 = vmatpush.bf16.msra.mxu0 %v4932_v4  ;;  %v6827_v49 = vld [vmem:[%s10892_s2 + $0x254] sm:$0xf0]  ;;  %v4995_v50 = vld [vmem:[%s10892_s2 + $0x348] sm:$0xf]  ;;  %v5268_v51 = vor.u32 %v6927_v44, %v5267_v43  ;;  %v4677_v43 = vld [vmem:[%s10892_s2 + $0xd8] sm:$0xf0] }
  0x89   :  { %1675 = vmatpush.bf16.msra.mxu1 %v5060_v5  ;;  %v6859_v52 = vld [vmem:[%s10892_s2 + $0x354] sm:$0xf0]  ;;  %v5123_v53 = vld [vmem:[%s10892_s2 + $0x448] sm:$0xf]  ;;  %v4868_v58 = vor.u32 %v6827_v49, %v4867_v48  ;;  %v6809_v44 = vld [vmem:[%s10892_s2 + $0x1cc] sm:$0xf]  ;;  %v4680_v49 = vor.u32 %v6777_v39, %v4677_v43 }
  0x8a   :  { %1689 = vmatpush.bf16.msra.mxu2 %v5188_v6  ;;  %v6891_v54 = vld [vmem:[%s10892_s2 + $0x454] sm:$0xf0]  ;;  %v5251_v55 = vld [vmem:[%s10892_s2 + $0x548] sm:$0xf]  ;;  %v4996_v59 = vor.u32 %v6859_v52, %v4995_v50 }
  0x8b   :  { %1703 = vmatpush.bf16.msra.mxu3 %v5316_v10  ;;  %v6923_v56 = vld [vmem:[%s10892_s2 + $0x554] sm:$0xf0]  ;;  %v5124_v60 = vor.u32 %v6891_v54, %v5123_v53  ;;  %v4851_v61 = vld [vmem:[%s10892_s2 + $0x228] sm:$0xf]  ;;  %v6773_v53 = vld [vmem:[%s10892_s2 + $0xac] sm:$0xf] }
  0x8c   :  { %1662 = vmatpush.bf16.msra.mxu0 %v4916_v17  ;;  %v6823_v62 = vld [vmem:[%s10892_s2 + $0x234] sm:$0xf0]  ;;  %v4979_v63 = vld [vmem:[%s10892_s2 + $0x328] sm:$0xf]  ;;  %v5252_v1 = vor.u32 %v6923_v56, %v5251_v55  ;;  %v4661_v55 = vld [vmem:[%s10892_s2 + $0xb8] sm:$0xf0] }
  0x8d   :  { %1676 = vmatpush.bf16.msra.mxu1 %v5044_v18  ;;  %v6855_v2 = vld [vmem:[%s10892_s2 + $0x334] sm:$0xf0]  ;;  %v5107_v3 = vld [vmem:[%s10892_s2 + $0x428] sm:$0xf]  ;;  %v4852_v7 = vor.u32 %v6823_v62, %v4851_v61  ;;  %v6805_v56 = vld [vmem:[%s10892_s2 + $0x1ac] sm:$0xf]  ;;  %v4664_v62 = vor.u32 %v6773_v53, %v4661_v55 }
  0x8e   :  { %1690 = vmatpush.bf16.msra.mxu2 %v5172_v19  ;;  %v6887_v4 = vld [vmem:[%s10892_s2 + $0x434] sm:$0xf0]  ;;  %v5235_v5 = vld [vmem:[%s10892_s2 + $0x528] sm:$0xf]  ;;  %v4980_v10 = vor.u32 %v6855_v2, %v4979_v63 }
  0x8f   :  { %1704 = vmatpush.bf16.msra.mxu3 %v5300_v24  ;;  %v6919_v6 = vld [vmem:[%s10892_s2 + $0x534] sm:$0xf0]  ;;  %v4835_v8 = vld [vmem:[%s10892_s2 + $0x208] sm:$0xf]  ;;  %v5108_v12 = vor.u32 %v6887_v4, %v5107_v3  ;;  %v6769_v3 = vld [vmem:[%s10892_s2 + $0x8c] sm:$0xf] }
  0x90   :  { %1663 = vmatpush.bf16.msra.mxu0 %v4900_v30  ;;  %v6819_v9 = vld [vmem:[%s10892_s2 + $0x214] sm:$0xf0]  ;;  %v4963_v13 = vld [vmem:[%s10892_s2 + $0x308] sm:$0xf]  ;;  %v5236_v16 = vor.u32 %v6919_v6, %v5235_v5  ;;  %v6845_v30 = vld [vmem:[%s10892_s2 + $0x2ec] sm:$0xf] }
  0x91   :  { %1677 = vmatpush.bf16.msra.mxu1 %v5028_v31  ;;  %v6851_v14 = vld [vmem:[%s10892_s2 + $0x314] sm:$0xf0]  ;;  %v5091_v15 = vld [vmem:[%s10892_s2 + $0x408] sm:$0xf]  ;;  %v4836_v24 = vor.u32 %v6819_v9, %v4835_v8  ;;  %v4949_v31 = vld [vmem:[%s10892_s2 + $0x2f8] sm:$0xf0] }
  0x92   :  { %1691 = vmatpush.bf16.msra.mxu2 %v5156_v32  ;;  %v6883_v17 = vld [vmem:[%s10892_s2 + $0x414] sm:$0xf0]  ;;  %v5219_v18 = vld [vmem:[%s10892_s2 + $0x508] sm:$0xf]  ;;  %v4964_v28 = vor.u32 %v6851_v14, %v4963_v13  ;;  %v4952_v40 = vor.u32 %v6845_v30, %v4949_v31  ;;  %v4645_v5 = vld [vmem:[%s10892_s2 + $0x98] sm:$0xf0] }
  0x93   :  { %1705 = vmatpush.bf16.msra.mxu3 %v5284_v36  ;;  %v6915_v19 = vld [vmem:[%s10892_s2 + $0x514] sm:$0xf0]  ;;  %v5459_v20 = vld [vmem:[%s10892_s2 + $0x6e8] sm:$0xf]  ;;  %v5092_v29 = vor.u32 %v6883_v17, %v5091_v15  ;;  %v6801_v6 = vld [vmem:[%s10892_s2 + $0x18c] sm:$0xf] }
  0x94   :  { %1664 = vmatpush.bf16.msra.mxu0 %v4884_v45  ;;  %v6975_v21 = vld [vmem:[%s10892_s2 + $0x6f4] sm:$0xf0]  ;;  %v5220_v32 = vor.u32 %v6915_v19, %v5219_v18  ;;  %v5443_v36 = vld [vmem:[%s10892_s2 + $0x6c8] sm:$0xf]  ;;  %v4805_v45 = vld [vmem:[%s10892_s2 + $0x1d8] sm:$0xf0] }
  0x95   :  { %1678 = vmatpush.bf16.msra.mxu1 %v5012_v46  ;;  %v5460_v33 = vor.u32 %v6975_v21, %v5459_v20  ;;  %v6971_v38 = vld [vmem:[%s10892_s2 + $0x6d4] sm:$0xf0]  ;;  %v6841_v46 = vld [vmem:[%s10892_s2 + $0x2cc] sm:$0xf]  ;;  %v4808_v50 = vor.u32 %v6809_v44, %v4805_v45  ;;  %v4901_v9 = vld [vmem:[%s10892_s2 + $0x298] sm:$0xf0] }
  0x96   :  { %1692 = vmatpush.bf16.msra.mxu2 %v5140_v47  ;;  %v4933_v47 = vld [vmem:[%s10892_s2 + $0x2d8] sm:$0xf0]  ;;  %v5444_v48 = vor.u32 %v6971_v38, %v5443_v36  ;;  %v6967_v52 = vld [vmem:[%s10892_s2 + $0x6b4] sm:$0xf0]  ;;  %v6833_v8 = vld [vmem:[%s10892_s2 + $0x28c] sm:$0xf] }
  0x97   :  { %1706 = vmatpush.bf16.msra.mxu3 %v5268_v51  ;;  %v5427_v51 = vld [vmem:[%s10892_s2 + $0x6a8] sm:$0xf]  ;;  %v4936_v54 = vor.u32 %v6841_v46, %v4933_v47  ;;  %v6963_v2 = vld [vmem:[%s10892_s2 + $0x694] sm:$0xf0]  ;;  %v4904_v17 = vor.u32 %v6833_v8, %v4901_v9  ;;  %v4629_v18 = vld [vmem:[%s10892_s2 + $0x78] sm:$0xf0] }
  0x98   :  { %1665 = vmatpush.bf16.msra.mxu0 %v4868_v58  ;;  %v4789_v58 = vld [vmem:[%s10892_s2 + $0x1b8] sm:$0xf0]  ;;  %v5428_v61 = vor.u32 %v6967_v52, %v5427_v51  ;;  %v5395_v14 = vld [vmem:[%s10892_s2 + $0x668] sm:$0xf]  ;;  %v6959_v15 = vld [vmem:[%s10892_s2 + $0x674] sm:$0xf0] }
  0x99   :  { %1679 = vmatpush.bf16.msra.mxu1 %v4996_v59  ;;  %v6837_v59 = vld [vmem:[%s10892_s2 + $0x2ac] sm:$0xf]  ;;  %v4792_v63 = vor.u32 %v6805_v56, %v4789_v58  ;;  %v4757_v20 = vld [vmem:[%s10892_s2 + $0x178] sm:$0xf0]  ;;  %v5379_v27 = vld [vmem:[%s10892_s2 + $0x648] sm:$0xf] }
  0x9a   :  { %1693 = vmatpush.bf16.msra.mxu2 %v5124_v60  ;;  %v4917_v60 = vld [vmem:[%s10892_s2 + $0x2b8] sm:$0xf0]  ;;  %v6797_v19 = vld [vmem:[%s10892_s2 + $0x16c] sm:$0xf]  ;;  %v6951_v43 = vld [vmem:[%s10892_s2 + $0x634] sm:$0xf0] }
  0x9b   :  { %1707 = vmatpush.bf16.msra.mxu3 %v5252_v1  ;;  %v5411_v1 = vld [vmem:[%s10892_s2 + $0x688] sm:$0xf]  ;;  %v4920_v4 = vor.u32 %v6837_v59, %v4917_v60  ;;  %v6829_v21 = vld [vmem:[%s10892_s2 + $0x26c] sm:$0xf]  ;;  %v4760_v26 = vor.u32 %v6797_v19, %v4757_v20  ;;  %v4613_v31 = vld [vmem:[%s10892_s2 + $0x58] sm:$0xf0] }
  0x9c   :  { %1666 = vmatpush.bf16.msra.mxu0 %v4852_v7  ;;  %v4773_v7 = vld [vmem:[%s10892_s2 + $0x198] sm:$0xf0]  ;;  %v4888_v30 = vor.u32 %v6829_v21, %v4885_v22  ;;  %v6757_v44 = vld [vmem:[%s10892_s2 + $0x2c] sm:$0xf]  ;;  %v5347_v52 = vld [vmem:[%s10892_s2 + $0x608] sm:$0xf] }
  0x9d   :  { %1680 = vmatpush.bf16.msra.mxu1 %v4980_v10  ;;  %v5412_v10 = vor.u32 %v6963_v2, %v5411_v1  ;;  %v4776_v13 = vor.u32 %v6801_v6, %v4773_v7  ;;  %v4597_v46 = vld [vmem:[%s10892_s2 + $0x38] sm:$0xf0]  ;;  %v6789_v47 = vld [vmem:[%s10892_s2 + $0x12c] sm:$0xf]  ;;  %v6947_v53 = vld [vmem:[%s10892_s2 + $0x614] sm:$0xf0] }
  0x9e   :  { %1694 = vmatpush.bf16.msra.mxu2 %v5108_v12  ;;  %v4648_v12 = vor.u32 %v6769_v3, %v4645_v5  ;;  %v6753_v56 = vld [vmem:[%s10892_s2 + $0xc] sm:$0xf]  ;;  %v4581_v58 = vld [vmem:[%s10892_s2 + $0x18] sm:$0xf0] }
  0x9f   :  { %1708 = vmatpush.bf16.msra.mxu3 %v5236_v16  ;;  %v6765_v16 = vld [vmem:[%s10892_s2 + $0x6c] sm:$0xf]  ;;  %v5077_v2 = vld [vmem:[%s10892_s2 + $0x3f8] sm:$0xf0]  ;;  %v4584_v8 = vor.u32 %v6753_v56, %v4581_v58 }
  0xa0   :  { %1667 = vmatpush.bf16.msra.mxu0 %v4836_v24  ;;  %v5396_v24 = vor.u32 %v6959_v15, %v5395_v14  ;;  %v4632_v25 = vor.u32 %v6765_v16, %v4629_v18  ;;  %v6785_v59 = vld [vmem:[%s10892_s2 + $0x10c] sm:$0xf]  ;;  %v5205_v5 = vld [vmem:[%s10892_s2 + $0x4f8] sm:$0xf0] }
  0xa1   :  { %1681 = vmatpush.bf16.msra.mxu1 %v4964_v28  ;;  %v6955_v28 = vld [vmem:[%s10892_s2 + $0x654] sm:$0xf0]  ;;  %v6877_v1 = vld [vmem:[%s10892_s2 + $0x3ec] sm:$0xf]  ;;  %v5333_v7 = vld [vmem:[%s10892_s2 + $0x5f8] sm:$0xf0] }
  0xa2   :  { %1695 = vmatpush.bf16.msra.mxu2 %v5092_v29  ;;  %v6761_v29 = vld [vmem:[%s10892_s2 + $0x4c] sm:$0xf]  ;;  %v5380_v36 = vor.u32 %v6955_v28, %v5379_v27  ;;  %v5080_v14 = vor.u32 %v6877_v1, %v5077_v2  ;;  %v5061_v18 = vld [vmem:[%s10892_s2 + $0x3d8] sm:$0xf0] }
  0xa3   :  { %1709 = vmatpush.bf16.msra.mxu3 %v5220_v32  ;;  %1668 = vmatmul.bf16.vlgmr.msra.gmra.mxu0 %v7686_v0  ;;  %v6793_v32 = vld [vmem:[%s10892_s2 + $0x14c] sm:$0xf]  ;;  %v4616_v38 = vor.u32 %v6761_v29, %v4613_v31  ;;  %v5189_v21 = vld [vmem:[%s10892_s2 + $0x4d8] sm:$0xf0] }
  0xa4   :  { %1716 = vmatpush.bf16.msrb.mxu0 %v5460_v33  ;;  %1682 = vmatmul.bf16.vlgmr.msra.gmra.mxu1 %v7741_v23  ;;  %v4741_v33 = vld [vmem:[%s10892_s2 + $0x158] sm:$0xf0]  ;;  %v6909_v3 = vld [vmem:[%s10892_s2 + $0x4ec] sm:$0xf] }
  0xa5   :  { %1730 = vmatpush.bf16.msrb.mxu1 %v4696_v34  ;;  %1696 = vmatmul.bf16.vlgmr.msra.gmra.mxu2 %v7891_v37  ;;  %v6825_v34 = vld [vmem:[%s10892_s2 + $0x24c] sm:$0xf]  ;;  %v4744_v39 = vor.u32 %v6793_v32, %v4741_v33  ;;  %v5208_v15 = vor.u32 %v6909_v3, %v5205_v5  ;;  %v5045_v31 = vld [vmem:[%s10892_s2 + $0x3b8] sm:$0xf0] }
  0xa6   :  { %1744 = vmatpush.bf16.msrb.mxu2 %v4824_v35  ;;  %1710 = vmatmul.bf16.vlgmr.msra.gmra.mxu3 %v7904_v42  ;;  %v4869_v35 = vld [vmem:[%s10892_s2 + $0x258] sm:$0xf0]  ;;  %v6941_v6 = vld [vmem:[%s10892_s2 + $0x5ec] sm:$0xf] }
  0xa7   :  { %1758 = vmatpush.bf16.msrb.mxu3 %v4952_v40  ;;  %v5363_v40 = vld [vmem:[%s10892_s2 + $0x628] sm:$0xf]  ;;  %v4872_v45 = vor.u32 %v6825_v34, %v4869_v35  ;;  %v5336_v16 = vor.u32 %v6941_v6, %v5333_v7  ;;  %v6905_v19 = vld [vmem:[%s10892_s2 + $0x4cc] sm:$0xf]  ;;  %v5173_v34 = vld [vmem:[%s10892_s2 + $0x4b8] sm:$0xf0] }
  0xa8   :  { %1717 = vmatpush.bf16.msrb.mxu0 %v5444_v48  ;;  %v4725_v48 = vld [vmem:[%s10892_s2 + $0x138] sm:$0xf0]  ;;  %v5364_v51 = vor.u32 %v6951_v43, %v5363_v40  ;;  %v6937_v22 = vld [vmem:[%s10892_s2 + $0x5cc] sm:$0xf]  ;;  %v5192_v28 = vor.u32 %v6905_v19, %v5189_v21 }
  0xa9   :  { %1731 = vmatpush.bf16.msrb.mxu1 %v4680_v49  ;;  %v6821_v49 = vld [vmem:[%s10892_s2 + $0x22c] sm:$0xf]  ;;  %v4728_v55 = vor.u32 %v6789_v47, %v4725_v48  ;;  %v5285_v48 = vld [vmem:[%s10892_s2 + $0x598] sm:$0xf0] }
  0xaa   :  { %1745 = vmatpush.bf16.msrb.mxu2 %v4808_v50  ;;  %v4853_v50 = vld [vmem:[%s10892_s2 + $0x238] sm:$0xf0]  ;;  %v6901_v32 = vld [vmem:[%s10892_s2 + $0x4ac] sm:$0xf] }
  0xab   :  { %1759 = vmatpush.bf16.msrb.mxu3 %v4936_v54  ;;  %v4600_v54 = vor.u32 %v6757_v44, %v4597_v46  ;;  %v4856_v60 = vor.u32 %v6821_v49, %v4853_v50  ;;  %v6933_v35 = vld [vmem:[%s10892_s2 + $0x5ac] sm:$0xf]  ;;  %v5176_v43 = vor.u32 %v6901_v32, %v5173_v34  ;;  %v5413_v50 = vld [vmem:[%s10892_s2 + $0x698] sm:$0xf0]  ;;  %v8774_v2 = vpop.f32.mrf.mxu1 }
  0xac   :  { %1718 = vmatpush.bf16.msrb.mxu0 %v5428_v61  ;;  %v4709_v61 = vld [vmem:[%s10892_s2 + $0x118] sm:$0xf0]  ;;  %v6929_v47 = vld [vmem:[%s10892_s2 + $0x58c] sm:$0xf] }
  0xad   :  { %1732 = vmatpush.bf16.msrb.mxu1 %v4664_v62  ;;  %v6817_v62 = vld [vmem:[%s10892_s2 + $0x20c] sm:$0xf]  ;;  %v4712_v9 = vor.u32 %v6785_v59, %v4709_v61  ;;  %v5013_v56 = vld [vmem:[%s10892_s2 + $0x378] sm:$0xf0] }
  0xae   :  { %1746 = vmatpush.bf16.msrb.mxu2 %v4792_v63  ;;  %v4837_v63 = vld [vmem:[%s10892_s2 + $0x218] sm:$0xf0]  ;;  %v6961_v49 = vld [vmem:[%s10892_s2 + $0x68c] sm:$0xf] }
  0xaf   :  { %1760 = vmatpush.bf16.msrb.mxu3 %v4920_v4  ;;  %v5348_v4 = vor.u32 %v6947_v53, %v5347_v52  ;;  %v6893_v58 = vld [vmem:[%s10892_s2 + $0x46c] sm:$0xf]  ;;  %v5416_v59 = vor.u32 %v6961_v49, %v5413_v50  ;;  %v5397_v1 = vld [vmem:[%s10892_s2 + $0x678] sm:$0xf0] }
  0xb0   :  { %1719 = vmatpush.bf16.msrb.mxu0 %v5412_v10  ;;  %v6973_v10 = vld [vmem:[%s10892_s2 + $0x6ec] sm:$0xf]  ;;  %v4997_v7 = vld [vmem:[%s10892_s2 + $0x358] sm:$0xf0] }
  0xb1   :  { %1733 = vmatpush.bf16.msrb.mxu1 %v4648_v12  ;;  %v5461_v12 = vld [vmem:[%s10892_s2 + $0x6f8] sm:$0xf0]  ;;  %v6925_v61 = vld [vmem:[%s10892_s2 + $0x56c] sm:$0xf] }
  0xb2   :  { %1747 = vmatpush.bf16.msrb.mxu2 %v4776_v13  ;;  %v4840_v13 = vor.u32 %v6817_v62, %v4837_v63  ;;  %v5464_v20 = vor.u32 %v6973_v10, %v5461_v12  ;;  %v5269_v62 = vld [vmem:[%s10892_s2 + $0x578] sm:$0xf0]  ;;  %v6957_v63 = vld [vmem:[%s10892_s2 + $0x66c] sm:$0xf] }
  0xb3   :  { %1761 = vmatpush.bf16.msrb.mxu3 %v4904_v17  ;;  %v6873_v17 = vld [vmem:[%s10892_s2 + $0x3cc] sm:$0xf]  ;;  %v5272_v5 = vor.u32 %v6925_v61, %v5269_v62  ;;  %v5400_v10 = vor.u32 %v6957_v63, %v5397_v1  ;;  %v5125_v12 = vld [vmem:[%s10892_s2 + $0x458] sm:$0xf0]  ;;  %v6989_v61 = vld [vmem:[%s10894_s4 + $0x64] sm:$0xf0] }
  0xb4   :  { %1720 = vmatpush.bf16.msrb.mxu0 %v5396_v24  ;;  %v5317_v24 = vld [vmem:[%s10892_s2 + $0x5d8] sm:$0xf0]  ;;  %v5064_v27 = vor.u32 %v6873_v17, %v5061_v18  ;;  %v6857_v6 = vld [vmem:[%s10892_s2 + $0x34c] sm:$0xf]  ;;  %v8805_v17 = vld [vmem:[%s10893_s3] sm:$0xf] }
  0xb5   :  { %1734 = vmatpush.bf16.msrb.mxu1 %v4632_v25  ;;  %v6969_v25 = vld [vmem:[%s10892_s2 + $0x6cc] sm:$0xf]  ;;  %v5320_v29 = vor.u32 %v6937_v22, %v5317_v24  ;;  %v5000_v18 = vor.u32 %v6857_v6, %v4997_v7  ;;  %v4981_v22 = vld [vmem:[%s10892_s2 + $0x338] sm:$0xf0]  ;;  %v272_v32 = vperm.slane %v8805_v17, 0 }
  0xb6   :  { %1748 = vmatpush.bf16.msrb.mxu2 %v4760_v26  ;;  %v5445_v26 = vld [vmem:[%s10892_s2 + $0x6d8] sm:$0xf0]  ;;  %v6853_v21 = vld [vmem:[%s10892_s2 + $0x32c] sm:$0xf]  ;;  %v5579_v1 = vld [vmem:[%s10894_s4 + $0xe0] sm:$0xf] }
  0xb7   :  { %1762 = vmatpush.bf16.msrb.mxu3 %v4888_v30  ;;  %v6869_v30 = vld [vmem:[%s10892_s2 + $0x3ac] sm:$0xf]  ;;  %v5448_v33 = vor.u32 %v6969_v25, %v5445_v26  ;;  %v5507_v7 = vld [vmem:[%s10894_s4 + $0x50] sm:$0xf] }
  0xb8   :  { %1721 = vmatpush.bf16.msrb.mxu0 %v5380_v36  ;;  %v5301_v36 = vld [vmem:[%s10892_s2 + $0x5b8] sm:$0xf0]  ;;  %v5048_v40 = vor.u32 %v6869_v30, %v5045_v31  ;;  %v6885_v24 = vld [vmem:[%s10892_s2 + $0x42c] sm:$0xf] }
  0xb9   :  { %1735 = vmatpush.bf16.msrb.mxu1 %v4616_v38  ;;  %v6965_v38 = vld [vmem:[%s10892_s2 + $0x6ac] sm:$0xf]  ;;  %v5304_v44 = vor.u32 %v6933_v35, %v5301_v36  ;;  %v5365_v31 = vld [vmem:[%s10892_s2 + $0x638] sm:$0xf0] }
  0xba   :  { %1749 = vmatpush.bf16.msrb.mxu2 %v4744_v39  ;;  %v5429_v39 = vld [vmem:[%s10892_s2 + $0x6b8] sm:$0xf0]  ;;  %v6949_v30 = vld [vmem:[%s10892_s2 + $0x62c] sm:$0xf] }
  0xbb   :  { %1763 = vmatpush.bf16.msrb.mxu3 %v4872_v45  ;;  %v5029_v45 = vld [vmem:[%s10892_s2 + $0x398] sm:$0xf0]  ;;  %v5432_v46 = vor.u32 %v6965_v38, %v5429_v39  ;;  %v6849_v34 = vld [vmem:[%s10892_s2 + $0x30c] sm:$0xf] }
  0xbc   :  { %1722 = vmatpush.bf16.msrb.mxu0 %v5364_v51  ;;  %v8748_v51 = vpop.f32.mrf.mxu0  ;;  %v4965_v38 = vld [vmem:[%s10892_s2 + $0x318] sm:$0xf0]  ;;  %v6881_v39 = vld [vmem:[%s10892_s2 + $0x40c] sm:$0xf] }
  0xbd   :  { %1736 = vmatpush.bf16.msrb.mxu1 %v4600_v54  ;;  %v5288_v54 = vor.u32 %v6929_v47, %v5285_v48  ;;  %v5523_v47 = vld [vmem:[%s10894_s4 + $0x70] sm:$0xf]  ;;  %v6991_v48 = vld [vmem:[%s10894_s4 + $0x74] sm:$0xf0]  ;;  %v1446_v49 = vadd.f32 %v8748_v51, %v272_v32  ;;  %v5515_v51 = vld [vmem:[%s10894_s4 + $0x60] sm:$0xf] }
  0xbe   :  { %1750 = vmatpush.bf16.msrb.mxu2 %v4728_v55  ;;  %v6861_v55 = vld [vmem:[%s10892_s2 + $0x36c] sm:$0xf]  ;;  %v5516_v6 = vor.u32 %v6989_v61, %v5515_v51  ;;  %v6990_v51 = vld [vmem:[%s10894_s4 + $0x74] sm:$0xf] }
  0xbf   :  { %1764 = vmatpush.bf16.msrb.mxu3 %v4856_v60  ;;  %v5141_v60 = vld [vmem:[%s10892_s2 + $0x478] sm:$0xf0]  ;;  %v5016_v3 = vor.u32 %v6861_v55, %v5013_v56 }
  0xc0   :  { %1723 = vmatpush.bf16.msrb.mxu0 %v5348_v4  ;;  %v5144_v4 = vor.u32 %v6893_v58, %v5141_v60  ;;  %v5524_v60 = vor.u32 %v6991_v48, %v5523_v47  ;;  %v273_v48 = vperm.slane %v8805_v17, 1 }
  0xc1   :  { %1737 = vmatpush.bf16.msrb.mxu1 %v4584_v8  ;;  %v6889_v8 = vld [vmem:[%s10892_s2 + $0x44c] sm:$0xf] }
  0xc2   :  { %1751 = vmatpush.bf16.msrb.mxu2 %v4712_v9  ;;  %v8785_v9 = vpop.f32.mrf.mxu2  ;;  %v5128_v19 = vor.u32 %v6889_v8, %v5125_v12  ;;  %v6987_v8 = vld [vmem:[%s10894_s4 + $0x54] sm:$0xf0] }
  0xc3   :  { %1765 = vmatpush.bf16.msrb.mxu3 %v4840_v13  ;;  %1724 = vmatmul.bf16.vlgmr.msrb.gmra.mxu0 %v7902_v41  ;;  %v6921_v13 = vld [vmem:[%s10892_s2 + $0x54c] sm:$0xf] }
  0xc4   :  { %1772 = vmatpush.bf16.msra.mxu0 %v5080_v14  ;;  %1738 = vmatmul.bf16.vlgmr.msrb.gmra.mxu1 %v7672_v57  ;;  %v5157_v57 = vld [vmem:[%s10892_s2 + $0x498] sm:$0xf0]  ;;  %v1447_v25 = vpop.f32.mrf.mxu0 }
  0xc5   :  { %1786 = vmatpush.bf16.msra.mxu1 %v5208_v15  ;;  %1752 = vmatmul.bf16.vlgmr.msrb.gmra.mxu2 %v7714_v11  ;;  %v6865_v11 = vld [vmem:[%s10892_s2 + $0x38c] sm:$0xf]  ;;  %v5253_v14 = vld [vmem:[%s10892_s2 + $0x558] sm:$0xf0]  ;;  %v1448_v55 = vadd.f32 %v1447_v25, %v272_v32  ;;  %v5491_v25 = vld [vmem:[%s10894_s4 + $0x30] sm:$0xf] }
  0xc6   :  { %1800 = vmatpush.bf16.msra.mxu2 %v5336_v16  ;;  %1766 = vmatmul.bf16.vlgmr.msrb.gmra.mxu3 %v7686_v0  ;;  %v6897_v0 = vld [vmem:[%s10892_s2 + $0x48c] sm:$0xf]  ;;  %v5032_v52 = vor.u32 %v6865_v11, %v5029_v45  ;;  %v5381_v16 = vld [vmem:[%s10892_s2 + $0x658] sm:$0xf0] }
  0xc7   :  { %1814 = vmatpush.bf16.msra.mxu3 %v5464_v20  ;;  %v5160_v53 = vor.u32 %v6897_v0, %v5157_v57  ;;  %v6953_v15 = vld [vmem:[%s10892_s2 + $0x64c] sm:$0xf]  ;;  %v5256_v20 = vor.u32 %v6921_v13, %v5253_v14  ;;  %v5221_v45 = vld [vmem:[%s10892_s2 + $0x518] sm:$0xf0] }
  0xc8   :  { %1773 = vmatpush.bf16.msra.mxu0 %v5064_v27  ;;  %v5384_v26 = vor.u32 %v6953_v15, %v5381_v16  ;;  %v5109_v27 = vld [vmem:[%s10892_s2 + $0x438] sm:$0xf0]  ;;  %v6913_v11 = vld [vmem:[%s10892_s2 + $0x50c] sm:$0xf] }
  0xc9   :  { %1787 = vmatpush.bf16.msra.mxu1 %v5192_v28  ;;  %v6917_v28 = vld [vmem:[%s10892_s2 + $0x52c] sm:$0xf]  ;;  %v5112_v35 = vor.u32 %v6885_v24, %v5109_v27  ;;  %v5349_v57 = vld [vmem:[%s10892_s2 + $0x618] sm:$0xf0]  ;;  %v5224_v58 = vor.u32 %v6913_v11, %v5221_v45 }
  0xca   :  { %1801 = vmatpush.bf16.msra.mxu2 %v5320_v29  ;;  %v5237_v29 = vld [vmem:[%s10892_s2 + $0x538] sm:$0xf0]  ;;  %v6945_v0 = vld [vmem:[%s10892_s2 + $0x60c] sm:$0xf]  ;;  %v1475_v50 = vpop.f32.mrf.mxu2 }
  0xcb   :  { %1815 = vmatpush.bf16.msra.mxu3 %v5448_v33  ;;  %v4984_v33 = vor.u32 %v6853_v21, %v4981_v22  ;;  %v5240_v36 = vor.u32 %v6917_v28, %v5237_v29  ;;  %v5555_v28 = vld [vmem:[%s10894_s4 + $0xb0] sm:$0xf]  ;;  %v6999_v29 = vld [vmem:[%s10894_s4 + $0xb4] sm:$0xf0] }
  0xcc   :  { %1774 = vmatpush.bf16.msra.mxu0 %v5048_v40  ;;  %v5093_v40 = vld [vmem:[%s10892_s2 + $0x418] sm:$0xf0]  ;;  %v1501_v63 = vpop.f32.mrf.mxu0  ;;  %s7359_s2 = smov 28  }
  0xcd   :  { %1788 = vmatpush.bf16.msra.mxu1 %v5176_v43  ;;  %v1461_v43 = vpop.f32.mrf.mxu1  ;;  %v5096_v56 = vor.u32 %v6881_v39, %v5093_v40  ;;  %v5547_v40 = vld [vmem:[%s10894_s4 + $0xa0] sm:$0xf] }
  0xce   :  { %1802 = vmatpush.bf16.msra.mxu2 %v5304_v44  ;;  %v5368_v44 = vor.u32 %v6949_v30, %v5365_v31 }
  0xcf   :  { %1816 = vmatpush.bf16.msra.mxu3 %v5432_v46  ;;  %v1487_v46 = vpop.f32.mrf.mxu3 }
  0xd0   :  { %1775 = vmatpush.bf16.msra.mxu0 %v5032_v52  ;;  %v4968_v52 = vor.u32 %v6849_v34, %v4965_v38  ;;  %v5556_v38 = vor.u32 %v6999_v29, %v5555_v28  ;;  %v5573_v28 = vld [vmem:[%s10894_s4 + $0xd8] sm:$0xf0] }
  0xd1   :  { %1789 = vmatpush.bf16.msra.mxu1 %v5160_v53  ;;  %v5587_v53 = vld [vmem:[%s10894_s4 + $0xf0] sm:$0xf] }
  0xd2   :  { %1803 = vmatpush.bf16.msra.mxu2 %v5288_v54  ;;  %v7007_v54 = vld [vmem:[%s10894_s4 + $0xf4] sm:$0xf0]  ;;  %v1529_v16 = vpop.f32.mrf.mxu2 }
  0xd3   :  { %1817 = vmatpush.bf16.msra.mxu3 %v5416_v59  ;;  %v5352_v59 = vor.u32 %v6945_v0, %v5349_v57  ;;  %v5588_v62 = vor.u32 %v7007_v54, %v5587_v53  ;;  %v6979_v57 = vld [vmem:[%s10894_s4 + $0x14] sm:$0xf0] }
  0xd4   :  { %1776 = vmatpush.bf16.msra.mxu0 %v5016_v3  ;;  %v7005_v3 = vld [vmem:[%s10894_s4 + $0xe4] sm:$0xf0]  ;;  %v1503_v22 = vpop.f32.mrf.mxu0 }
  0xd5   :  { %1790 = vmatpush.bf16.msra.mxu1 %v5144_v4  ;;  %v1460_v4 = vadd.f32 %v8774_v2, %v1446_v49  ;;  %v1515_v12 = vpop.f32.mrf.mxu1  ;;  %v5571_v2 = vld [vmem:[%s10894_s4 + $0xd0] sm:$0xf] }
  0xd6   :  { %1804 = vmatpush.bf16.msra.mxu2 %v5272_v5  ;;  %v1462_v5 = vadd.f32 %v1461_v43, %v1448_v55  ;;  %v6997_v43 = vld [vmem:[%s10894_s4 + $0xa4] sm:$0xf0]  ;;  %v5539_v49 = vld [vmem:[%s10894_s4 + $0x90] sm:$0xf] }
  0xd7   :  { %1818 = vmatpush.bf16.msra.mxu3 %v5400_v10  ;;  %v5580_v10 = vor.u32 %v7005_v3, %v5579_v1  ;;  %v1474_v13 = vadd.f32 %v8785_v9, %v1460_v4  ;;  %v1489_v15 = vpop.f32.mrf.mxu3  ;;  %v5563_v9 = vld [vmem:[%s10894_s4 + $0xc0] sm:$0xf]  ;;  %v5548_v47 = vor.u32 %v6997_v43, %v5547_v40  ;;  %v6993_v3 = vld [vmem:[%s10894_s4 + $0x84] sm:$0xf0]  ;;  %v5651_v43 = vld [vmem:[%s10894_s4 + $0x170] sm:$0xf] }
  0xd8   :  { %1777 = vmatpush.bf16.msra.mxu0 %v5000_v18  ;;  %v1476_v14 = vadd.f32 %v1475_v50, %v1462_v5  ;;  %v5508_v18 = vor.u32 %v6987_v8, %v5507_v7  ;;  %v6995_v50 = vld [vmem:[%s10894_s4 + $0x94] sm:$0xf0]  ;;  %v5531_v1 = vld [vmem:[%s10894_s4 + $0x80] sm:$0xf]  ;;  %v7006_v5 = vld [vmem:[%s10894_s4 + $0xf4] sm:$0xf] }
  0xd9   :  { %1791 = vmatpush.bf16.msra.mxu1 %v5128_v19  ;;  %v5540_v61 = vor.u32 %v6995_v50, %v5539_v49  ;;  %v6998_v49 = vld [vmem:[%s10894_s4 + $0xb4] sm:$0xf]  ;;  %v5557_v50 = vld [vmem:[%s10894_s4 + $0xb8] sm:$0xf0] }
  0xda   :  { %1805 = vmatpush.bf16.msra.mxu2 %v5256_v20  ;;  %v1488_v20 = vadd.f32 %v1487_v46, %v1474_v13  ;;  %v1490_v21 = vadd.f32 %v1489_v15, %v1476_v14  ;;  %v1531_v39 = vpop.f32.mrf.mxu2  ;;  %v5475_v46 = vld [vmem:[%s10894_s4 + $0x10] sm:$0xf]  ;;  %v5517_v13 = vld [vmem:[%s10894_s4 + $0x68] sm:$0xf0] }
  0xdb   :  { %1819 = vmatpush.bf16.msra.mxu3 %v5384_v26  ;;  %v6983_v26 = vld [vmem:[%s10894_s4 + $0x34] sm:$0xf0]  ;;  %v5476_v55 = vor.u32 %v6979_v57, %v5475_v46  ;;  %v6982_v46 = vld [vmem:[%s10894_s4 + $0x34] sm:$0xf]  ;;  %v5493_v57 = vld [vmem:[%s10894_s4 + $0x38] sm:$0xf0] }
  0xdc   :  { %1778 = vmatpush.bf16.msra.mxu0 %v4984_v33  ;;  %v1502_v30 = vadd.f32 %v1501_v63, %v1488_v20  ;;  %v1504_v31 = vadd.f32 %v1503_v22, %v1490_v21  ;;  %v5492_v34 = vor.u32 %v6983_v26, %v5491_v25  ;;  %v5525_v63 = vld [vmem:[%s10894_s4 + $0x78] sm:$0xf0]  ;;  %v6986_v22 = vld [vmem:[%s10894_s4 + $0x54] sm:$0xf] }
  0xdd   :  { %1792 = vmatpush.bf16.msra.mxu1 %v5112_v35  ;;  %v1517_v33 = vpop.f32.mrf.mxu1  ;;  %v5483_v35 = vld [vmem:[%s10894_s4 + $0x20] sm:$0xf] }
  0xde   :  { %1806 = vmatpush.bf16.msra.mxu2 %v5240_v36  ;;  %v6981_v36 = vld [vmem:[%s10894_s4 + $0x24] sm:$0xf0]  ;;  %v1518_v11 = vadd.f32 %v1517_v33, %v1504_v31  ;;  %v5501_v33 = vld [vmem:[%s10894_s4 + $0x48] sm:$0xf0] }
  0xdf   :  { %1820 = vmatpush.bf16.msra.mxu3 %v5368_v44  ;;  %v1543_v32 = vpop.f32.mrf.mxu3  ;;  %v1516_v44 = vadd.f32 %v1515_v12, %v1502_v30  ;;  %v5484_v45 = vor.u32 %v6981_v36, %v5483_v35  ;;  %v5532_v12 = vor.u32 %v6993_v3, %v5531_v1  ;;  %v7000_v35 = vld [vmem:[%s10894_s4 + $0xc4] sm:$0xf]  ;;  %v5565_v36 = vld [vmem:[%s10894_s4 + $0xc8] sm:$0xf0] }
  0xe0   :  { %1779 = vmatpush.bf16.msra.mxu0 %v4968_v52  ;;  %v1532_v0 = vadd.f32 %v1531_v39, %v1518_v11  ;;  %v1557_v53 = vpop.f32.mrf.mxu0 }
  0xe1   :  { %1793 = vmatpush.bf16.msra.mxu1 %v5096_v56  ;;  %v1530_v52 = vadd.f32 %v1529_v16, %v1516_v44  ;;  %v5467_v56 = vld [vmem:[%s10894_s4] sm:$0xf]  ;;  %v7023_v44 = vld [vmem:[%s10894_s4 + $0x174] sm:$0xf0] }
  0xe2   :  { %1807 = vmatpush.bf16.msra.mxu2 %v5224_v58  ;;  %v1832_v58 = vmul.f32 0.2, %v1532_v0 }
  0xe3   :  { %1821 = vmatpush.bf16.msra.mxu3 %v5352_v59  ;;  %1780 = vmatmul.bf16.vlgmr.msra.gmra.mxu0 %v7741_v23  ;;  %v7003_v23 = vld [vmem:[%s10894_s4 + $0xd4] sm:$0xf0]  ;;  %v1828_v4 = vmul.f32 0.2, %v1530_v52 }
  0xe4   :  { %2238 = vmatpush.bf16.msrb.mxu0 %v5524_v60  ;;  %1794 = vmatmul.bf16.vlgmr.msra.gmra.mxu1 %v7891_v37  ;;  %v5499_v37 = vld [vmem:[%s10894_s4 + $0x40] sm:$0xf]  ;;  %v5572_v19 = vor.u32 %v7003_v23, %v5571_v2  ;;  %v6977_v60 = vld [vmem:[%s10894_s4 + $0x4] sm:$0xf0]  ;;  %v1840_v8 = vmax.f32 %v1532_v0, %v1832_v58  ;;  %v6988_v23 = vld [vmem:[%s10894_s4 + $0x64] sm:$0xf] }
  0xe5   :  { %2252 = vmatpush.bf16.msrb.mxu1 %v5588_v62  ;;  %1808 = vmatmul.bf16.vlgmr.msra.gmra.mxu2 %v7904_v42  ;;  %v6985_v42 = vld [vmem:[%s10894_s4 + $0x44] sm:$0xf0]  ;;  %v1571_v54 = vpop.f32.mrf.mxu1  ;;  %v1544_v62 = vadd.f32 %v1543_v32, %v273_v48  ;;  %v5468_v7 = vor.u32 %v6977_v60, %v5467_v56  ;;  %v1836_v15 = vmax.f32 %v1530_v52, %v1828_v4  ;;  %v6984_v32 = vld [vmem:[%s10894_s4 + $0x44] sm:$0xf]  ;;  %v5643_v56 = vld [vmem:[%s10894_s4 + $0x160] sm:$0xf] }
  0xe6   :  { %1822 = vmatmul.bf16.vlgmr.msra.gmra.mxu3 %v7902_v41  ;;  %v7001_v41 = vld [vmem:[%s10894_s4 + $0xc4] sm:$0xf0]  ;;  %v5500_v24 = vor.u32 %v6985_v42, %v5499_v37  ;;  %v5581_v37 = vld [vmem:[%s10894_s4 + $0xe8] sm:$0xf0]  ;;  %v5504_v40 = vor.u32 %v6984_v32, %v5501_v33  ;;  %v5611_v32 = vld [vmem:[%s10894_s4 + $0x120] sm:$0xf] }
  0xe7   :  { %v5564_v27 = vor.u32 %v7001_v41, %v5563_v9  ;;  %v1545_v59 = vpop.f32.mrf.mxu3  ;;  %v1558_v2 = vadd.f32 %v1557_v53, %v1544_v62  ;;  %v8984_v42 = vpack.c.bf16 %v1840_v8, %v1836_v15  ;;  %v5520_v9 = vor.u32 %v6988_v23, %v5517_v13  ;;  %v7021_v58 = vld [vmem:[%s10894_s4 + $0x164] sm:$0xf0]  ;;  %v5485_v60 = vld [vmem:[%s10894_s4 + $0x28] sm:$0xf0]  ;;  %v6996_v62 = vld [vmem:[%s10894_s4 + $0xa4] sm:$0xf] }
  0xe8   :  { %2239 = vmatpush.bf16.msrb.mxu0 %v5516_v6  ;;  %v5589_v6 = vld [vmem:[%s10894_s4 + $0xf8] sm:$0xf0]  ;;  %v1585_v16 = vpop.f32.mrf.mxu2  ;;  %v1546_v41 = vadd.f32 %v1545_v59, %v273_v48  ;;  %v5652_v48 = vor.u32 %v7023_v44, %v5651_v43  ;;  %v6980_v59 = vld [vmem:[%s10894_s4 + $0x24] sm:$0xf]  ;;  %v5595_v44 = vld [vmem:[%s10894_s4 + $0x100] sm:$0xf] }
  0xe9   :  { %2253 = vmatpush.bf16.msrb.mxu1 %v5580_v10  ;;  %v5528_v10 = vor.u32 %v6990_v51, %v5525_v63  ;;  %v5592_v14 = vor.u32 %v7006_v5, %v5589_v6  ;;  %v1572_v20 = vadd.f32 %v1571_v54, %v1558_v2  ;;  %v5560_v51 = vor.u32 %v6998_v49, %v5557_v50  ;;  %v5549_v63 = vld [vmem:[%s10894_s4 + $0xa8] sm:$0xf0]  ;;  %v5635_v6 = vld [vmem:[%s10894_s4 + $0x150] sm:$0xf]  ;;  %v5477_v2 = vld [vmem:[%s10894_s4 + $0x18] sm:$0xf0] }
  0xea   :  { %2266 = vmatpush.bf16.msrb.mxu2 %v5652_v48  ;;  %v5488_v5 = vor.u32 %v6980_v59, %v5485_v60  ;;  %v5552_v23 = vor.u32 %v6996_v62, %v5549_v63  ;;  %v5541_v15 = vld [vmem:[%s10894_s4 + $0x98] sm:$0xf0]  ;;  %v5645_v48 = vld [vmem:[%s10894_s4 + $0x168] sm:$0xf0]  ;;  %v7016_v62 = vld [vmem:[%s10894_s4 + $0x144] sm:$0xf] }
  0xeb   :  { %v1586_v30 = vadd.f32 %v1585_v16, %v1572_v20  ;;  %v6976_v20 = vld [vmem:[%s10894_s4 + $0x4] sm:$0xf] }
  0xec   :  { %2240 = vmatpush.bf16.msrb.mxu0 %v5508_v18  ;;  %v7004_v18 = vld [vmem:[%s10894_s4 + $0xe4] sm:$0xf] }
  0xed   :  { %2254 = vmatpush.bf16.msrb.mxu1 %v5572_v19  ;;  %v1559_v19 = vpop.f32.mrf.mxu0  ;;  %v1573_v21 = vpop.f32.mrf.mxu1  ;;  %v5584_v25 = vor.u32 %v7004_v18, %v5581_v37 }
  0xee   :  { %v1560_v31 = vadd.f32 %v1559_v19, %v1546_v41  ;;  %v5627_v19 = vld [vmem:[%s10894_s4 + $0x140] sm:$0xf] }
  0xef   :  { %v1599_v26 = vpop.f32.mrf.mxu3 }
  0xf0   :  { %2241 = vmatpush.bf16.msrb.mxu0 %v5500_v24  ;;  %v5509_v24 = vld [vmem:[%s10894_s4 + $0x58] sm:$0xf0]  ;;  %v1600_v11 = vadd.f32 %v1599_v26, %v1586_v30  ;;  %v5533_v26 = vld [vmem:[%s10894_s4 + $0x88] sm:$0xf0]  ;;  %v5619_v30 = vld [vmem:[%s10894_s4 + $0x130] sm:$0xf] }
  0xf1   :  { %2255 = vmatpush.bf16.msrb.mxu1 %v5564_v27  ;;  %v7002_v27 = vld [vmem:[%s10894_s4 + $0xd4] sm:$0xf]  ;;  %v5512_v29 = vor.u32 %v6986_v22, %v5509_v24 }
  0xf4   :  { %2242 = vmatpush.bf16.msrb.mxu0 %v5492_v34  ;;  %v5576_v34 = vor.u32 %v7002_v27, %v5573_v28 }
  0xf5   :  { %2256 = vmatpush.bf16.msrb.mxu1 %v5556_v38  ;;  %v1587_v38 = vpop.f32.mrf.mxu2 }
  0xf7   :  { %v1601_v54 = vpop.f32.mrf.mxu3 }
  0xf8   :  { %2243 = vmatpush.bf16.msrb.mxu0 %v5484_v45  ;;  %v1574_v45 = vadd.f32 %v1573_v21, %v1560_v31  ;;  %v5469_v21 = vld [vmem:[%s10894_s4 + $0x8] sm:$0xf0]  ;;  %v7015_v31 = vld [vmem:[%s10894_s4 + $0x134] sm:$0xf0] }
  0xf9   :  { %2257 = vmatpush.bf16.msrb.mxu1 %v5548_v47  ;;  %v5568_v47 = vor.u32 %v7000_v35, %v5565_v36  ;;  %v5620_v35 = vor.u32 %v7015_v31, %v5619_v30  ;;  %v7013_v36 = vld [vmem:[%s10894_s4 + $0x124] sm:$0xf0] }
  0xfa   :  { %v1588_v52 = vadd.f32 %v1587_v38, %v1574_v45  ;;  %v5612_v38 = vor.u32 %v7013_v36, %v5611_v32  ;;  %v7008_v36 = vld [vmem:[%s10894_s4 + $0x104] sm:$0xf] }
  0xfc   :  { %2244 = vmatpush.bf16.msrb.mxu0 %v5476_v55  ;;  %v5496_v55 = vor.u32 %v6982_v46, %v5493_v57  ;;  %v1602_v1 = vadd.f32 %v1601_v54, %v1588_v52  ;;  %v5715_v52 = vld [vmem:[%s10894_s4 + $0x1f0] sm:$0xf]  ;;  %v7018_v54 = vld [vmem:[%s10894_s4 + $0x154] sm:$0xf] }
  0xfd   :  { %2258 = vmatpush.bf16.msrb.mxu1 %v5540_v61  ;;  %v5644_v61 = vor.u32 %v7021_v58, %v5643_v56  ;;  %v5637_v56 = vld [vmem:[%s10894_s4 + $0x158] sm:$0xf0]  ;;  %v274_v58 = vperm.slane %v8805_v17, 2 }
  0xfe   :  { %v5640_v59 = vor.u32 %v7018_v54, %v5637_v56  ;;  %v5717_v56 = vld [vmem:[%s10894_s4 + $0x1f8] sm:$0xf0] }
  0xff   :  { %2267 = vmatpush.bf16.msrb.mxu2 %v5644_v61  ;;  %v7037_v61 = vld [vmem:[%s10894_s4 + $0x1e4] sm:$0xf0] }
 0x100   :  { %2245 = vmatpush.bf16.msrb.mxu0 %v5468_v7  ;;  %v1613_v39 = vpop.f32.mrf.mxu0  ;;  %v7019_v7 = vld [vmem:[%s10894_s4 + $0x154] sm:$0xf0] }
 0x101   :  { %2259 = vmatpush.bf16.msrb.mxu1 %v5532_v12  ;;  %v1627_v0 = vpop.f32.mrf.mxu1  ;;  %v1614_v53 = vadd.f32 %v1613_v39, %v1600_v11  ;;  %v6978_v12 = vld [vmem:[%s10894_s4 + $0x14] sm:$0xf]  ;;  %v5636_v13 = vor.u32 %v7019_v7, %v5635_v6  ;;  %v5603_v39 = vld [vmem:[%s10894_s4 + $0x110] sm:$0xf]  ;;  %v7009_v11 = vld [vmem:[%s10894_s4 + $0x104] sm:$0xf0] }
 0x102   :  { %v5480_v37 = vor.u32 %v6978_v12, %v5477_v2  ;;  %v5596_v45 = vor.u32 %v7009_v11, %v5595_v44  ;;  %v5699_v7 = vld [vmem:[%s10894_s4 + $0x1d0] sm:$0xf]  ;;  %v5621_v2 = vld [vmem:[%s10894_s4 + $0x138] sm:$0xf0] }
 0x103   :  { %2246 = vmatmul.bf16.vlgmr.msrb.gmra.mxu0 %v8984_v42  ;;  %v1628_v3 = vadd.f32 %v1627_v0, %v1614_v53  ;;  %2268 = vmatpush.bf16.msrb.mxu2 %v5636_v13  ;;  %v7022_v0 = vld [vmem:[%s10894_s4 + $0x174] sm:$0xf]  ;;  %v7039_v53 = vld [vmem:[%s10894_s4 + $0x1f4] sm:$0xf0]  ;;  %v7033_v13 = vld [vmem:[%s10894_s4 + $0x1c4] sm:$0xf0] }
 0x104   :  { %2294 = vmatpush.bf16.msra.mxu0 %v5528_v10 }
 0x105   :  { %2308 = vmatpush.bf16.msra.mxu1 %v5592_v14  ;;  %v6994_v14 = vld [vmem:[%s10894_s4 + $0x94] sm:$0xf]  ;;  %v1829_v16 = vmul.f32 0.2, %v1628_v3 }
 0x106   :  { %v5544_v22 = vor.u32 %v6994_v14, %v5541_v15 }
 0x107   :  { %v1837_v27 = vmax.f32 %v1628_v3, %v1829_v16  ;;  %v5629_v3 = vld [vmem:[%s10894_s4 + $0x148] sm:$0xf0]  ;;  %v7012_v16 = vld [vmem:[%s10894_s4 + $0x124] sm:$0xf] }
 0x108   :  { %2295 = vmatpush.bf16.msra.mxu0 %v5520_v9  ;;  %v1615_v4 = vpop.f32.mrf.mxu0  ;;  %v7017_v9 = vld [vmem:[%s10894_s4 + $0x144] sm:$0xf0]  ;;  %v1641_v46 = vpop.f32.mrf.mxu2 }
 0x109   :  { %2309 = vmatpush.bf16.msra.mxu1 %v5584_v25  ;;  %v1616_v8 = vadd.f32 %v1615_v4, %v1602_v1  ;;  %v1629_v10 = vpop.f32.mrf.mxu1  ;;  %v5628_v24 = vor.u32 %v7017_v9, %v5627_v19  ;;  %v6992_v25 = vld [vmem:[%s10894_s4 + $0x84] sm:$0xf]  ;;  %v1655_v49 = vpop.f32.mrf.mxu3  ;;  %v1642_v4 = vadd.f32 %v1641_v46, %v274_v58  ;;  %v7027_v46 = vld [vmem:[%s10894_s4 + $0x194] sm:$0xf0] }
 0x10b   :  { %v1630_v18 = vadd.f32 %v1629_v10, %v1616_v8  ;;  %2269 = vmatpush.bf16.msrb.mxu2 %v5628_v24  ;;  %v7035_v8 = vld [vmem:[%s10894_s4 + $0x1d4] sm:$0xf0]  ;;  %v7014_v10 = vld [vmem:[%s10894_s4 + $0x134] sm:$0xf]  ;;  %v1656_v14 = vadd.f32 %v1655_v49, %v1642_v4 }
 0x10c   :  { %2296 = vmatpush.bf16.msra.mxu0 %v5512_v29  ;;  %v5472_v29 = vor.u32 %v6976_v20, %v5469_v21  ;;  %v5700_v12 = vor.u32 %v7035_v8, %v5699_v7  ;;  %v5624_v15 = vor.u32 %v7014_v10, %v5621_v2  ;;  %v5683_v20 = vld [vmem:[%s10894_s4 + $0x1b0] sm:$0xf]  ;;  %v7031_v21 = vld [vmem:[%s10894_s4 + $0x1b4] sm:$0xf0]  ;;  %v7010_v24 = vld [vmem:[%s10894_s4 + $0x114] sm:$0xf] }
 0x10d   :  { %2310 = vmatpush.bf16.msra.mxu1 %v5576_v34  ;;  %v1833_v41 = vmul.f32 0.2, %v1630_v18  ;;  %v5536_v34 = vor.u32 %v6992_v25, %v5533_v26  ;;  %v5605_v25 = vld [vmem:[%s10894_s4 + $0x118] sm:$0xf0]  ;;  %v7034_v7 = vld [vmem:[%s10894_s4 + $0x1d4] sm:$0xf] }
 0x10e   :  { %v5608_v30 = vor.u32 %v7010_v24, %v5605_v25  ;;  %v5701_v8 = vld [vmem:[%s10894_s4 + $0x1d8] sm:$0xf0]  ;;  %v7026_v25 = vld [vmem:[%s10894_s4 + $0x194] sm:$0xf] }
 0x10f   :  { %v1841_v28 = vmax.f32 %v1630_v18, %v1833_v41  ;;  %2270 = vmatpush.bf16.msrb.mxu2 %v5620_v35  ;;  %v5613_v18 = vld [vmem:[%s10894_s4 + $0x128] sm:$0xf0]  ;;  %v7029_v35 = vld [vmem:[%s10894_s4 + $0x1a4] sm:$0xf0] }
 0x110   :  { %2297 = vmatpush.bf16.msra.mxu0 %v5504_v40  ;;  %v7011_v40 = vld [vmem:[%s10894_s4 + $0x114] sm:$0xf0]  ;;  %v1643_v60 = vpop.f32.mrf.mxu2  ;;  %v5616_v41 = vor.u32 %v7012_v16, %v5613_v18  ;;  %v7030_v18 = vld [vmem:[%s10894_s4 + $0x1b4] sm:$0xf] }
 0x111   :  { %2311 = vmatpush.bf16.msra.mxu1 %v5568_v47  ;;  %v1845_v33 = vpack.c.bf16 %v1841_v28, %v1837_v27  ;;  %v5604_v43 = vor.u32 %v7011_v40, %v5603_v39  ;;  %v7020_v47 = vld [vmem:[%s10894_s4 + $0x164] sm:$0xf]  ;;  %v1657_v6 = vpop.f32.mrf.mxu3  ;;  %v1644_v9 = vadd.f32 %v1643_v60, %v274_v58  ;;  %v5684_v28 = vor.u32 %v7031_v21, %v5683_v20  ;;  %v5597_v40 = vld [vmem:[%s10894_s4 + $0x108] sm:$0xf0] }
 0x112   :  { %v5648_v50 = vor.u32 %v7020_v47, %v5645_v48  ;;  %v5600_v44 = vor.u32 %v7008_v36, %v5597_v40  ;;  %v7028_v20 = vld [vmem:[%s10894_s4 + $0x1a4] sm:$0xf]  ;;  %v5661_v36 = vld [vmem:[%s10894_s4 + $0x188] sm:$0xf0] }
 0x113   :  { %2260 = vmatmul.bf16.vlgmr.msrb.gmra.mxu1 %v1845_v33  ;;  %2271 = vmatpush.bf16.msrb.mxu2 %v5612_v38 }
 0x114   :  { %2298 = vmatpush.bf16.msra.mxu0 %v5496_v55  ;;  %v5716_v55 = vor.u32 %v7039_v53, %v5715_v52  ;;  %v5659_v52 = vld [vmem:[%s10894_s4 + $0x180] sm:$0xf]  ;;  %v7025_v53 = vld [vmem:[%s10894_s4 + $0x184] sm:$0xf0] }
 0x115   :  { %2312 = vmatpush.bf16.msra.mxu1 %v5560_v51  ;;  %v5707_v51 = vld [vmem:[%s10894_s4 + $0x1e0] sm:$0xf]  ;;  %v5660_v54 = vor.u32 %v7025_v53, %v5659_v52 }
 0x116   :  { %2280 = vmatpush.bf16.msrb.mxu3 %v5716_v55  ;;  %v5708_v1 = vor.u32 %v7037_v61, %v5707_v51  ;;  %v7038_v55 = vld [vmem:[%s10894_s4 + $0x1f4] sm:$0xf] }
 0x117   :  { %2272 = vmatpush.bf16.msrb.mxu2 %v5604_v43 }
 0x118   :  { %2299 = vmatpush.bf16.msra.mxu0 %v5488_v5  ;;  %v5632_v5 = vor.u32 %v7016_v62, %v5629_v3  ;;  %v7036_v62 = vld [vmem:[%s10894_s4 + $0x1e4] sm:$0xf] }
 0x119   :  { %2313 = vmatpush.bf16.msra.mxu1 %v5552_v23  ;;  %v5691_v23 = vld [vmem:[%s10894_s4 + $0x1c0] sm:$0xf] }
 0x11a   :  { %2281 = vmatpush.bf16.msrb.mxu3 %v5708_v1  ;;  %v5692_v19 = vor.u32 %v7033_v13, %v5691_v23  ;;  %v7032_v23 = vld [vmem:[%s10894_s4 + $0x1c4] sm:$0xf]  ;;  %v5693_v13 = vld [vmem:[%s10894_s4 + $0x1c8] sm:$0xf0] }
 0x11b   :  { %2273 = vmatpush.bf16.msrb.mxu2 %v5596_v45  ;;  %v5696_v16 = vor.u32 %v7032_v23, %v5693_v13  ;;  %v5827_v23 = vld [vmem:[%s10896_s6 + $0xc8] sm:$0xf]  ;;  %v7067_v13 = vld [vmem:[%s10896_s6 + $0xd4] sm:$0xf0] }
 0x11c   :  { %2300 = vmatpush.bf16.msra.mxu0 %v5480_v37 }
 0x11d   :  { %2314 = vmatpush.bf16.msra.mxu1 %v5544_v22 }
 0x11e   :  { %2282 = vmatpush.bf16.msrb.mxu3 %v5700_v12  ;;  %v5704_v12 = vor.u32 %v7034_v7, %v5701_v8  ;;  %v5819_v7 = vld [vmem:[%s10896_s6 + $0xc0] sm:$0xf]  ;;  %v7066_v8 = vld [vmem:[%s10896_s6 + $0xcc] sm:$0xf0] }
 0x120   :  { %2301 = vmatpush.bf16.msra.mxu0 %v5472_v29  ;;  %v1669_v63 = vpop.f32.mrf.mxu0  ;;  %v1658_v29 = vadd.f32 %v1657_v6, %v1644_v9 }
 0x121   :  { %2315 = vmatpush.bf16.msra.mxu1 %v5536_v34  ;;  %v1683_v37 = vpop.f32.mrf.mxu1  ;;  %v1670_v26 = vadd.f32 %v1669_v63, %v1656_v14  ;;  %v5675_v34 = vld [vmem:[%s10894_s4 + $0x1a0] sm:$0xf]  ;;  %v5709_v63 = vld [vmem:[%s10894_s4 + $0x1e8] sm:$0xf0]  ;;  %v275_v14 = vperm.slane %v8805_v17, 3 }
 0x122   :  { %2283 = vmatpush.bf16.msrb.mxu3 %v5692_v19  ;;  %v5676_v39 = vor.u32 %v7029_v35, %v5675_v34  ;;  %v5712_v3 = vor.u32 %v7036_v62, %v5709_v63  ;;  %v5677_v17 = vld [vmem:[%s10894_s4 + $0x1a8] sm:$0xf0]  ;;  %v7024_v35 = vld [vmem:[%s10894_s4 + $0x184] sm:$0xf]  ;;  %v5843_v62 = vld [vmem:[%s10896_s6 + $0xe8] sm:$0xf] }
 0x123   :  { %2302 = vmatmul.bf16.vlgmr.msra.gmra.mxu0 %v8984_v42  ;;  %v5653_v42 = vld [vmem:[%s10894_s4 + $0x178] sm:$0xf0]  ;;  %v1684_v32 = vadd.f32 %v1683_v37, %v1670_v26  ;;  %v7071_v63 = vld [vmem:[%s10896_s6 + $0xf4] sm:$0xf0] }
 0x124   :  { %v5656_v57 = vor.u32 %v7022_v0, %v5653_v42  ;;  %2316 = vmatmul.bf16.vlgmr.msra.gmra.mxu1 %v1845_v33  ;;  %v5667_v42 = vld [vmem:[%s10894_s4 + $0x190] sm:$0xf]  ;;  %v5685_v37 = vld [vmem:[%s10894_s4 + $0x1b8] sm:$0xf0] }
 0x125   :  { %v5688_v9 = vor.u32 %v7030_v18, %v5685_v37  ;;  %v5669_v26 = vld [vmem:[%s10894_s4 + $0x198] sm:$0xf0]  ;;  %v9305_v37 = vld [vmem:[%s10895_s5] sm:$0x3]  ;;  %s7358_s5 = smov 448  }
 0x126   :  { %2322 = vmatpush.bf16.msra.mxu2 %v5656_v57  ;;  %2284 = vmatpush.bf16.msrb.mxu3 %v5684_v28  ;;  %v5668_v57 = vor.u32 %v7027_v46, %v5667_v42  ;;  %v5829_v18 = vld [vmem:[%s10896_s6 + $0xd8] sm:$0xf0] }
 0x128   :  { %v1697_v22 = vpop.f32.mrf.mxu2  ;;  %v1671_v27 = vpop.f32.mrf.mxu0 }
 0x129   :  { %v1711_v31 = vpop.f32.mrf.mxu3  ;;  %v1672_v33 = vadd.f32 %v1671_v27, %v1658_v29  ;;  %v1685_v38 = vpop.f32.mrf.mxu1  ;;  %v1698_v43 = vadd.f32 %v1697_v22, %v1684_v32  ;;  %v5680_v22 = vor.u32 %v7028_v20, %v5677_v17  ;;  %v7060_v20 = vld [vmem:[%s10896_s6 + $0xa4] sm:$0xf] }
 0x12a   :  { %2323 = vmatpush.bf16.msra.mxu2 %v5648_v50  ;;  %2285 = vmatpush.bf16.msrb.mxu3 %v5676_v39 }
 0x12b   :  { %v1686_v0 = vadd.f32 %v1685_v38, %v1672_v33  ;;  %v1712_v47 = vadd.f32 %v1711_v31, %v1698_v43  ;;  %v5664_v38 = vor.u32 %v7024_v35, %v5661_v36  ;;  %v7058_v35 = vld [vmem:[%s10896_s6 + $0x8c] sm:$0xf0]  ;;  %v7056_v36 = vld [vmem:[%s10896_s6 + $0x84] sm:$0xf] }
 0x12e   :  { %2324 = vmatpush.bf16.msra.mxu2 %v5640_v59  ;;  %2286 = vmatpush.bf16.msrb.mxu3 %v5668_v57  ;;  %v5720_v59 = vor.u32 %v7038_v55, %v5717_v56 }
 0x130   :  { %v1699_v11 = vpop.f32.mrf.mxu2 }
 0x131   :  { %v1700_v48 = vadd.f32 %v1699_v11, %v1686_v0  ;;  %v1713_v49 = vpop.f32.mrf.mxu3 }
 0x132   :  { %2325 = vmatpush.bf16.msra.mxu2 %v5632_v5  ;;  %2287 = vmatpush.bf16.msrb.mxu3 %v5660_v54 }
 0x133   :  { %v1714_v58 = vadd.f32 %v1713_v49, %v1700_v48 }
 0x136   :  { %2326 = vmatpush.bf16.msra.mxu2 %v5624_v15  ;;  %2336 = vmatpush.bf16.msra.mxu3 %v5720_v59  ;;  %v7070_v59 = vld [vmem:[%s10896_s6 + $0xec] sm:$0xf0] }
 0x13a   :  { %2327 = vmatpush.bf16.msra.mxu2 %v5616_v41  ;;  %2337 = vmatpush.bf16.msra.mxu3 %v5712_v3  ;;  %v5844_v3 = vor.u32 %v7071_v63, %v5843_v62  ;;  %v5755_v63 = vld [vmem:[%s10896_s6 + $0x40] sm:$0xf] }
 0x13e   :  { %2328 = vmatpush.bf16.msra.mxu2 %v5608_v30  ;;  %2338 = vmatpush.bf16.msra.mxu3 %v5704_v12  ;;  %v5672_v30 = vor.u32 %v7026_v25, %v5669_v26  ;;  %v5820_v12 = vor.u32 %v7066_v8, %v5819_v7  ;;  %v5811_v25 = vld [vmem:[%s10896_s6 + $0xa8] sm:$0xf]  ;;  %v7063_v26 = vld [vmem:[%s10896_s6 + $0xb4] sm:$0xf0]  ;;  %v5757_v7 = vld [vmem:[%s10896_s6 + $0x50] sm:$0xf0] }
 0x13f   :  { %v5763_v8 = vld [vmem:[%s10896_s6 + $0x48] sm:$0xf] }
 0x140   :  { %v1725_v45 = vpop.f32.mrf.mxu0 }
 0x141   :  { %v1726_v50 = vadd.f32 %v1725_v45, %v1712_v47  ;;  %v1739_v6 = vpop.f32.mrf.mxu1 }
 0x142   :  { %2329 = vmatpush.bf16.msra.mxu2 %v5600_v44  ;;  %2339 = vmatpush.bf16.msra.mxu3 %v5696_v16  ;;  %v1740_v19 = vadd.f32 %v1739_v6, %v275_v14  ;;  %v7065_v16 = vld [vmem:[%s10896_s6 + $0xcc] sm:$0xf] }
 0x143   :  { %v1830_v51 = vmul.f32 0.2, %v1726_v50 }
 0x145   :  { %v1838_v4 = vmax.f32 %v1726_v50, %v1830_v51 }
 0x146   :  { %2340 = vmatpush.bf16.msra.mxu3 %v5688_v9  ;;  %v5803_v9 = vld [vmem:[%s10896_s6 + $0xa0] sm:$0xf] }
 0x148   :  { %v1727_v60 = vpop.f32.mrf.mxu0  ;;  %v1753_v2 = vpop.f32.mrf.mxu2 }
 0x149   :  { %v1728_v61 = vadd.f32 %v1727_v60, %v1714_v58  ;;  %v1767_v15 = vpop.f32.mrf.mxu3  ;;  %v1741_v41 = vpop.f32.mrf.mxu1  ;;  %v1754_v21 = vadd.f32 %v1753_v2, %v1740_v19  ;;  %v5835_v58 = vld [vmem:[%s10896_s6 + $0xe0] sm:$0xf]  ;;  %v7068_v60 = vld [vmem:[%s10896_s6 + $0xe4] sm:$0xf]  ;;  %v5821_v2 = vld [vmem:[%s10896_s6 + $0xd0] sm:$0xf0]  ;;  %v5832_v19 = vor.u32 %v7065_v16, %v5829_v18 }
 0x14a   :  { %v1742_v27 = vadd.f32 %v1741_v41, %v275_v14  ;;  %2341 = vmatpush.bf16.msra.mxu3 %v5680_v22  ;;  %v5836_v51 = vor.u32 %v7070_v59, %v5835_v58  ;;  %v7062_v41 = vld [vmem:[%s10896_s6 + $0xac] sm:$0xf0]  ;;  %v7053_v58 = vld [vmem:[%s10896_s6 + $0x6c] sm:$0xf]  ;;  %v5781_v59 = vld [vmem:[%s10896_s6 + $0x78] sm:$0xf0] }
 0x14b   :  { %v1834_v1 = vmul.f32 0.2, %v1728_v61  ;;  %v1768_v31 = vadd.f32 %v1767_v15, %v1754_v21  ;;  %v5828_v15 = vor.u32 %v7067_v13, %v5827_v23  ;;  %v5804_v22 = vor.u32 %v7062_v41, %v5803_v9  ;;  %v7049_v13 = vld [vmem:[%s10896_s6 + $0x4c] sm:$0xf]  ;;  %v5739_v18 = vld [vmem:[%s10896_s6 + $0x20] sm:$0xf] }
 0x14c   :  { %2565 = vmatpush.bf16.msrb.mxu0 %v5836_v51  ;;  %v7044_v9 = vld [vmem:[%s10896_s6 + $0x24] sm:$0xf] }
 0x14d   :  { %v1842_v5 = vmax.f32 %v1728_v61, %v1834_v1  ;;  %v5837_v61 = vld [vmem:[%s10896_s6 + $0xf0] sm:$0xf0] }
 0x14e   :  { %2342 = vmatpush.bf16.msra.mxu3 %v5672_v30  ;;  %v5840_v1 = vor.u32 %v7068_v60, %v5837_v61  ;;  %v5813_v30 = vld [vmem:[%s10896_s6 + $0xb8] sm:$0xf0]  ;;  %v5784_v61 = vor.u32 %v7053_v58, %v5781_v59 }
 0x14f   :  { %v1846_v10 = vpack.c.bf16 %v1842_v5, %v1838_v4  ;;  %v7069_v4 = vld [vmem:[%s10896_s6 + $0xec] sm:$0xf]  ;;  %v5845_v5 = vld [vmem:[%s10896_s6 + $0xf8] sm:$0xf0] }
 0x150   :  { %v1755_v24 = vpop.f32.mrf.mxu2  ;;  %v5848_v6 = vor.u32 %v7069_v4, %v5845_v5  ;;  %2579 = vmatpush.bf16.msrb.mxu1 %v5840_v1  ;;  %2566 = vmatpush.bf16.msrb.mxu0 %v5820_v12  ;;  %v7050_v1 = vld [vmem:[%s10896_s6 + $0x4c] sm:$0xf0] }
 0x151   :  { %2274 = vmatmul.bf16.vlgmr.msrb.gmra.mxu2 %v1846_v10  ;;  %v1769_v28 = vpop.f32.mrf.mxu3  ;;  %v1756_v33 = vadd.f32 %v1755_v24, %v1742_v27  ;;  %v5805_v24 = vld [vmem:[%s10896_s6 + $0xb0] sm:$0xf0] }
 0x152   :  { %2343 = vmatpush.bf16.msra.mxu3 %v5664_v38  ;;  %2593 = vmatpush.bf16.msrb.mxu2 %v5844_v3  ;;  %v5808_v27 = vor.u32 %v7060_v20, %v5805_v24  ;;  %v7048_v3 = vld [vmem:[%s10896_s6 + $0x44] sm:$0xf]  ;;  %v5741_v20 = vld [vmem:[%s10896_s6 + $0x30] sm:$0xf0] }
 0x153   :  { %v1770_v40 = vadd.f32 %v1769_v28, %v1756_v33  ;;  %v5812_v28 = vor.u32 %v7063_v26, %v5811_v25  ;;  %v5744_v25 = vor.u32 %v7044_v9, %v5741_v20  ;;  %v6691_v20 = vld [vmem:[%s10898_s8 + $0x690] sm:$0xf] }
 0x154   :  { %2567 = vmatpush.bf16.msrb.mxu0 %v5804_v22  ;;  %v1915_v22 = vperm.slane %v9305_v37, 1 }
 0x156   :  { %2594 = vmatpush.bf16.msrb.mxu2 %v5828_v15 }
 0x15a   :  { %2595 = vmatpush.bf16.msrb.mxu2 %v5812_v28  ;;  %v5749_v28 = vld [vmem:[%s10896_s6 + $0x38] sm:$0xf0] }
 0x160   :  { %v1781_v29 = vpop.f32.mrf.mxu0 }
 0x161   :  { %v1795_v32 = vpop.f32.mrf.mxu1  ;;  %v1782_v34 = vadd.f32 %v1781_v29, %v1768_v31  ;;  %2330 = vmatmul.bf16.vlgmr.msra.gmra.mxu2 %v1846_v10  ;;  %v7064_v10 = vld [vmem:[%s10896_s6 + $0xc4] sm:$0xf]  ;;  %v7061_v29 = vld [vmem:[%s10896_s6 + $0xac] sm:$0xf]  ;;  %v1914_v31 = vperm.slane %v9305_v37, 0 }
 0x162   :  { %v5824_v14 = vor.u32 %v7064_v10, %v5821_v2  ;;  %v5816_v33 = vor.u32 %v7061_v29, %v5813_v30  ;;  %v7051_v10 = vld [vmem:[%s10896_s6 + $0x54] sm:$0xf0]  ;;  %v5760_v2 = vor.u32 %v7048_v3, %v5757_v7  ;;  %v7236_v3 = vld [vmem:[%s10898_s8 + $0x520] sm:$0xf0] }
 0x163   :  { %v1796_v43 = vadd.f32 %v1795_v32, %v1782_v34  ;;  %v5787_v34 = vld [vmem:[%s10896_s6 + $0x80] sm:$0xf]  ;;  %v5764_v23 = vor.u32 %v7051_v10, %v5763_v8 }
 0x164   :  { %2580 = vmatpush.bf16.msrb.mxu1 %v5824_v14  ;;  %v5788_v38 = vor.u32 %v7058_v35, %v5787_v34  ;;  %v5765_v14 = vld [vmem:[%s10896_s6 + $0x58] sm:$0xf0] }
 0x165   :  { %v5768_v15 = vor.u32 %v7049_v13, %v5765_v14  ;;  %v6215_v13 = vld [vmem:[%s10898_s8 + $0x2d8] sm:$0xf] }
 0x166   :  { %2568 = vmatpush.bf16.msrb.mxu0 %v5788_v38  ;;  %v5731_v38 = vld [vmem:[%s10896_s6 + $0x8] sm:$0xf] }
 0x168   :  { %v1809_v39 = vpop.f32.mrf.mxu2  ;;  %v1783_v11 = vpop.f32.mrf.mxu0  ;;  %2581 = vmatpush.bf16.msrb.mxu1 %v5808_v27  ;;  %v7045_v27 = vld [vmem:[%s10896_s6 + $0x2c] sm:$0xf] }
 0x169   :  { %v1823_v44 = vpop.f32.mrf.mxu3  ;;  %v1810_v45 = vadd.f32 %v1809_v39, %v1796_v43  ;;  %v1784_v0 = vadd.f32 %v1783_v11, %v1770_v40  ;;  %v1797_v42 = vpop.f32.mrf.mxu1  ;;  %v5789_v39 = vld [vmem:[%s10896_s6 + $0x90] sm:$0xf0]  ;;  %v5795_v40 = vld [vmem:[%s10896_s6 + $0x88] sm:$0xf]  ;;  %v7059_v43 = vld [vmem:[%s10896_s6 + $0x94] sm:$0xf0]  ;;  %v5752_v30 = vor.u32 %v7045_v27, %v5749_v28 }
 0x16a   :  { %v5796_v11 = vor.u32 %v7059_v43, %v5795_v40  ;;  %v6187_v28 = vld [vmem:[%s10898_s8 + $0x2a0] sm:$0xf] }
 0x16b   :  { %v1824_v46 = vadd.f32 %v1823_v44, %v1810_v45  ;;  %v1798_v57 = vadd.f32 %v1797_v42, %v1784_v0  ;;  %v5792_v44 = vor.u32 %v7056_v36, %v5789_v39  ;;  %v7057_v45 = vld [vmem:[%s10896_s6 + $0x8c] sm:$0xf]  ;;  %v5797_v0 = vld [vmem:[%s10896_s6 + $0x98] sm:$0xf0]  ;;  %v5725_v36 = vld [vmem:[%s10896_s6 + $0x10] sm:$0xf0] }
 0x16c   :  { %v5800_v42 = vor.u32 %v7057_v45, %v5797_v0  ;;  %2596 = vmatpush.bf16.msrb.mxu2 %v5796_v11  ;;  %v7043_v39 = vld [vmem:[%s10896_s6 + $0x14] sm:$0xf0]  ;;  %v7041_v45 = vld [vmem:[%s10896_s6 + $0xc] sm:$0xf]  ;;  %v5733_v0 = vld [vmem:[%s10896_s6 + $0x18] sm:$0xf0] }
 0x16d   :  { %v1831_v50 = vmul.f32 0.2, %v1824_v46  ;;  %2582 = vmatpush.bf16.msrb.mxu1 %v5792_v44  ;;  %v5732_v11 = vor.u32 %v7043_v39, %v5731_v38 }
 0x16f   :  { %v1839_v54 = vmax.f32 %v1824_v46, %v1831_v50  ;;  %v5773_v50 = vld [vmem:[%s10896_s6 + $0x70] sm:$0xf0] }
 0x170   :  { %v1811_v47 = vpop.f32.mrf.mxu2 }
 0x171   :  { %v1812_v48 = vadd.f32 %v1811_v47, %v1798_v57  ;;  %v1825_v49 = vpop.f32.mrf.mxu3  ;;  %v5771_v57 = vld [vmem:[%s10896_s6 + $0x60] sm:$0xf]  ;;  %v7054_v47 = vld [vmem:[%s10896_s6 + $0x6c] sm:$0xf0] }
 0x173   :  { %v1826_v52 = vadd.f32 %v1825_v49, %v1812_v48  ;;  %v7052_v48 = vld [vmem:[%s10896_s6 + $0x64] sm:$0xf]  ;;  %v5772_v49 = vor.u32 %v7054_v47, %v5771_v57 }
 0x175   :  { %v1835_v53 = vmul.f32 0.2, %v1826_v52  ;;  %2569 = vmatpush.bf16.msrb.mxu0 %v5772_v49  ;;  %v6047_v49 = vld [vmem:[%s10898_s8 + $0x188] sm:$0xf] }
 0x177   :  { %v1843_v55 = vmax.f32 %v1826_v52, %v1835_v53  ;;  %v5779_v52 = vld [vmem:[%s10896_s6 + $0x68] sm:$0xf]  ;;  %v7055_v53 = vld [vmem:[%s10896_s6 + $0x74] sm:$0xf0] }
 0x179   :  { %v1847_v56 = vpack.c.bf16 %v1843_v55, %v1839_v54  ;;  %v5776_v55 = vor.u32 %v7052_v48, %v5773_v50  ;;  %v7124_v50 = vld [vmem:[%s10898_s8 + $0x1a0] sm:$0xf0] }
 0x17b   :  { %2288 = vmatmul.bf16.vlgmr.msrb.gmra.mxu3 %v1847_v56  ;;  %2583 = vmatpush.bf16.msrb.mxu1 %v5776_v55  ;;  %v6019_v55 = vld [vmem:[%s10898_s8 + $0x150] sm:$0xf] }
 0x17c   :  { %2607 = vmatpush.bf16.msrb.mxu3 %v5848_v6  ;;  %v5756_v6 = vor.u32 %v7050_v1, %v5755_v63 }
 0x17e   :  { %2570 = vmatpush.bf16.msrb.mxu0 %v5756_v6 }
 0x17f   :  { %2584 = vmatpush.bf16.msrb.mxu1 %v5760_v2  ;;  %v5991_v2 = vld [vmem:[%s10898_s8 + $0x118] sm:$0xf] }
 0x180   :  { %v2247_v17 = vpop.f32.mrf.mxu0  ;;  %2608 = vmatpush.bf16.msrb.mxu3 %v5832_v19  ;;  %v7046_v19 = vld [vmem:[%s10896_s6 + $0x2c] sm:$0xf0] }
 0x181   :  { %v2248_v46 = vadd.f32 %v2247_v17, %v1914_v31  ;;  %v5740_v41 = vor.u32 %v7046_v19, %v5739_v18  ;;  %v5747_v17 = vld [vmem:[%s10896_s6 + $0x28] sm:$0xf]  ;;  %v7229_v18 = vld [vmem:[%s10898_s8 + $0x4e8] sm:$0xf0] }
 0x183   :  { %2571 = vmatpush.bf16.msrb.mxu0 %v5740_v41  ;;  %2585 = vmatpush.bf16.msrb.mxu1 %v5744_v25  ;;  %v7103_v25 = vld [vmem:[%s10898_s8 + $0xf8] sm:$0xf0] }
 0x184   :  { %2609 = vmatpush.bf16.msrb.mxu3 %v5816_v33  ;;  %v7040_v33 = vld [vmem:[%s10896_s6 + $0x4] sm:$0xf] }
 0x185   :  { %v5728_v44 = vor.u32 %v7040_v33, %v5725_v36  ;;  %v7278_v33 = vld [vmem:[%s10898_s8 + $0x670] sm:$0xf0] }
 0x187   :  { %2586 = vmatpush.bf16.msrb.mxu1 %v5728_v44  ;;  %v6411_v44 = vld [vmem:[%s10898_s8 + $0x460] sm:$0xf] }
 0x188   :  { %2610 = vmatpush.bf16.msrb.mxu3 %v5800_v42  ;;  %v2249_v60 = vpop.f32.mrf.mxu0 }
 0x189   :  { %v2250_v16 = vadd.f32 %v2249_v60, %v1914_v31  ;;  %v5723_v31 = vld [vmem:[%s10896_s6] sm:$0xf]  ;;  %v6243_v60 = vld [vmem:[%s10898_s8 + $0x310] sm:$0xf] }
 0x18b   :  { %2344 = vmatmul.bf16.vlgmr.msra.gmra.mxu3 %v1847_v56  ;;  %v5780_v56 = vor.u32 %v7055_v53, %v5779_v52  ;;  %v6271_v52 = vld [vmem:[%s10898_s8 + $0x348] sm:$0xf]  ;;  %v6048_v53 = vor.u32 %v7124_v50, %v6047_v49  ;;  %v7152_v49 = vld [vmem:[%s10898_s8 + $0x280] sm:$0xf0] }
 0x18c   :  { %2611 = vmatpush.bf16.msrb.mxu3 %v5784_v61  ;;  %v6495_v61 = vld [vmem:[%s10898_s8 + $0x508] sm:$0xf] }
 0x18d   :  { %2597 = vmatpush.bf16.msrb.mxu2 %v5780_v56  ;;  %v7117_v56 = vld [vmem:[%s10898_s8 + $0x168] sm:$0xf0]  ;;  %v6496_v8 = vor.u32 %v7236_v3, %v6495_v61  ;;  %v5907_v61 = vld [vmem:[%s10898_s8 + $0x70] sm:$0xf] }
 0x18e   :  { %v6020_v1 = vor.u32 %v7117_v56, %v6019_v55  ;;  %v7208_v56 = vld [vmem:[%s10898_s8 + $0x440] sm:$0xf0] }
 0x190   :  { %v2261_v21 = vpop.f32.mrf.mxu1  ;;  %2612 = vmatpush.bf16.msrb.mxu3 %v5768_v15  ;;  %v7166_v15 = vld [vmem:[%s10898_s8 + $0x2f0] sm:$0xf0] }
 0x191   :  { %v2262_v54 = vadd.f32 %v2261_v21, %v2248_v46  ;;  %2598 = vmatpush.bf16.msrb.mxu2 %v5764_v23  ;;  %v7047_v21 = vld [vmem:[%s10896_s6 + $0x34] sm:$0xf0]  ;;  %v5736_v46 = vor.u32 %v7041_v45, %v5733_v0  ;;  %v7110_v23 = vld [vmem:[%s10898_s8 + $0x130] sm:$0xf0]  ;;  %v6216_v27 = vor.u32 %v7166_v15, %v6215_v13 }
 0x192   :  { %v5748_v26 = vor.u32 %v7047_v21, %v5747_v17  ;;  %v7285_v17 = vld [vmem:[%s10898_s8 + $0x6a8] sm:$0xf0]  ;;  %v5992_v37 = vor.u32 %v7110_v23, %v5991_v2  ;;  %v2350_v23 = vld [vmem:[%s10891_s1] sm:$0xff]  ;;  %v7082_v15 = vld [vmem:[%s10898_s8 + $0x50] sm:$0xf0] }
 0x194   :  { %2613 = vmatpush.bf16.msrb.mxu3 %v5752_v30  ;;  %v6439_v30 = vld [vmem:[%s10898_s8 + $0x498] sm:$0xf] }
 0x195   :  { %2599 = vmatpush.bf16.msrb.mxu2 %v5748_v26 }
 0x198   :  { %v2263_v51 = vpop.f32.mrf.mxu1  ;;  %2614 = vmatpush.bf16.msrb.mxu3 %v5736_v46  ;;  %v7096_v46 = vld [vmem:[%s10898_s8 + $0xc0] sm:$0xf0] }
 0x199   :  { %v2264_v24 = vadd.f32 %v2263_v51, %v2250_v16  ;;  %2600 = vmatpush.bf16.msrb.mxu2 %v5732_v11  ;;  %v7173_v51 = vld [vmem:[%s10898_s8 + $0x328] sm:$0xf0]  ;;  %v6467_v16 = vld [vmem:[%s10898_s8 + $0x4d0] sm:$0xf]  ;;  %v7215_v11 = vld [vmem:[%s10898_s8 + $0x478] sm:$0xf0] }
 0x19a   :  { %v6244_v7 = vor.u32 %v7173_v51, %v6243_v60  ;;  %v6468_v41 = vor.u32 %v7229_v18, %v6467_v16  ;;  %v6103_v16 = vld [vmem:[%s10898_s8 + $0x1f8] sm:$0xf]  ;;  %v7138_v18 = vld [vmem:[%s10898_s8 + $0x210] sm:$0xf0] }
 0x19d   :  { %4093 = vmatpush.bf16.msra.mxu2 %v6496_v8  ;;  %v6579_v8 = vld [vmem:[%s10898_s8 + $0x5b0] sm:$0xf] }
 0x1a0   :  { %v2303_v29 = vpop.f32.mrf.mxu0 }
 0x1a1   :  { %v2317_v40 = vpop.f32.mrf.mxu1  ;;  %v2304_v47 = vadd.f32 %v2303_v29, %v1915_v22  ;;  %v7159_v29 = vld [vmem:[%s10898_s8 + $0x2b8] sm:$0xf0]  ;;  %4094 = vmatpush.bf16.msra.mxu2 %v6468_v41 }
 0x1a2   :  { %v6188_v0 = vor.u32 %v7159_v29, %v6187_v28  ;;  %v7075_v29 = vld [vmem:[%s10898_s8 + $0x18] sm:$0xf0] }
 0x1a3   :  { %v2318_v48 = vadd.f32 %v2317_v40, %v2304_v47  ;;  %v7271_v47 = vld [vmem:[%s10898_s8 + $0x638] sm:$0xf0] }
 0x1a9   :  { %v2319_v14 = vpop.f32.mrf.mxu1 }
 0x1d4   :  { %v2275_v32 = vpop.f32.mrf.mxu2 }
 0x1d5   :  { %v2276_v62 = vadd.f32 %v2275_v32, %v2262_v54  ;;  %v7042_v32 = vld [vmem:[%s10896_s6 + $0xc] sm:$0xf0]  ;;  %v7180_v54 = vld [vmem:[%s10898_s8 + $0x360] sm:$0xf0]  ;;  %s4525_s6 = sshll.u32 %s10900_s10, 4  ;;  %s4526_s6 = int_to_ptr.hbm [resolvable:$true] %s4525_s6 }
 0x1d6   :  { %v5724_v35 = vor.u32 %v7042_v32, %v5723_v31  ;;  %v6272_v59 = vor.u32 %v7180_v54, %v6271_v52  ;;  %v7222_v31 = vld [vmem:[%s10898_s8 + $0x4b0] sm:$0xf0]  ;;  %v6663_v32 = vld [vmem:[%s10898_s8 + $0x658] sm:$0xf]  ;;  %v6412_v52 = vor.u32 %v7215_v11, %v6411_v44  ;;  %v6383_v54 = vld [vmem:[%s10898_s8 + $0x428] sm:$0xf] }
 0x1d7   :  { %v6440_v36 = vor.u32 %v7222_v31, %v6439_v30  ;;  %v6664_v38 = vor.u32 %v7278_v33, %v6663_v32  ;;  %v6384_v3 = vor.u32 %v7208_v56, %v6383_v54  ;;  %v6075_v30 = vld [vmem:[%s10898_s8 + $0x1c0] sm:$0xf]  ;;  %v7131_v31 = vld [vmem:[%s10898_s8 + $0x1d8] sm:$0xf0]  ;;  %v7121_v32 = vld [vmem:[%s10898_s8 + $0x18c] sm:$0xf] }
 0x1d8   :  { %2572 = vmatpush.bf16.msrb.mxu0 %v5724_v35  ;;  %4079 = vmatpush.bf16.msra.mxu1 %v6272_v59  ;;  %v7264_v59 = vld [vmem:[%s10898_s8 + $0x600] sm:$0xf0]  ;;  %v6049_v33 = vld [vmem:[%s10898_s8 + $0x1a4] sm:$0xf0]  ;;  %v7187_v44 = vld [vmem:[%s10898_s8 + $0x398] sm:$0xf0] }
 0x1d9   :  { %4095 = vmatpush.bf16.msra.mxu2 %v6440_v36  ;;  %v7233_v11 = vld [vmem:[%s10898_s8 + $0x50c] sm:$0xf]  ;;  %v7170_v54 = vld [vmem:[%s10898_s8 + $0x314] sm:$0xf] }
 0x1dc   :  { %v2277_v4 = vpop.f32.mrf.mxu2  ;;  %4065 = vmatpush.bf16.msra.mxu0 %v6048_v53  ;;  %4080 = vmatpush.bf16.msra.mxu1 %v6244_v7  ;;  %v7201_v7 = vld [vmem:[%s10898_s8 + $0x408] sm:$0xf0] }
 0x1dd   :  { %v2278_v34 = vadd.f32 %v2277_v4, %v2264_v24  ;;  %v6719_v4 = vld [vmem:[%s10898_s8 + $0x6c8] sm:$0xf]  ;;  %v5963_v24 = vld [vmem:[%s10898_s8 + $0xe0] sm:$0xf]  ;;  %4096 = vmatpush.bf16.msra.mxu2 %v6412_v52  ;;  %v7114_v52 = vld [vmem:[%s10898_s8 + $0x154] sm:$0xf] }
 0x1de   :  { %v5964_v40 = vor.u32 %v7103_v25, %v5963_v24  ;;  %v7250_v24 = vld [vmem:[%s10898_s8 + $0x590] sm:$0xf0] }
 0x1e0   :  { %4066 = vmatpush.bf16.msra.mxu0 %v6020_v1  ;;  %4081 = vmatpush.bf16.msra.mxu1 %v6216_v27  ;;  %v7145_v1 = vld [vmem:[%s10898_s8 + $0x248] sm:$0xf0]  ;;  %v5851_v27 = vld [vmem:[%s10898_s8] sm:$0xf] }
 0x1e1   :  { %4097 = vmatpush.bf16.msra.mxu2 %v6384_v3 }
 0x1e4   :  { %v2331_v57 = vpop.f32.mrf.mxu2  ;;  %4067 = vmatpush.bf16.msra.mxu0 %v5992_v37  ;;  %4082 = vmatpush.bf16.msra.mxu1 %v6188_v0  ;;  %v7194_v37 = vld [vmem:[%s10898_s8 + $0x3d0] sm:$0xf0]  ;;  %v5852_v0 = vor.u32 %v7075_v29, %v5851_v27  ;;  %v6161_v27 = vld [vmem:[%s10898_s8 + $0x284] sm:$0xf0]  ;;  %v7212_v29 = vld [vmem:[%s10898_s8 + $0x464] sm:$0xf] }
 0x1e5   :  { %v2332_v58 = vadd.f32 %v2331_v57, %v2318_v48  ;;  %v6635_v57 = vld [vmem:[%s10898_s8 + $0x620] sm:$0xf]  ;;  %v6159_v48 = vld [vmem:[%s10898_s8 + $0x268] sm:$0xf] }
 0x1e6   :  { %v6636_v53 = vor.u32 %v7271_v47, %v6635_v57  ;;  %v6160_v51 = vor.u32 %v7152_v49, %v6159_v48  ;;  %v6497_v57 = vld [vmem:[%s10898_s8 + $0x524] sm:$0xf0]  ;;  %v7289_v47 = vld [vmem:[%s10898_s8 + $0x6cc] sm:$0xf]  ;;  %v6052_v49 = vor.u32 %v7121_v32, %v6049_v33  ;;  %v6637_v33 = vld [vmem:[%s10898_s8 + $0x63c] sm:$0xf0] }
 0x1e7   :  { %v6721_v48 = vld [vmem:[%s10898_s8 + $0x6e4] sm:$0xf0] }
 0x1e8   :  { %4068 = vmatpush.bf16.msra.mxu0 %v5964_v40  ;;  %4083 = vmatpush.bf16.msra.mxu1 %v6160_v51  ;;  %v6273_v40 = vld [vmem:[%s10898_s8 + $0x364] sm:$0xf0]  ;;  %v7226_v51 = vld [vmem:[%s10898_s8 + $0x4d4] sm:$0xf] }
 0x1ec   :  { %v2333_v21 = vpop.f32.mrf.mxu2 }
 0x1fe   :  { %v2289_v5 = vpop.f32.mrf.mxu3 }
 0x1ff   :  { %v9398_v12 = vadd.f32 %v2289_v5, %v2276_v62  ;;  %v2305_v62 = vpop.f32.mrf.mxu0  ;;  %v7292_v5 = vld [vmem:[%s10898_s8 + $0x6e0] sm:$0xf0] }
 0x200   :  { %v6720_v10 = vor.u32 %v7292_v5, %v6719_v4  ;;  %v2306_v19 = vadd.f32 %v2305_v62, %v1915_v22  ;;  %v6692_v22 = vor.u32 %v7285_v17, %v6691_v20  ;;  %v7089_v62 = vld [vmem:[%s10898_s8 + $0x88] sm:$0xf0]  ;;  %v6355_v5 = vld [vmem:[%s10898_s8 + $0x3f0] sm:$0xf]  ;;  %v6327_v20 = vld [vmem:[%s10898_s8 + $0x3b8] sm:$0xf] }
 0x201   :  { %4515 = vst [vmem:[%s10901_s11] sm:$0xff] %v9398_v12 }
 0x202   :  { %4107 = vmatpush.bf16.msra.mxu3 %v6720_v10  ;;  %v2320_v26 = vadd.f32 %v2319_v14, %v2306_v19  ;;  %v7257_v10 = vld [vmem:[%s10898_s8 + $0x5c8] sm:$0xf0]  ;;  %v5879_v14 = vld [vmem:[%s10898_s8 + $0x38] sm:$0xf] }
 0x203   :  { %v2351_v19 = vld [vmem:[%s10891_s1 + $0x8] sm:$0xff]  ;;  %v6580_v41 = vor.u32 %v7257_v10, %v6579_v8 }
 0x206   :  { %v2291_v43 = vpop.f32.mrf.mxu3  ;;  %4108 = vmatpush.bf16.msra.mxu3 %v6692_v22  ;;  %v6551_v22 = vld [vmem:[%s10898_s8 + $0x578] sm:$0xf] }
 0x207   :  { %v9459_v42 = vadd.f32 %v2291_v43, %v2278_v34  ;;  %v2334_v34 = vadd.f32 %v2333_v21, %v2320_v26  ;;  %v5935_v43 = vld [vmem:[%s10898_s8 + $0xa8] sm:$0xf]  ;;  %v5880_v21 = vor.u32 %v7082_v15, %v5879_v14  ;;  %v6104_v26 = vor.u32 %v7138_v18, %v6103_v16  ;;  %v5965_v14 = vld [vmem:[%s10898_s8 + $0xfc] sm:$0xf0]  ;;  %v7156_v15 = vld [vmem:[%s10898_s8 + $0x2a4] sm:$0xf] }
 0x208   :  { %v5936_v55 = vor.u32 %v7096_v46, %v5935_v43  ;;  %v6552_v36 = vor.u32 %v7250_v24, %v6551_v22  ;;  %v6299_v43 = vld [vmem:[%s10898_s8 + $0x380] sm:$0xf]  ;;  %v6076_v46 = vor.u32 %v7131_v31, %v6075_v30  ;;  %v7093_v22 = vld [vmem:[%s10898_s8 + $0xac] sm:$0xf]  ;;  %v5937_v24 = vld [vmem:[%s10898_s8 + $0xc4] sm:$0xf0] }
 0x209   :  { %4517 = vst [vmem:[%s10901_s11 + $0x10] sm:$0xff] %v9459_v42  ;;  %v6300_v56 = vor.u32 %v7187_v44, %v6299_v43  ;;  %v6189_v18 = vld [vmem:[%s10898_s8 + $0x2bc] sm:$0xf0]  ;;  %v7268_v31 = vld [vmem:[%s10898_s8 + $0x624] sm:$0xf] }
 0x20a   :  { %4109 = vmatpush.bf16.msra.mxu3 %v6664_v38  ;;  %4069 = vmatpush.bf16.msra.mxu0 %v5936_v55  ;;  %v6245_v55 = vld [vmem:[%s10898_s8 + $0x32c] sm:$0xf0]  ;;  %v6413_v30 = vld [vmem:[%s10898_s8 + $0x47c] sm:$0xf0]  ;;  %v7205_v44 = vld [vmem:[%s10898_s8 + $0x42c] sm:$0xf] }
 0x20b   :  { %v6248_v3 = vor.u32 %v7170_v54, %v6245_v55  ;;  %v6416_v32 = vor.u32 %v7212_v29, %v6413_v30  ;;  %v7254_v54 = vld [vmem:[%s10898_s8 + $0x5b4] sm:$0xf]  ;;  %v6055_v30 = vld [vmem:[%s10898_s8 + $0x190] sm:$0xf] }
 0x20e   :  { %v2345_v63 = vpop.f32.mrf.mxu3  ;;  %4110 = vmatpush.bf16.msra.mxu3 %v6636_v53  ;;  %v6021_v53 = vld [vmem:[%s10898_s8 + $0x16c] sm:$0xf0] }
 0x20f   :  { %v2346_v6 = vadd.f32 %v2345_v63, %v2332_v58  ;;  %v6607_v58 = vld [vmem:[%s10898_s8 + $0x5e8] sm:$0xf]  ;;  %v6131_v63 = vld [vmem:[%s10898_s8 + $0x230] sm:$0xf] }
 0x210   :  { %v6608_v4 = vor.u32 %v7264_v59, %v6607_v58  ;;  %v6132_v13 = vor.u32 %v7145_v1, %v6131_v63  ;;  %v6500_v59 = vor.u32 %v7233_v11, %v6497_v57  ;;  %v6693_v63 = vld [vmem:[%s10898_s8 + $0x6ac] sm:$0xf0]  ;;  %v6024_v1 = vor.u32 %v7114_v52, %v6021_v53  ;;  %v5881_v57 = vld [vmem:[%s10898_s8 + $0x54] sm:$0xf0]  ;;  %v7198_v52 = vld [vmem:[%s10898_s8 + $0x3f4] sm:$0xf] }
 0x211   :  { %v2352_v9 = vmul.f32 0.5, %v2346_v6  ;;  %4516 = vst [vmem:[%s10901_s11 + $0x8] sm:$0xff] %v2346_v6  ;;  %v5908_v6 = vor.u32 %v7089_v62, %v5907_v61  ;;  %v6469_v61 = vld [vmem:[%s10898_s8 + $0x4ec] sm:$0xf0]  ;;  %v7282_v62 = vld [vmem:[%s10898_s8 + $0x694] sm:$0xf] }
 0x212   :  { %4111 = vmatpush.bf16.msra.mxu3 %v6608_v4  ;;  %4084 = vmatpush.bf16.msra.mxu1 %v6132_v13  ;;  %v7107_v4 = vld [vmem:[%s10898_s8 + $0x11c] sm:$0xf]  ;;  %v6472_v8 = vor.u32 %v7226_v51, %v6469_v61  ;;  %v6696_v10 = vor.u32 %v7282_v62, %v6693_v63  ;;  %v7100_v13 = vld [vmem:[%s10898_s8 + $0xe4] sm:$0xf]  ;;  %v6357_v53 = vld [vmem:[%s10898_s8 + $0x40c] sm:$0xf0] }
 0x213   :  { %v2354_v35 = vmul.f32 1.442695, %v2352_v9  ;;  %v6356_v9 = vor.u32 %v7201_v7, %v6355_v5  ;;  %4070 = vmatpush.bf16.msra.mxu0 %v5908_v6  ;;  %v5993_v5 = vld [vmem:[%s10898_s8 + $0x134] sm:$0xf0]  ;;  %v7163_v6 = vld [vmem:[%s10898_s8 + $0x2dc] sm:$0xf]  ;;  %v5968_v16 = vor.u32 %v7100_v13, %v5965_v14  ;;  %v6360_v55 = vor.u32 %v7198_v52, %v6357_v53 }
 0x214   :  { %v6217_v7 = vld [vmem:[%s10898_s8 + $0x2f4] sm:$0xf0]  ;;  %v7128_v51 = vld [vmem:[%s10898_s8 + $0x1c4] sm:$0xf]  ;;  %v6077_v62 = vld [vmem:[%s10898_s8 + $0x1dc] sm:$0xf0] }
 0x215   :  { %7299 = vpow2.f32 %v2354_v35  ;;  %4098 = vmatpush.bf16.msra.mxu2 %v6356_v9  ;;  %v6328_v35 = vor.u32 %v7194_v37, %v6327_v20  ;;  %v7219_v9 = vld [vmem:[%s10898_s8 + $0x49c] sm:$0xf]  ;;  %v6080_v63 = vor.u32 %v7128_v51, %v6077_v62  ;;  %v6525_v13 = vld [vmem:[%s10898_s8 + $0x55c] sm:$0xf0] }
 0x216   :  { %v2347_v39 = vpop.f32.mrf.mxu3  ;;  %4112 = vmatpush.bf16.msra.mxu3 %v6580_v41  ;;  %4085 = vmatpush.bf16.msra.mxu1 %v6104_v26  ;;  %v6441_v41 = vld [vmem:[%s10898_s8 + $0x4b4] sm:$0xf0]  ;;  %v5940_v26 = vor.u32 %v7093_v22, %v5937_v24 }
 0x217   :  { %v2348_v45 = vadd.f32 %v2347_v39, %v2334_v34  ;;  %v7177_v34 = vld [vmem:[%s10898_s8 + $0x34c] sm:$0xf]  ;;  %4071 = vmatpush.bf16.msra.mxu0 %v5880_v21  ;;  %v6444_v20 = vor.u32 %v7219_v9, %v6441_v41  ;;  %v6665_v21 = vld [vmem:[%s10898_s8 + $0x674] sm:$0xf0] }
 0x219   :  { %v2353_v50 = vmul.f32 0.5, %v2348_v45  ;;  %4518 = vst [vmem:[%s10901_s11 + $0x18] sm:$0xff] %v2348_v45  ;;  %4099 = vmatpush.bf16.msra.mxu2 %v6328_v35  ;;  %v7086_v35 = vld [vmem:[%s10898_s8 + $0x74] sm:$0xf] }
 0x21a   :  { %4113 = vmatpush.bf16.msra.mxu3 %v6552_v36  ;;  %4086 = vmatpush.bf16.msra.mxu1 %v6076_v46  ;;  %v5909_v36 = vld [vmem:[%s10898_s8 + $0x8c] sm:$0xf0]  ;;  %v7079_v46 = vld [vmem:[%s10898_s8 + $0x3c] sm:$0xf] }
 0x21b   :  { %v2356_v60 = vmul.f32 1.442695, %v2353_v50  ;;  %v7300_v2 = vpop.eup %7299  ;;  %v6276_v50 = vor.u32 %v7177_v34, %v6273_v40  ;;  %4072 = vmatpush.bf16.msra.mxu0 %v5852_v0  ;;  %v6640_v34 = vor.u32 %v7268_v31, %v6637_v33  ;;  %v6133_v40 = vld [vmem:[%s10898_s8 + $0x24c] sm:$0xf0]  ;;  %v7125_v31 = vld [vmem:[%s10898_s8 + $0x1a8] sm:$0xf0] }
 0x21c   :  { %v2358_v17 = vmul.f32 %v7300_v2, %v2350_v23  ;;  %v5996_v2 = vor.u32 %v7107_v4, %v5993_v5  ;;  %v6220_v23 = vor.u32 %v7163_v6, %v6217_v7  ;;  %v7247_v4 = vld [vmem:[%s10898_s8 + $0x57c] sm:$0xf]  ;;  %v6553_v5 = vld [vmem:[%s10898_s8 + $0x594] sm:$0xf0] }
 0x21d   :  { %7301 = vpow2.f32 %v2356_v60  ;;  %v6724_v60 = vor.u32 %v7289_v47, %v6721_v48  ;;  %4100 = vmatpush.bf16.msra.mxu2 %v6300_v56  ;;  %v7135_v47 = vld [vmem:[%s10898_s8 + $0x1fc] sm:$0xf]  ;;  %v5884_v48 = vor.u32 %v7079_v46, %v5881_v57  ;;  %v6581_v56 = vld [vmem:[%s10898_s8 + $0x5cc] sm:$0xf0]  ;;  %v6556_v7 = vor.u32 %v7247_v4, %v6553_v5 }
 0x21e   :  { %v2360_v38 = vadd.f32 %v2358_v17, %v9398_v12  ;;  %v6523_v12 = vld [vmem:[%s10898_s8 + $0x540] sm:$0xf]  ;;  %v7275_v17 = vld [vmem:[%s10898_s8 + $0x65c] sm:$0xf] }
 0x21f   :  { %v6668_v37 = vor.u32 %v7275_v17, %v6665_v21  ;;  %v7167_v4 = vld [vmem:[%s10898_s8 + $0x2f8] sm:$0xf0] }
 0x223   :  { %v7302_v25 = vpop.eup %7301 }
 0x224   :  { %v2359_v28 = vmul.f32 %v7302_v25, %v2351_v19  ;;  %v6192_v19 = vor.u32 %v7156_v15, %v6189_v18  ;;  %v7149_v25 = vld [vmem:[%s10898_s8 + $0x26c] sm:$0xf]  ;;  %v2395_v15 = vld [vmem:[%s10897_s7] sm:$0xf] }
 0x225   :  { %v2398_v9 = vperm.slane %v2395_v15, 1  ;;  %v2400_v22 = vperm.slane %v2395_v15, 3 }
 0x226   :  { %v2361_v39 = vadd.f32 %v2359_v28, %v9459_v42  ;;  %v7243_v42 = vld [vmem:[%s10898_s8 + $0x558] sm:$0xf0]  ;;  %v6164_v28 = vor.u32 %v7149_v25, %v6161_v27 }
 0x227   :  { %v6524_v58 = vor.u32 %v7243_v42, %v6523_v12  ;;  %v6385_v12 = vld [vmem:[%s10898_s8 + $0x444] sm:$0xf0]  ;;  %v7261_v42 = vld [vmem:[%s10898_s8 + $0x5ec] sm:$0xf] }
 0x228   :  { %v2362_v45 = vpack.c.bf16 %v2361_v39, %v2360_v38  ;;  %v5912_v38 = vor.u32 %v7086_v35, %v5909_v36  ;;  %v7142_v39 = vld [vmem:[%s10898_s8 + $0x234] sm:$0xf]  ;;  %v6388_v11 = vor.u32 %v7205_v44, %v6385_v12  ;;  %v7181_v35 = vld [vmem:[%s10898_s8 + $0x368] sm:$0xf0]  ;;  %v6056_v12 = vor.u32 %v7125_v31, %v6055_v30  ;;  %v5943_v30 = vld [vmem:[%s10898_s8 + $0xb0] sm:$0xf] }
 0x229   :  { %4114 = vmatpush.bf16.msra.mxu3 %v6524_v58  ;;  %v6136_v43 = vor.u32 %v7142_v39, %v6133_v40  ;;  %v6584_v58 = vor.u32 %v7254_v54, %v6581_v56  ;;  %v7237_v56 = vld [vmem:[%s10898_s8 + $0x528] sm:$0xf0] }
 0x22a   :  { %2573 = vmatmul.bf16.vlgmr.msrb.gmra.mxu0 %v2362_v45  ;;  %2587 = vmatmul.bf16.vlgmr.msrb.gmra.mxu1 %v2362_v45  ;;  %v7097_v31 = vld [vmem:[%s10898_s8 + $0xc8] sm:$0xf0] }
 0x22b   :  { %2601 = vmatmul.bf16.vlgmr.msrb.gmra.mxu2 %v2362_v45  ;;  %2615 = vmatmul.bf16.vlgmr.msrb.gmra.mxu3 %v2362_v45  ;;  %v6609_v45 = vld [vmem:[%s10898_s8 + $0x604] sm:$0xf0] }
 0x22c   :  { %4121 = vmatpush.bf16.msrb.mxu0 %v6052_v49  ;;  %4135 = vmatpush.bf16.msrb.mxu1 %v6276_v50  ;;  %v6612_v0 = vor.u32 %v7261_v42, %v6609_v45  ;;  %v6105_v49 = vld [vmem:[%s10898_s8 + $0x214] sm:$0xf0] }
 0x22d   :  { %4149 = vmatpush.bf16.msrb.mxu2 %v6500_v59  ;;  %4163 = vmatpush.bf16.msrb.mxu3 %v6724_v60  ;;  %v6108_v50 = vor.u32 %v7135_v47, %v6105_v49  ;;  %v7072_v59 = vld [vmem:[%s10898_s8 + $0x4] sm:$0xf]  ;;  %v5853_v60 = vld [vmem:[%s10898_s8 + $0x1c] sm:$0xf0]  ;;  %v7118_v47 = vld [vmem:[%s10898_s8 + $0x170] sm:$0xf0] }
 0x22e   :  { %v5856_v61 = vor.u32 %v7072_v59, %v5853_v60  ;;  %v7174_v49 = vld [vmem:[%s10898_s8 + $0x330] sm:$0xf0]  ;;  %v7293_v59 = vld [vmem:[%s10898_s8 + $0x6e8] sm:$0xf0]  ;;  %v5999_v60 = vld [vmem:[%s10898_s8 + $0x120] sm:$0xf] }
 0x230   :  { %4122 = vmatpush.bf16.msrb.mxu0 %v6024_v1  ;;  %4136 = vmatpush.bf16.msrb.mxu1 %v6248_v3  ;;  %v7191_v1 = vld [vmem:[%s10898_s8 + $0x3bc] sm:$0xf]  ;;  %v6329_v3 = vld [vmem:[%s10898_s8 + $0x3d4] sm:$0xf0] }
 0x231   :  { %4150 = vmatpush.bf16.msrb.mxu2 %v6472_v8  ;;  %4164 = vmatpush.bf16.msrb.mxu3 %v6696_v10  ;;  %v6332_v6 = vor.u32 %v7191_v1, %v6329_v3  ;;  %v7184_v8 = vld [vmem:[%s10898_s8 + $0x384] sm:$0xf]  ;;  %v6301_v10 = vld [vmem:[%s10898_s8 + $0x39c] sm:$0xf0]  ;;  %v7111_v1 = vld [vmem:[%s10898_s8 + $0x138] sm:$0xf0] }
 0x232   :  { %v6223_v3 = vld [vmem:[%s10898_s8 + $0x2e0] sm:$0xf] }
 0x234   :  { %4123 = vmatpush.bf16.msrb.mxu0 %v5996_v2  ;;  %4137 = vmatpush.bf16.msrb.mxu1 %v6220_v23  ;;  %v6304_v2 = vor.u32 %v7184_v8, %v6301_v10  ;;  %v7240_v23 = vld [vmem:[%s10898_s8 + $0x544] sm:$0xf] }
 0x235   :  { %4151 = vmatpush.bf16.msrb.mxu2 %v6444_v20  ;;  %4165 = vmatpush.bf16.msrb.mxu3 %v6668_v37  ;;  %v6528_v14 = vor.u32 %v7240_v23, %v6525_v13  ;;  %v2399_v37 = vperm.slane %v2395_v15, 2  ;;  %v6000_v23 = vor.u32 %v7111_v1, %v5999_v60  ;;  %v6475_v13 = vld [vmem:[%s10898_s8 + $0x4d8] sm:$0xf]  ;;  %v7258_v1 = vld [vmem:[%s10898_s8 + $0x5d0] sm:$0xf0] }
 0x238   :  { %4124 = vmatpush.bf16.msrb.mxu0 %v5968_v16  ;;  %4138 = vmatpush.bf16.msrb.mxu1 %v6192_v19  ;;  %v2397_v19 = vperm.slane %v2395_v15, 0 }
 0x239   :  { %4152 = vmatpush.bf16.msrb.mxu2 %v6416_v32  ;;  %4166 = vmatpush.bf16.msrb.mxu3 %v6640_v34  ;;  %v6279_v32 = vld [vmem:[%s10898_s8 + $0x350] sm:$0xf] }
 0x23a   :  { %v6280_v42 = vor.u32 %v7181_v35, %v6279_v32  ;;  %v6167_v32 = vld [vmem:[%s10898_s8 + $0x270] sm:$0xf] }
 0x23c   :  { %4125 = vmatpush.bf16.msrb.mxu0 %v5940_v26  ;;  %4139 = vmatpush.bf16.msrb.mxu1 %v6164_v28 }
 0x23d   :  { %4153 = vmatpush.bf16.msrb.mxu2 %v6388_v11  ;;  %4167 = vmatpush.bf16.msrb.mxu3 %v6612_v0  ;;  %v6027_v11 = vld [vmem:[%s10898_s8 + $0x158] sm:$0xf] }
 0x23e   :  { %v6028_v62 = vor.u32 %v7118_v47, %v6027_v11  ;;  %v6139_v11 = vld [vmem:[%s10898_s8 + $0x238] sm:$0xf] }
 0x240   :  { %4126 = vmatpush.bf16.msrb.mxu0 %v5912_v38  ;;  %4140 = vmatpush.bf16.msrb.mxu1 %v6136_v43 }
 0x241   :  { %4154 = vmatpush.bf16.msrb.mxu2 %v6360_v55  ;;  %4168 = vmatpush.bf16.msrb.mxu3 %v6584_v58  ;;  %v6503_v55 = vld [vmem:[%s10898_s8 + $0x510] sm:$0xf] }
 0x242   :  { %v6727_v58 = vld [vmem:[%s10898_s8 + $0x6d0] sm:$0xf]  ;;  %v6504_v10 = vor.u32 %v7237_v56, %v6503_v55  ;;  %v5887_v55 = vld [vmem:[%s10898_s8 + $0x40] sm:$0xf]  ;;  %v7083_v56 = vld [vmem:[%s10898_s8 + $0x58] sm:$0xf0] }
 0x244   :  { %4127 = vmatpush.bf16.msrb.mxu0 %v5884_v48  ;;  %4141 = vmatpush.bf16.msrb.mxu1 %v6108_v50  ;;  %v6251_v48 = vld [vmem:[%s10898_s8 + $0x318] sm:$0xf] }
 0x245   :  { %4155 = vmatpush.bf16.msrb.mxu2 %v6332_v6  ;;  %4169 = vmatpush.bf16.msrb.mxu3 %v6556_v7 }
 0x248   :  { %4128 = vmatpush.bf16.msrb.mxu0 %v5856_v61  ;;  %4142 = vmatpush.bf16.msrb.mxu1 %v6080_v63  ;;  %v6252_v63 = vor.u32 %v7174_v49, %v6251_v48  ;;  %v6391_v48 = vld [vmem:[%s10898_s8 + $0x430] sm:$0xf]  ;;  %v7209_v49 = vld [vmem:[%s10898_s8 + $0x448] sm:$0xf0] }
 0x249   :  { %4156 = vmatpush.bf16.msrb.mxu2 %v6304_v2  ;;  %4170 = vmatpush.bf16.msrb.mxu3 %v6528_v14  ;;  %v6728_v2 = vor.u32 %v7293_v59, %v6727_v58  ;;  %v7230_v14 = vld [vmem:[%s10898_s8 + $0x4f0] sm:$0xf0]  ;;  %v6111_v58 = vld [vmem:[%s10898_s8 + $0x200] sm:$0xf]  ;;  %v7139_v59 = vld [vmem:[%s10898_s8 + $0x218] sm:$0xf0]  ;;  %v6392_v60 = vor.u32 %v7209_v49, %v6391_v48 }
 0x24a   :  { %v7227_v48 = vld [vmem:[%s10898_s8 + $0x4dc] sm:$0xf]  ;;  %v6477_v49 = vld [vmem:[%s10898_s8 + $0x4f4] sm:$0xf0] }
 0x2a7   :  { %v2574_v16 = vpop.f32.mrf.mxu0  ;;  %v2588_v18 = vpop.f32.mrf.mxu1 }
 0x2a8   :  { %v2575_v41 = vadd.f32 %v2574_v16, %v2397_v19  ;;  %v2589_v20 = vadd.f32 %v2588_v18, %v2398_v9  ;;  %v6224_v18 = vor.u32 %v7167_v4, %v6223_v3  ;;  %v5888_v3 = vor.u32 %v7083_v56, %v5887_v55  ;;  %v7101_v55 = vld [vmem:[%s10898_s8 + $0xec] sm:$0xf]  ;;  %v5973_v56 = vld [vmem:[%s10898_s8 + $0x104] sm:$0xf0] }
 0x2a9   :  { %v6112_v4 = vor.u32 %v7139_v59, %v6111_v58  ;;  %v7157_v58 = vld [vmem:[%s10898_s8 + $0x2ac] sm:$0xf]  ;;  %v6197_v59 = vld [vmem:[%s10898_s8 + $0x2c4] sm:$0xf0] }
 0x2aa   :  { %v2621_v26 = vmul.f32 0.2, %v2575_v41  ;;  %v2622_v27 = vmul.f32 0.2, %v2589_v20 }
 0x2ac   :  { %v2629_v39 = vmax.f32 %v2575_v41, %v2621_v26  ;;  %v2630_v40 = vmax.f32 %v2589_v20, %v2622_v27  ;;  %v5971_v41 = vld [vmem:[%s10898_s8 + $0xe8] sm:$0xf]  ;;  %v7104_v20 = vld [vmem:[%s10898_s8 + $0x100] sm:$0xf0]  ;;  %v7223_v27 = vld [vmem:[%s10898_s8 + $0x4b8] sm:$0xf0] }
 0x2ae   :  { %v2602_v17 = vpop.f32.mrf.mxu2  ;;  %v2616_v21 = vpop.f32.mrf.mxu3 }
 0x2af   :  { %v2576_v24 = vpop.f32.mrf.mxu0  ;;  %v2590_v25 = vpop.f32.mrf.mxu1  ;;  %v2603_v36 = vadd.f32 %v2602_v17, %v2399_v37  ;;  %v2617_v38 = vadd.f32 %v2616_v21, %v2400_v22  ;;  %v6195_v17 = vld [vmem:[%s10898_s8 + $0x2a8] sm:$0xf]  ;;  %v7160_v21 = vld [vmem:[%s10898_s8 + $0x2c0] sm:$0xf0] }
 0x2b0   :  { %v2577_v28 = vadd.f32 %v2576_v24, %v2397_v19  ;;  %v2591_v29 = vadd.f32 %v2590_v25, %v2398_v9  ;;  %v6699_v19 = vld [vmem:[%s10898_s8 + $0x698] sm:$0xf]  ;;  %v7286_v9 = vld [vmem:[%s10898_s8 + $0x6b0] sm:$0xf0]  ;;  %v6447_v24 = vld [vmem:[%s10898_s8 + $0x4a0] sm:$0xf]  ;;  %v5972_v25 = vor.u32 %v7104_v20, %v5971_v41  ;;  %v6196_v26 = vor.u32 %v7160_v21, %v6195_v17 }
 0x2b1   :  { %v2623_v50 = vmul.f32 0.2, %v2603_v36  ;;  %v2624_v52 = vmul.f32 0.2, %v2617_v38  ;;  %v6559_v41 = vld [vmem:[%s10898_s8 + $0x580] sm:$0xf] }
 0x2b2   :  { %v2625_v33 = vmul.f32 0.2, %v2577_v28  ;;  %v2626_v34 = vmul.f32 0.2, %v2591_v29  ;;  %v7251_v20 = vld [vmem:[%s10898_s8 + $0x598] sm:$0xf0] }
 0x2b3   :  { %v2631_v5 = vmax.f32 %v2603_v36, %v2623_v50  ;;  %v2632_v6 = vmax.f32 %v2617_v38, %v2624_v52  ;;  %v6419_v36 = vld [vmem:[%s10898_s8 + $0x468] sm:$0xf]  ;;  %v7216_v38 = vld [vmem:[%s10898_s8 + $0x480] sm:$0xf0]  ;;  %v6615_v50 = vld [vmem:[%s10898_s8 + $0x5f0] sm:$0xf] }
 0x2b4   :  { %v2633_v43 = vmax.f32 %v2577_v28, %v2625_v33  ;;  %v2634_v44 = vmax.f32 %v2591_v29, %v2626_v34  ;;  %v6671_v28 = vld [vmem:[%s10898_s8 + $0x660] sm:$0xf]  ;;  %v7279_v29 = vld [vmem:[%s10898_s8 + $0x678] sm:$0xf0]  ;;  %v7153_v33 = vld [vmem:[%s10898_s8 + $0x288] sm:$0xf0]  ;;  %v6448_v34 = vor.u32 %v7223_v27, %v6447_v24 }
 0x2b5   :  { %v6672_v35 = vor.u32 %v7279_v29, %v6671_v28  ;;  %v7265_v52 = vld [vmem:[%s10898_s8 + $0x608] sm:$0xf0]  ;;  %v7115_v24 = vld [vmem:[%s10898_s8 + $0x15c] sm:$0xf]  ;;  %v6560_v28 = vor.u32 %v7251_v20, %v6559_v41  ;;  %v6253_v29 = vld [vmem:[%s10898_s8 + $0x334] sm:$0xf0] }
 0x2b6   :  { %v9885_v45 = vpack.c.bf16 %v2633_v43, %v2629_v39  ;;  %v9887_v0 = vpack.c.bf16 %v2634_v44, %v2630_v40  ;;  %v2604_v46 = vpop.f32.mrf.mxu2  ;;  %v2618_v57 = vpop.f32.mrf.mxu3  ;;  %v6643_v39 = vld [vmem:[%s10898_s8 + $0x628] sm:$0xf]  ;;  %v7272_v40 = vld [vmem:[%s10898_s8 + $0x640] sm:$0xf0]  ;;  %v5944_v43 = vor.u32 %v7097_v31, %v5943_v30  ;;  %v6168_v44 = vor.u32 %v7153_v33, %v6167_v32  ;;  %v7087_v41 = vld [vmem:[%s10898_s8 + $0x7c] sm:$0xf] }
 0x2b7   :  { %v2605_v53 = vadd.f32 %v2604_v46, %v2399_v37  ;;  %v2619_v54 = vadd.f32 %v2618_v57, %v2400_v22  ;;  %v6476_v37 = vor.u32 %v7230_v14, %v6475_v13  ;;  %v6700_v22 = vor.u32 %v7286_v9, %v6699_v19  ;;  %v7146_v46 = vld [vmem:[%s10898_s8 + $0x250] sm:$0xf0]  ;;  %v6335_v19 = vld [vmem:[%s10898_s8 + $0x3c0] sm:$0xf]  ;;  %v7195_v9 = vld [vmem:[%s10898_s8 + $0x3d8] sm:$0xf0] }
 0x2b8   :  { %4073 = vmatmul.bf16.vlgmr.msra.gmra.mxu0 %v9885_v45  ;;  %4087 = vmatmul.bf16.vlgmr.msra.gmra.mxu1 %v9887_v0  ;;  %v6420_v57 = vor.u32 %v7216_v38, %v6419_v36  ;;  %v6644_v47 = vor.u32 %v7272_v40, %v6643_v39  ;;  %v7178_v14 = vld [vmem:[%s10898_s8 + $0x354] sm:$0xf]  ;;  %v6336_v27 = vor.u32 %v7195_v9, %v6335_v19  ;;  %v6307_v30 = vld [vmem:[%s10898_s8 + $0x388] sm:$0xf]  ;;  %v7188_v31 = vld [vmem:[%s10898_s8 + $0x3a0] sm:$0xf0] }
 0x2b9   :  { %v2627_v51 = vmul.f32 0.2, %v2605_v53  ;;  %v2628_v61 = vmul.f32 0.2, %v2619_v54  ;;  %4177 = vmatpush.bf16.msra.mxu0 %v6056_v12  ;;  %4191 = vmatpush.bf16.msra.mxu1 %v6280_v42  ;;  %v5915_v12 = vld [vmem:[%s10898_s8 + $0x78] sm:$0xf] }
 0x2ba   :  { %v7090_v42 = vld [vmem:[%s10898_s8 + $0x90] sm:$0xf0]  ;;  %v6531_v32 = vld [vmem:[%s10898_s8 + $0x548] sm:$0xf]  ;;  %v7244_v33 = vld [vmem:[%s10898_s8 + $0x560] sm:$0xf0] }
 0x2bb   :  { %v2635_v7 = vmax.f32 %v2605_v53, %v2627_v51  ;;  %v2636_v8 = vmax.f32 %v2619_v54, %v2628_v61  ;;  %v5916_v53 = vor.u32 %v7090_v42, %v5915_v12  ;;  %v6140_v54 = vor.u32 %v7146_v46, %v6139_v11  ;;  %v6363_v61 = vld [vmem:[%s10898_s8 + $0x3f8] sm:$0xf]  ;;  %v7290_v36 = vld [vmem:[%s10898_s8 + $0x6d4] sm:$0xf]  ;;  %v6729_v38 = vld [vmem:[%s10898_s8 + $0x6ec] sm:$0xf0] }
 0x2bc   :  { %v6616_v51 = vor.u32 %v7265_v52, %v6615_v50  ;;  %v6532_v12 = vor.u32 %v7244_v33, %v6531_v32  ;;  %v6001_v42 = vld [vmem:[%s10898_s8 + $0x13c] sm:$0xf0]  ;;  %v7164_v11 = vld [vmem:[%s10898_s8 + $0x2e4] sm:$0xf]  ;;  %v7283_v50 = vld [vmem:[%s10898_s8 + $0x69c] sm:$0xf] }
 0x2bd   :  { %v9930_v15 = vpack.c.bf16 %v2635_v7, %v2631_v5  ;;  %v9932_v16 = vpack.c.bf16 %v2636_v8, %v2632_v6  ;;  %4178 = vmatpush.bf16.msra.mxu0 %v6028_v62  ;;  %4192 = vmatpush.bf16.msra.mxu1 %v6252_v63  ;;  %v7202_v62 = vld [vmem:[%s10898_s8 + $0x410] sm:$0xf0]  ;;  %v6587_v63 = vld [vmem:[%s10898_s8 + $0x5b8] sm:$0xf]  ;;  %v5859_v5 = vld [vmem:[%s10898_s8 + $0x8] sm:$0xf] }
 0x2be   :  { %v7076_v6 = vld [vmem:[%s10898_s8 + $0x20] sm:$0xf0]  ;;  %v6083_v7 = vld [vmem:[%s10898_s8 + $0x1c8] sm:$0xf]  ;;  %v6588_v13 = vor.u32 %v7258_v1, %v6587_v63  ;;  %v6225_v46 = vld [vmem:[%s10898_s8 + $0x2fc] sm:$0xf0] }
 0x2bf   :  { %4101 = vmatmul.bf16.vlgmr.msra.gmra.mxu2 %v9930_v15  ;;  %4115 = vmatmul.bf16.vlgmr.msra.gmra.mxu3 %v9932_v16  ;;  %v7132_v8 = vld [vmem:[%s10898_s8 + $0x1e0] sm:$0xf0]  ;;  %v5860_v17 = vor.u32 %v7076_v6, %v5859_v5  ;;  %v6701_v52 = vld [vmem:[%s10898_s8 + $0x6b4] sm:$0xf0]  ;;  %v6673_v1 = vld [vmem:[%s10898_s8 + $0x67c] sm:$0xf0] }
 0x2c0   :  { %4205 = vmatpush.bf16.msra.mxu2 %v6504_v10  ;;  %4219 = vmatpush.bf16.msra.mxu3 %v6728_v2  ;;  %v7122_v10 = vld [vmem:[%s10898_s8 + $0x194] sm:$0xf]  ;;  %v6057_v2 = vld [vmem:[%s10898_s8 + $0x1ac] sm:$0xf0]  ;;  %v6084_v21 = vor.u32 %v7132_v8, %v6083_v7  ;;  %v7276_v63 = vld [vmem:[%s10898_s8 + $0x664] sm:$0xf] }
 0x2c1   :  { %4179 = vmatpush.bf16.msra.mxu0 %v6000_v23  ;;  %4193 = vmatpush.bf16.msra.mxu1 %v6224_v18  ;;  %v6364_v23 = vor.u32 %v7202_v62, %v6363_v61  ;;  %v6281_v18 = vld [vmem:[%s10898_s8 + $0x36c] sm:$0xf0]  ;;  %v7220_v61 = vld [vmem:[%s10898_s8 + $0x4a4] sm:$0xf]  ;;  %v6449_v62 = vld [vmem:[%s10898_s8 + $0x4bc] sm:$0xf0] }
 0x2c2   :  { %v7094_v5 = vld [vmem:[%s10898_s8 + $0xb4] sm:$0xf]  ;;  %v5945_v6 = vld [vmem:[%s10898_s8 + $0xcc] sm:$0xf0]  ;;  %v5917_v20 = vld [vmem:[%s10898_s8 + $0x94] sm:$0xf0] }
 0x2c3   :  { %v7150_v7 = vld [vmem:[%s10898_s8 + $0x274] sm:$0xf]  ;;  %v6169_v8 = vld [vmem:[%s10898_s8 + $0x28c] sm:$0xf0]  ;;  %v5948_v19 = vor.u32 %v7094_v5, %v5945_v6  ;;  %v7136_v32 = vld [vmem:[%s10898_s8 + $0x204] sm:$0xf] }
 0x2c4   :  { %4206 = vmatpush.bf16.msra.mxu2 %v6476_v37  ;;  %4220 = vmatpush.bf16.msra.mxu3 %v6700_v22  ;;  %v6060_v37 = vor.u32 %v7122_v10, %v6057_v2  ;;  %v6284_v22 = vor.u32 %v7178_v14, %v6281_v18  ;;  %v6452_v10 = vor.u32 %v7220_v61, %v6449_v62  ;;  %v7269_v14 = vld [vmem:[%s10898_s8 + $0x62c] sm:$0xf]  ;;  %v6645_v18 = vld [vmem:[%s10898_s8 + $0x644] sm:$0xf0]  ;;  %v6113_v33 = vld [vmem:[%s10898_s8 + $0x21c] sm:$0xf0] }
 0x2c5   :  { %4180 = vmatpush.bf16.msra.mxu0 %v5972_v25  ;;  %4194 = vmatpush.bf16.msra.mxu1 %v6196_v26  ;;  %v6029_v25 = vld [vmem:[%s10898_s8 + $0x174] sm:$0xf0]  ;;  %v7171_v26 = vld [vmem:[%s10898_s8 + $0x31c] sm:$0xf]  ;;  %v6676_v2 = vor.u32 %v7276_v63, %v6673_v1  ;;  %v6172_v9 = vor.u32 %v7150_v7, %v6169_v8  ;;  %v6035_v61 = vld [vmem:[%s10898_s8 + $0x160] sm:$0xf] }
 0x2c6   :  { %v6032_v39 = vor.u32 %v7115_v24, %v6029_v25  ;;  %v6256_v40 = vor.u32 %v7171_v26, %v6253_v29  ;;  %v7206_v24 = vld [vmem:[%s10898_s8 + $0x434] sm:$0xf]  ;;  %v6393_v25 = vld [vmem:[%s10898_s8 + $0x44c] sm:$0xf0]  ;;  %v7119_v62 = vld [vmem:[%s10898_s8 + $0x178] sm:$0xf0] }
 0x2c7   :  { %v7262_v26 = vld [vmem:[%s10898_s8 + $0x5f4] sm:$0xf]  ;;  %v6259_v63 = vld [vmem:[%s10898_s8 + $0x320] sm:$0xf]  ;;  %v7185_v5 = vld [vmem:[%s10898_s8 + $0x38c] sm:$0xf] }
 0x2c8   :  { %4207 = vmatpush.bf16.msra.mxu2 %v6448_v34  ;;  %4221 = vmatpush.bf16.msra.mxu3 %v6672_v35  ;;  %v7234_v34 = vld [vmem:[%s10898_s8 + $0x514] sm:$0xf]  ;;  %v6505_v35 = vld [vmem:[%s10898_s8 + $0x52c] sm:$0xf0]  ;;  %v6309_v6 = vld [vmem:[%s10898_s8 + $0x3a4] sm:$0xf0] }
 0x2c9   :  { %4129 = vmatmul.bf16.vlgmr.msrb.gmra.mxu0 %v9885_v45  ;;  %4143 = vmatmul.bf16.vlgmr.msrb.gmra.mxu1 %v9887_v0  ;;  %v7241_v7 = vld [vmem:[%s10898_s8 + $0x54c] sm:$0xf]  ;;  %v6533_v8 = vld [vmem:[%s10898_s8 + $0x564] sm:$0xf0] }
 0x2ca   :  { %4181 = vmatpush.bf16.msra.mxu0 %v5944_v43  ;;  %4195 = vmatpush.bf16.msra.mxu1 %v6168_v44  ;;  %v7108_v43 = vld [vmem:[%s10898_s8 + $0x124] sm:$0xf]  ;;  %v6308_v44 = vor.u32 %v7188_v31, %v6307_v30  ;;  %v5889_v31 = vld [vmem:[%s10898_s8 + $0x5c] sm:$0xf0] }
 0x2cb   :  { %v7080_v30 = vld [vmem:[%s10898_s8 + $0x44] sm:$0xf] }
 0x2cc   :  { %4208 = vmatpush.bf16.msra.mxu2 %v6420_v57  ;;  %4222 = vmatpush.bf16.msra.mxu3 %v6644_v47  ;;  %v6508_v57 = vor.u32 %v7234_v34, %v6505_v35  ;;  %v6732_v47 = vor.u32 %v7290_v36, %v6729_v38  ;;  %v6396_v34 = vor.u32 %v7206_v24, %v6393_v25  ;;  %v7199_v36 = vld [vmem:[%s10898_s8 + $0x3fc] sm:$0xf]  ;;  %v6365_v38 = vld [vmem:[%s10898_s8 + $0x414] sm:$0xf0]  ;;  %v6483_v24 = vld [vmem:[%s10898_s8 + $0x4e0] sm:$0xf] }
 0x2cd   :  { %v7231_v25 = vld [vmem:[%s10898_s8 + $0x4f8] sm:$0xf0] }
 0x2ce   :  { %4182 = vmatpush.bf16.msra.mxu0 %v5916_v53  ;;  %4196 = vmatpush.bf16.msra.mxu1 %v6140_v54  ;;  %v6004_v53 = vor.u32 %v7108_v43, %v6001_v42  ;;  %v6228_v54 = vor.u32 %v7164_v11, %v6225_v46  ;;  %v5892_v43 = vor.u32 %v7080_v30, %v5889_v31  ;;  %v5861_v42 = vld [vmem:[%s10898_s8 + $0x24] sm:$0xf0]  ;;  %v7129_v11 = vld [vmem:[%s10898_s8 + $0x1cc] sm:$0xf]  ;;  %v5979_v30 = vld [vmem:[%s10898_s8 + $0xf0] sm:$0xf] }
 0x2cf   :  { %4157 = vmatmul.bf16.vlgmr.msrb.gmra.mxu2 %v9930_v15  ;;  %4171 = vmatmul.bf16.vlgmr.msrb.gmra.mxu3 %v9932_v16  ;;  %v6085_v46 = vld [vmem:[%s10898_s8 + $0x1e4] sm:$0xf0]  ;;  %v7105_v31 = vld [vmem:[%s10898_s8 + $0x108] sm:$0xf0] }
 0x2d0   :  { %4209 = vmatpush.bf16.msra.mxu2 %v6392_v60  ;;  %4223 = vmatpush.bf16.msra.mxu3 %v6616_v51  ;;  %v6480_v60 = vor.u32 %v7227_v48, %v6477_v49  ;;  %v6704_v51 = vor.u32 %v7283_v50, %v6701_v52  ;;  %v6368_v48 = vor.u32 %v7199_v36, %v6365_v38  ;;  %v6287_v50 = vld [vmem:[%s10898_s8 + $0x358] sm:$0xf]  ;;  %v7182_v52 = vld [vmem:[%s10898_s8 + $0x370] sm:$0xf0]  ;;  %v6455_v36 = vld [vmem:[%s10898_s8 + $0x4a8] sm:$0xf] }
 0x2d1   :  { %v7224_v38 = vld [vmem:[%s10898_s8 + $0x4c0] sm:$0xf0] }
 0x2d2   :  { %4183 = vmatpush.bf16.msra.mxu0 %v5888_v3  ;;  %4197 = vmatpush.bf16.msra.mxu1 %v6112_v4  ;;  %v5976_v3 = vor.u32 %v7101_v55, %v5973_v56  ;;  %v6200_v4 = vor.u32 %v7157_v58, %v6197_v59  ;;  %v7248_v55 = vld [vmem:[%s10898_s8 + $0x584] sm:$0xf]  ;;  %v6561_v56 = vld [vmem:[%s10898_s8 + $0x59c] sm:$0xf0]  ;;  %v6088_v59 = vor.u32 %v7129_v11, %v6085_v46 }
 0x2d3   :  { %v6456_v11 = vor.u32 %v7224_v38, %v6455_v36  ;;  %v7116_v36 = vld [vmem:[%s10898_s8 + $0x164] sm:$0xf]  ;;  %v6037_v38 = vld [vmem:[%s10898_s8 + $0x17c] sm:$0xf0] }
 0x2d4   :  { %4210 = vmatpush.bf16.msra.mxu2 %v6364_v23  ;;  %4224 = vmatpush.bf16.msra.mxu3 %v6588_v13  ;;  %v7213_v23 = vld [vmem:[%s10898_s8 + $0x46c] sm:$0xf]  ;;  %v6421_v13 = vld [vmem:[%s10898_s8 + $0x484] sm:$0xf0] }
 0x2d6   :  { %4184 = vmatpush.bf16.msra.mxu0 %v5860_v17  ;;  %4198 = vmatpush.bf16.msra.mxu1 %v6084_v21  ;;  %v7143_v17 = vld [vmem:[%s10898_s8 + $0x23c] sm:$0xf]  ;;  %v6141_v21 = vld [vmem:[%s10898_s8 + $0x254] sm:$0xf0] }
 0x2d7   :  { %v6144_v29 = vor.u32 %v7143_v17, %v6141_v21 }
 0x2d8   :  { %4211 = vmatpush.bf16.msra.mxu2 %v6336_v27  ;;  %4225 = vmatpush.bf16.msra.mxu3 %v6560_v28  ;;  %v6617_v27 = vld [vmem:[%s10898_s8 + $0x60c] sm:$0xf0]  ;;  %v5920_v28 = vor.u32 %v7087_v41, %v5917_v20  ;;  %v6007_v41 = vld [vmem:[%s10898_s8 + $0x128] sm:$0xf]  ;;  %v7112_v20 = vld [vmem:[%s10898_s8 + $0x140] sm:$0xf0] }
 0x2d9   :  { %4185 = vmatmul.bf16.vlgmr.msra.gmra.mxu0 %v9885_v45  ;;  %4199 = vmatmul.bf16.vlgmr.msra.gmra.mxu1 %v9887_v0  ;;  %v6620_v35 = vor.u32 %v7262_v26, %v6617_v27  ;;  %v6707_v26 = vld [vmem:[%s10898_s8 + $0x6a0] sm:$0xf]  ;;  %v7287_v27 = vld [vmem:[%s10898_s8 + $0x6b8] sm:$0xf0] }
 0x2da   :  { %4233 = vmatpush.bf16.msrb.mxu0 %v6060_v37  ;;  %4247 = vmatpush.bf16.msrb.mxu1 %v6284_v22  ;;  %v6424_v37 = vor.u32 %v7213_v23, %v6421_v13  ;;  %v6648_v22 = vor.u32 %v7269_v14, %v6645_v18  ;;  %v6735_v23 = vld [vmem:[%s10898_s8 + $0x6d8] sm:$0xf]  ;;  %v7294_v13 = vld [vmem:[%s10898_s8 + $0x6f0] sm:$0xf0]  ;;  %v6036_v14 = vor.u32 %v7119_v62, %v6035_v61 }
 0x2db   :  { %v6736_v21 = vor.u32 %v7294_v13, %v6735_v23  ;;  %v6399_v61 = vld [vmem:[%s10898_s8 + $0x438] sm:$0xf]  ;;  %v7210_v62 = vld [vmem:[%s10898_s8 + $0x450] sm:$0xf0]  ;;  %v6371_v23 = vld [vmem:[%s10898_s8 + $0x400] sm:$0xf] }
 0x2dc   :  { %4212 = vmatpush.bf16.msra.mxu2 %v6308_v44  ;;  %4226 = vmatpush.bf16.msra.mxu3 %v6532_v12  ;;  %v6116_v44 = vor.u32 %v7136_v32, %v6113_v33  ;;  %v7073_v12 = vld [vmem:[%s10898_s8 + $0xc] sm:$0xf]  ;;  %v6484_v32 = vor.u32 %v7231_v25, %v6483_v24  ;;  %v6708_v33 = vor.u32 %v7287_v27, %v6707_v26  ;;  %v7203_v13 = vld [vmem:[%s10898_s8 + $0x418] sm:$0xf0]  ;;  %v6065_v25 = vld [vmem:[%s10898_s8 + $0x1b4] sm:$0xf0] }
 0x2dd   :  { %v5864_v58 = vor.u32 %v7073_v12, %v5861_v42  ;;  %v5951_v12 = vld [vmem:[%s10898_s8 + $0xb8] sm:$0xf]  ;;  %v7098_v42 = vld [vmem:[%s10898_s8 + $0xd0] sm:$0xf0]  ;;  %v7123_v24 = vld [vmem:[%s10898_s8 + $0x19c] sm:$0xf] }
 0x2de   :  { %4234 = vmatpush.bf16.msrb.mxu0 %v6032_v39  ;;  %4248 = vmatpush.bf16.msrb.mxu1 %v6256_v40  ;;  %v7255_v39 = vld [vmem:[%s10898_s8 + $0x5bc] sm:$0xf]  ;;  %v6589_v40 = vld [vmem:[%s10898_s8 + $0x5d4] sm:$0xf0] }
 0x2df   :  { %4213 = vmatmul.bf16.vlgmr.msra.gmra.mxu2 %v9930_v15  ;;  %4227 = vmatmul.bf16.vlgmr.msra.gmra.mxu3 %v9932_v16  ;;  %v6592_v49 = vor.u32 %v7255_v39, %v6589_v40  ;;  %v6679_v39 = vld [vmem:[%s10898_s8 + $0x668] sm:$0xf]  ;;  %v7280_v40 = vld [vmem:[%s10898_s8 + $0x680] sm:$0xf0]  ;;  %v7179_v26 = vld [vmem:[%s10898_s8 + $0x35c] sm:$0xf] }
 0x2e0   :  { %4261 = vmatpush.bf16.msrb.mxu2 %v6508_v57  ;;  %4275 = vmatpush.bf16.msrb.mxu3 %v6732_v47  ;;  %v6063_v57 = vld [vmem:[%s10898_s8 + $0x198] sm:$0xf]  ;;  %v7126_v47 = vld [vmem:[%s10898_s8 + $0x1b0] sm:$0xf0]  ;;  %v6680_v46 = vor.u32 %v7280_v40, %v6679_v39  ;;  %v7172_v39 = vld [vmem:[%s10898_s8 + $0x324] sm:$0xf] }
 0x2e1   :  { %v6289_v27 = vld [vmem:[%s10898_s8 + $0x374] sm:$0xf0] }
 0x2e2   :  { %4235 = vmatpush.bf16.msrb.mxu0 %v6004_v53  ;;  %4249 = vmatpush.bf16.msrb.mxu1 %v6228_v54  ;;  %v7192_v53 = vld [vmem:[%s10898_s8 + $0x3c4] sm:$0xf]  ;;  %v6337_v54 = vld [vmem:[%s10898_s8 + $0x3dc] sm:$0xf0] }
 0x2e3   :  { %v6340_v1 = vor.u32 %v7192_v53, %v6337_v54  ;;  %v5952_v53 = vor.u32 %v7098_v42, %v5951_v12  ;;  %v6315_v12 = vld [vmem:[%s10898_s8 + $0x390] sm:$0xf]  ;;  %v7189_v42 = vld [vmem:[%s10898_s8 + $0x3a8] sm:$0xf0] }
 0x2e4   :  { %4262 = vmatpush.bf16.msrb.mxu2 %v6480_v60  ;;  %4276 = vmatpush.bf16.msrb.mxu3 %v6704_v51  ;;  %v6064_v60 = vor.u32 %v7126_v47, %v6063_v57  ;;  %v6288_v51 = vor.u32 %v7182_v52, %v6287_v50  ;;  %v6175_v57 = vld [vmem:[%s10898_s8 + $0x278] sm:$0xf]  ;;  %v7154_v47 = vld [vmem:[%s10898_s8 + $0x290] sm:$0xf0]  ;;  %v6651_v50 = vld [vmem:[%s10898_s8 + $0x630] sm:$0xf] }
 0x2e5   :  { %v7273_v52 = vld [vmem:[%s10898_s8 + $0x648] sm:$0xf0]  ;;  %v6176_v54 = vor.u32 %v7154_v47, %v6175_v57  ;;  %v7235_v57 = vld [vmem:[%s10898_s8 + $0x51c] sm:$0xf]  ;;  %v6513_v47 = vld [vmem:[%s10898_s8 + $0x534] sm:$0xf0] }
 0x2e6   :  { %4236 = vmatpush.bf16.msrb.mxu0 %v5976_v3  ;;  %4250 = vmatpush.bf16.msrb.mxu1 %v6200_v4  ;;  %v6564_v3 = vor.u32 %v7248_v55, %v6561_v56  ;;  %v7175_v4 = vld [vmem:[%s10898_s8 + $0x338] sm:$0xf0]  ;;  %v5923_v55 = vld [vmem:[%s10898_s8 + $0x80] sm:$0xf] }
 0x2e7   :  { %v6260_v18 = vor.u32 %v7175_v4, %v6259_v63  ;;  %v7091_v56 = vld [vmem:[%s10898_s8 + $0x98] sm:$0xf0]  ;;  %v6623_v63 = vld [vmem:[%s10898_s8 + $0x5f8] sm:$0xf] }
 0x2e8   :  { %4263 = vmatpush.bf16.msrb.mxu2 %v6452_v10  ;;  %4277 = vmatpush.bf16.msrb.mxu3 %v6676_v2  ;;  %v6511_v10 = vld [vmem:[%s10898_s8 + $0x518] sm:$0xf]  ;;  %v7238_v2 = vld [vmem:[%s10898_s8 + $0x530] sm:$0xf0] }
 0x2e9   :  { %v6512_v17 = vor.u32 %v7238_v2, %v6511_v10  ;;  %v6119_v10 = vld [vmem:[%s10898_s8 + $0x208] sm:$0xf]  ;;  %v7140_v2 = vld [vmem:[%s10898_s8 + $0x220] sm:$0xf0] }
 0x2ea   :  { %4237 = vmatpush.bf16.msrb.mxu0 %v5948_v19  ;;  %4251 = vmatpush.bf16.msrb.mxu1 %v6172_v9  ;;  %v6312_v19 = vor.u32 %v7185_v5, %v6309_v6  ;;  %v6536_v9 = vor.u32 %v7241_v7, %v6533_v8  ;;  %v5895_v5 = vld [vmem:[%s10898_s8 + $0x48] sm:$0xf]  ;;  %v7084_v6 = vld [vmem:[%s10898_s8 + $0x60] sm:$0xf0]  ;;  %v6400_v7 = vor.u32 %v7210_v62, %v6399_v61  ;;  %v6485_v62 = vld [vmem:[%s10898_s8 + $0x4fc] sm:$0xf0] }
 0x2eb   :  { %v7228_v61 = vld [vmem:[%s10898_s8 + $0x4e4] sm:$0xf] }
 0x2ec   :  { %4264 = vmatpush.bf16.msrb.mxu2 %v6424_v37  ;;  %4278 = vmatpush.bf16.msrb.mxu3 %v6648_v22  ;;  %v6231_v37 = vld [vmem:[%s10898_s8 + $0x2e8] sm:$0xf]  ;;  %v7168_v22 = vld [vmem:[%s10898_s8 + $0x300] sm:$0xf0] }
 0x2ee   :  { %4238 = vmatpush.bf16.msrb.mxu0 %v5920_v28  ;;  %4252 = vmatpush.bf16.msrb.mxu1 %v6144_v29  ;;  %v6008_v28 = vor.u32 %v7112_v20, %v6007_v41  ;;  %v6232_v29 = vor.u32 %v7168_v22, %v6231_v37  ;;  %v5867_v41 = vld [vmem:[%s10898_s8 + $0x10] sm:$0xf]  ;;  %v7077_v20 = vld [vmem:[%s10898_s8 + $0x28] sm:$0xf0] }
 0x2ef   :  { %v7133_v22 = vld [vmem:[%s10898_s8 + $0x1e8] sm:$0xf0] }
 0x2f0   :  { %4265 = vmatpush.bf16.msrb.mxu2 %v6396_v34  ;;  %4279 = vmatpush.bf16.msrb.mxu3 %v6620_v35  ;;  %v6203_v34 = vld [vmem:[%s10898_s8 + $0x2b0] sm:$0xf]  ;;  %v7161_v35 = vld [vmem:[%s10898_s8 + $0x2c8] sm:$0xf0] }
 0x2f2   :  { %4239 = vmatpush.bf16.msrb.mxu0 %v5892_v43  ;;  %4253 = vmatpush.bf16.msrb.mxu1 %v6116_v44  ;;  %v5980_v43 = vor.u32 %v7105_v31, %v5979_v30  ;;  %v6204_v44 = vor.u32 %v7161_v35, %v6203_v34  ;;  %v6567_v30 = vld [vmem:[%s10898_s8 + $0x588] sm:$0xf]  ;;  %v7252_v31 = vld [vmem:[%s10898_s8 + $0x5a0] sm:$0xf0]  ;;  %v6068_v34 = vor.u32 %v7123_v24, %v6065_v25  ;;  %v7214_v24 = vld [vmem:[%s10898_s8 + $0x474] sm:$0xf] }
 0x2f3   :  { %v6292_v35 = vor.u32 %v7179_v26, %v6289_v27  ;;  %v6429_v25 = vld [vmem:[%s10898_s8 + $0x48c] sm:$0xf0]  ;;  %v7270_v26 = vld [vmem:[%s10898_s8 + $0x634] sm:$0xf] }
 0x2f4   :  { %4266 = vmatpush.bf16.msrb.mxu2 %v6368_v48  ;;  %4280 = vmatpush.bf16.msrb.mxu3 %v6592_v49  ;;  %v6427_v48 = vld [vmem:[%s10898_s8 + $0x470] sm:$0xf]  ;;  %v7217_v49 = vld [vmem:[%s10898_s8 + $0x488] sm:$0xf0] }
 0x2f5   :  { %v6653_v27 = vld [vmem:[%s10898_s8 + $0x64c] sm:$0xf0] }
 0x2f6   :  { %4240 = vmatpush.bf16.msrb.mxu0 %v5864_v58  ;;  %4254 = vmatpush.bf16.msrb.mxu1 %v6088_v59  ;;  %v6428_v58 = vor.u32 %v7217_v49, %v6427_v48  ;;  %v6652_v59 = vor.u32 %v7273_v52, %v6651_v50  ;;  %v7291_v48 = vld [vmem:[%s10898_s8 + $0x6dc] sm:$0xf]  ;;  %v6737_v49 = vld [vmem:[%s10898_s8 + $0x6f4] sm:$0xf0]  ;;  %v6040_v50 = vor.u32 %v7116_v36, %v6037_v38 }
 0x2f7   :  { %v7207_v36 = vld [vmem:[%s10898_s8 + $0x43c] sm:$0xf]  ;;  %v6401_v38 = vld [vmem:[%s10898_s8 + $0x454] sm:$0xf0] }
 0x2f8   :  { %4267 = vmatpush.bf16.msrb.mxu2 %v6340_v1  ;;  %4281 = vmatpush.bf16.msrb.mxu3 %v6564_v3  ;;  %v7266_v1 = vld [vmem:[%s10898_s8 + $0x610] sm:$0xf0]  ;;  %v5924_v3 = vor.u32 %v7091_v56, %v5923_v55  ;;  %v7109_v55 = vld [vmem:[%s10898_s8 + $0x12c] sm:$0xf]  ;;  %v6009_v56 = vld [vmem:[%s10898_s8 + $0x144] sm:$0xf0] }
 0x2f9   :  { %4241 = vmatmul.bf16.vlgmr.msrb.gmra.mxu0 %v9885_v45  ;;  %4255 = vmatmul.bf16.vlgmr.msrb.gmra.mxu1 %v9887_v0  ;;  %v6624_v8 = vor.u32 %v7266_v1, %v6623_v63  ;;  %v7284_v63 = vld [vmem:[%s10898_s8 + $0x6a4] sm:$0xf]  ;;  %v6709_v1 = vld [vmem:[%s10898_s8 + $0x6bc] sm:$0xf0] }
 0x2fa   :  { %4289 = vmatpush.bf16.msra.mxu0 %v6064_v60  ;;  %4303 = vmatpush.bf16.msra.mxu1 %v6288_v51  ;;  %v6147_v60 = vld [vmem:[%s10898_s8 + $0x240] sm:$0xf]  ;;  %v7147_v51 = vld [vmem:[%s10898_s8 + $0x258] sm:$0xf0] }
 0x2fb   :  { %v6148_v4 = vor.u32 %v7147_v51, %v6147_v60  ;;  %v7165_v60 = vld [vmem:[%s10898_s8 + $0x2ec] sm:$0xf]  ;;  %v6233_v51 = vld [vmem:[%s10898_s8 + $0x304] sm:$0xf0] }
 0x2fc   :  { %4268 = vmatpush.bf16.msrb.mxu2 %v6312_v19  ;;  %4282 = vmatpush.bf16.msrb.mxu3 %v6536_v9  ;;  %v5896_v19 = vor.u32 %v7084_v6, %v5895_v5  ;;  %v6120_v9 = vor.u32 %v7140_v2, %v6119_v10  ;;  %v7102_v5 = vld [vmem:[%s10898_s8 + $0xf4] sm:$0xf]  ;;  %v5981_v6 = vld [vmem:[%s10898_s8 + $0x10c] sm:$0xf0] }
 0x2fd   :  { %v7158_v10 = vld [vmem:[%s10898_s8 + $0x2b4] sm:$0xf]  ;;  %v6205_v2 = vld [vmem:[%s10898_s8 + $0x2cc] sm:$0xf0] }
 0x2fe   :  { %4290 = vmatpush.bf16.msra.mxu0 %v6036_v14  ;;  %4304 = vmatpush.bf16.msra.mxu1 %v6260_v18  ;;  %v6595_v14 = vld [vmem:[%s10898_s8 + $0x5c0] sm:$0xf]  ;;  %v7259_v18 = vld [vmem:[%s10898_s8 + $0x5d8] sm:$0xf0] }
 0x2ff   :  { %4269 = vmatmul.bf16.vlgmr.msrb.gmra.mxu2 %v9930_v15  ;;  %4283 = vmatmul.bf16.vlgmr.msrb.gmra.mxu3 %v9932_v16  ;;  %v6596_v37 = vor.u32 %v7259_v18, %v6595_v14  ;;  %v7277_v14 = vld [vmem:[%s10898_s8 + $0x66c] sm:$0xf]  ;;  %v6681_v18 = vld [vmem:[%s10898_s8 + $0x684] sm:$0xf0] }
 0x300   :  { %4317 = vmatpush.bf16.msra.mxu2 %v6512_v17  ;;  %4331 = vmatpush.bf16.msra.mxu3 %v6736_v21  ;;  %v6091_v17 = vld [vmem:[%s10898_s8 + $0x1d0] sm:$0xf]  ;;  %v6372_v21 = vor.u32 %v7203_v13, %v6371_v23  ;;  %v7221_v23 = vld [vmem:[%s10898_s8 + $0x4ac] sm:$0xf]  ;;  %v6457_v13 = vld [vmem:[%s10898_s8 + $0x4c4] sm:$0xf0] }
 0x302   :  { %4291 = vmatpush.bf16.msra.mxu0 %v6008_v28  ;;  %4305 = vmatpush.bf16.msra.mxu1 %v6232_v29  ;;  %v6343_v28 = vld [vmem:[%s10898_s8 + $0x3c8] sm:$0xf]  ;;  %v7196_v29 = vld [vmem:[%s10898_s8 + $0x3e0] sm:$0xf0] }
 0x303   :  { %v6344_v40 = vor.u32 %v7196_v29, %v6343_v28 }
 0x304   :  { %4318 = vmatpush.bf16.msra.mxu2 %v6484_v32  ;;  %4332 = vmatpush.bf16.msra.mxu3 %v6708_v33  ;;  %v5868_v32 = vor.u32 %v7077_v20, %v5867_v41  ;;  %v6092_v33 = vor.u32 %v7133_v22, %v6091_v17  ;;  %v7095_v41 = vld [vmem:[%s10898_s8 + $0xbc] sm:$0xf]  ;;  %v5953_v20 = vld [vmem:[%s10898_s8 + $0xd4] sm:$0xf0]  ;;  %v6460_v17 = vor.u32 %v7221_v23, %v6457_v13  ;;  %v6043_v23 = vld [vmem:[%s10898_s8 + $0x168] sm:$0xf] }
 0x305   :  { %v6177_v22 = vld [vmem:[%s10898_s8 + $0x294] sm:$0xf0]  ;;  %v5956_v28 = vor.u32 %v7095_v41, %v5953_v20  ;;  %v7120_v13 = vld [vmem:[%s10898_s8 + $0x180] sm:$0xf0]  ;;  %v7186_v41 = vld [vmem:[%s10898_s8 + $0x394] sm:$0xf] }
 0x306   :  { %4292 = vmatpush.bf16.msra.mxu0 %v5980_v43  ;;  %4306 = vmatpush.bf16.msra.mxu1 %v6204_v44  ;;  %v6568_v43 = vor.u32 %v7252_v31, %v6567_v30  ;;  %v6261_v44 = vld [vmem:[%s10898_s8 + $0x33c] sm:$0xf0]  ;;  %v7088_v30 = vld [vmem:[%s10898_s8 + $0x84] sm:$0xf]  ;;  %v6317_v20 = vld [vmem:[%s10898_s8 + $0x3ac] sm:$0xf0] }
 0x307   :  { %v6264_v52 = vor.u32 %v7172_v39, %v6261_v44  ;;  %v5925_v31 = vld [vmem:[%s10898_s8 + $0x9c] sm:$0xf0]  ;;  %v7263_v39 = vld [vmem:[%s10898_s8 + $0x5fc] sm:$0xf] }
 0x308   :  { %4319 = vmatpush.bf16.msra.mxu2 %v6456_v11  ;;  %4333 = vmatpush.bf16.msra.mxu3 %v6680_v46  ;;  %v6539_v11 = vld [vmem:[%s10898_s8 + $0x550] sm:$0xf]  ;;  %v7245_v46 = vld [vmem:[%s10898_s8 + $0x568] sm:$0xf0] }
 0x30a   :  { %4293 = vmatpush.bf16.msra.mxu0 %v5952_v53  ;;  %4307 = vmatpush.bf16.msra.mxu1 %v6176_v54  ;;  %v6316_v53 = vor.u32 %v7189_v42, %v6315_v12  ;;  %v6540_v54 = vor.u32 %v7245_v46, %v6539_v11  ;;  %v7081_v12 = vld [vmem:[%s10898_s8 + $0x4c] sm:$0xf]  ;;  %v5897_v42 = vld [vmem:[%s10898_s8 + $0x64] sm:$0xf0]  ;;  %v6404_v11 = vor.u32 %v7207_v36, %v6401_v38  ;;  %v7232_v38 = vld [vmem:[%s10898_s8 + $0x500] sm:$0xf0] }
 0x30b   :  { %v6491_v36 = vld [vmem:[%s10898_s8 + $0x4e8] sm:$0xf] }
 0x30c   :  { %4320 = vmatpush.bf16.msra.mxu2 %v6428_v58  ;;  %4334 = vmatpush.bf16.msra.mxu3 %v6652_v59  ;;  %v6516_v58 = vor.u32 %v7235_v57, %v6513_v47  ;;  %v6740_v59 = vor.u32 %v7291_v48, %v6737_v49  ;;  %v7137_v57 = vld [vmem:[%s10898_s8 + $0x20c] sm:$0xf]  ;;  %v6121_v47 = vld [vmem:[%s10898_s8 + $0x224] sm:$0xf0]  ;;  %v7200_v48 = vld [vmem:[%s10898_s8 + $0x404] sm:$0xf] }
 0x30d   :  { %v6373_v49 = vld [vmem:[%s10898_s8 + $0x41c] sm:$0xf0] }
 0x30e   :  { %4294 = vmatpush.bf16.msra.mxu0 %v5924_v3  ;;  %4308 = vmatpush.bf16.msra.mxu1 %v6148_v4  ;;  %v6012_v3 = vor.u32 %v7109_v55, %v6009_v56  ;;  %v6236_v4 = vor.u32 %v7165_v60, %v6233_v51  ;;  %v7074_v55 = vld [vmem:[%s10898_s8 + $0x14] sm:$0xf]  ;;  %v5869_v56 = vld [vmem:[%s10898_s8 + $0x2c] sm:$0xf0] }
 0x30f   :  { %v6093_v51 = vld [vmem:[%s10898_s8 + $0x1ec] sm:$0xf0] }
 0x310   :  { %4321 = vmatpush.bf16.msra.mxu2 %v6400_v7  ;;  %4335 = vmatpush.bf16.msra.mxu3 %v6624_v8  ;;  %v6488_v7 = vor.u32 %v7228_v61, %v6485_v62  ;;  %v6712_v8 = vor.u32 %v7284_v63, %v6709_v1  ;;  %v6071_v61 = vld [vmem:[%s10898_s8 + $0x1a0] sm:$0xf]  ;;  %v7127_v62 = vld [vmem:[%s10898_s8 + $0x1b8] sm:$0xf0] }
 0x311   :  { %v6295_v63 = vld [vmem:[%s10898_s8 + $0x360] sm:$0xf]  ;;  %v7183_v1 = vld [vmem:[%s10898_s8 + $0x378] sm:$0xf0] }
 0x312   :  { %4295 = vmatpush.bf16.msra.mxu0 %v5896_v19  ;;  %4309 = vmatpush.bf16.msra.mxu1 %v6120_v9  ;;  %v5984_v19 = vor.u32 %v7102_v5, %v5981_v6  ;;  %v6208_v9 = vor.u32 %v7158_v10, %v6205_v2  ;;  %v7249_v5 = vld [vmem:[%s10898_s8 + $0x58c] sm:$0xf]  ;;  %v6569_v6 = vld [vmem:[%s10898_s8 + $0x5a4] sm:$0xf0]  ;;  %v6072_v10 = vor.u32 %v7127_v62, %v6071_v61  ;;  %v6183_v61 = vld [vmem:[%s10898_s8 + $0x280] sm:$0xf] }
 0x313   :  { %v6296_v2 = vor.u32 %v7183_v1, %v6295_v63  ;;  %v7155_v62 = vld [vmem:[%s10898_s8 + $0x298] sm:$0xf0]  ;;  %v6435_v63 = vld [vmem:[%s10898_s8 + $0x478] sm:$0xf]  ;;  %v7218_v1 = vld [vmem:[%s10898_s8 + $0x490] sm:$0xf0] }
 0x314   :  { %4322 = vmatpush.bf16.msra.mxu2 %v6372_v21  ;;  %4336 = vmatpush.bf16.msra.mxu3 %v6596_v37  ;;  %v6684_v21 = vor.u32 %v7277_v14, %v6681_v18  ;;  %v7151_v37 = vld [vmem:[%s10898_s8 + $0x27c] sm:$0xf]  ;;  %v6267_v14 = vld [vmem:[%s10898_s8 + $0x328] sm:$0xf] }
 0x315   :  { %v6180_v29 = vor.u32 %v7151_v37, %v6177_v22  ;;  %v6519_v37 = vld [vmem:[%s10898_s8 + $0x520] sm:$0xf]  ;;  %v7239_v22 = vld [vmem:[%s10898_s8 + $0x538] sm:$0xf0] }
 0x316   :  { %4296 = vmatpush.bf16.msra.mxu0 %v5868_v32  ;;  %4310 = vmatpush.bf16.msra.mxu1 %v6092_v33  ;;  %v6432_v32 = vor.u32 %v7214_v24, %v6429_v25  ;;  %v6656_v33 = vor.u32 %v7270_v26, %v6653_v27  ;;  %v6743_v24 = vld [vmem:[%s10898_s8 + $0x6e0] sm:$0xf]  ;;  %v7295_v25 = vld [vmem:[%s10898_s8 + $0x6f8] sm:$0xf0]  ;;  %v6044_v26 = vor.u32 %v7120_v13, %v6043_v23 }
 0x317   :  { %v6436_v23 = vor.u32 %v7218_v1, %v6435_v63  ;;  %v7246_v63 = vld [vmem:[%s10898_s8 + $0x570] sm:$0xf0] }
 0x318   :  { %4323 = vmatpush.bf16.msra.mxu2 %v6344_v40  ;;  %4337 = vmatpush.bf16.msra.mxu3 %v6568_v43  ;;  %v6625_v40 = vld [vmem:[%s10898_s8 + $0x614] sm:$0xf0]  ;;  %v5928_v43 = vor.u32 %v7088_v30, %v5925_v31  ;;  %v6015_v30 = vld [vmem:[%s10898_s8 + $0x130] sm:$0xf]  ;;  %v7113_v31 = vld [vmem:[%s10898_s8 + $0x148] sm:$0xf0] }
 0x319   :  { %4297 = vmatmul.bf16.vlgmr.msra.gmra.mxu0 %v9885_v45  ;;  %4311 = vmatmul.bf16.vlgmr.msra.gmra.mxu1 %v9887_v0  ;;  %v6628_v46 = vor.u32 %v7263_v39, %v6625_v40  ;;  %v6715_v39 = vld [vmem:[%s10898_s8 + $0x6a8] sm:$0xf]  ;;  %v7288_v40 = vld [vmem:[%s10898_s8 + $0x6c0] sm:$0xf0] }
 0x31a   :  { %4345 = vmatpush.bf16.msrb.mxu0 %v6068_v34  ;;  %4359 = vmatpush.bf16.msrb.mxu1 %v6292_v35  ;;  %v7144_v34 = vld [vmem:[%s10898_s8 + $0x244] sm:$0xf]  ;;  %v6149_v35 = vld [vmem:[%s10898_s8 + $0x25c] sm:$0xf0] }
 0x31b   :  { %v6152_v44 = vor.u32 %v7144_v34, %v6149_v35  ;;  %v6239_v34 = vld [vmem:[%s10898_s8 + $0x2f0] sm:$0xf]  ;;  %v7169_v35 = vld [vmem:[%s10898_s8 + $0x308] sm:$0xf0] }
 0x31c   :  { %4324 = vmatpush.bf16.msra.mxu2 %v6316_v53  ;;  %4338 = vmatpush.bf16.msra.mxu3 %v6540_v54  ;;  %v5900_v53 = vor.u32 %v7081_v12, %v5897_v42  ;;  %v6124_v54 = vor.u32 %v7137_v57, %v6121_v47  ;;  %v5987_v42 = vld [vmem:[%s10898_s8 + $0xf8] sm:$0xf]  ;;  %v6716_v57 = vor.u32 %v7288_v40, %v6715_v39 }
 0x31d   :  { %v6211_v47 = vld [vmem:[%s10898_s8 + $0x2b8] sm:$0xf] }
 0x31e   :  { %4346 = vmatpush.bf16.msrb.mxu0 %v6040_v50  ;;  %4360 = vmatpush.bf16.msrb.mxu1 %v6264_v52  ;;  %v7256_v50 = vld [vmem:[%s10898_s8 + $0x5c4] sm:$0xf]  ;;  %v6597_v52 = vld [vmem:[%s10898_s8 + $0x5dc] sm:$0xf0]  ;;  %v5875_v40 = vld [vmem:[%s10898_s8 + $0x18] sm:$0xf] }
 0x31f   :  { %4325 = vmatmul.bf16.vlgmr.msra.gmra.mxu2 %v9930_v15  ;;  %4339 = vmatmul.bf16.vlgmr.msra.gmra.mxu3 %v9932_v16  ;;  %v6600_v60 = vor.u32 %v7256_v50, %v6597_v52  ;;  %v7225_v50 = vld [vmem:[%s10898_s8 + $0x4c8] sm:$0xf0]  ;;  %v6687_v52 = vld [vmem:[%s10898_s8 + $0x670] sm:$0xf] }
 0x320   :  { %4373 = vmatpush.bf16.msrb.mxu2 %v6516_v58  ;;  %4387 = vmatpush.bf16.msrb.mxu3 %v6740_v59  ;;  %v7130_v58 = vld [vmem:[%s10898_s8 + $0x1d4] sm:$0xf]  ;;  %v6376_v59 = vor.u32 %v7200_v48, %v6373_v49  ;;  %v6463_v49 = vld [vmem:[%s10898_s8 + $0x4b0] sm:$0xf] }
 0x321   :  { %v7162_v48 = vld [vmem:[%s10898_s8 + $0x2d0] sm:$0xf0] }
 0x322   :  { %4347 = vmatpush.bf16.msrb.mxu0 %v6012_v3  ;;  %4361 = vmatpush.bf16.msrb.mxu1 %v6236_v4  ;;  %v7193_v3 = vld [vmem:[%s10898_s8 + $0x3cc] sm:$0xf]  ;;  %v6345_v4 = vld [vmem:[%s10898_s8 + $0x3e4] sm:$0xf0] }
 0x323   :  { %v6348_v18 = vor.u32 %v7193_v3, %v6345_v4  ;;  %v6659_v3 = vld [vmem:[%s10898_s8 + $0x638] sm:$0xf]  ;;  %v7274_v4 = vld [vmem:[%s10898_s8 + $0x650] sm:$0xf0] }
 0x324   :  { %4374 = vmatpush.bf16.msrb.mxu2 %v6488_v7  ;;  %4388 = vmatpush.bf16.msrb.mxu3 %v6712_v8  ;;  %v5872_v7 = vor.u32 %v7074_v55, %v5869_v56  ;;  %v6096_v8 = vor.u32 %v7130_v58, %v6093_v51  ;;  %v6212_v55 = vor.u32 %v7162_v48, %v6211_v47  ;;  %v5959_v56 = vld [vmem:[%s10898_s8 + $0xc0] sm:$0xf]  ;;  %v7099_v58 = vld [vmem:[%s10898_s8 + $0xd8] sm:$0xf0]  ;;  %v7197_v47 = vld [vmem:[%s10898_s8 + $0x3e8] sm:$0xf0] }
 0x325   :  { %v6660_v13 = vor.u32 %v7274_v4, %v6659_v3  ;;  %v6575_v48 = vld [vmem:[%s10898_s8 + $0x590] sm:$0xf] }
 0x326   :  { %4348 = vmatpush.bf16.msrb.mxu0 %v5984_v19  ;;  %4362 = vmatpush.bf16.msrb.mxu1 %v6208_v9  ;;  %v6572_v19 = vor.u32 %v7249_v5, %v6569_v6  ;;  %v7176_v9 = vld [vmem:[%s10898_s8 + $0x340] sm:$0xf0]  ;;  %v5960_v6 = vor.u32 %v7099_v58, %v5959_v56 }
 0x327   :  { %v6268_v27 = vor.u32 %v7176_v9, %v6267_v14  ;;  %v10785_v5 = vld [vmem:[%s10899_s9] sm:$0xff]  ;;  %v6155_v14 = vld [vmem:[%s10898_s8 + $0x248] sm:$0xf]  ;;  %v7211_v9 = vld [vmem:[%s10898_s8 + $0x458] sm:$0xf0] }
 0x328   :  { %4375 = vmatpush.bf16.msrb.mxu2 %v6460_v17  ;;  %4389 = vmatpush.bf16.msrb.mxu3 %v6684_v21  ;;  %v7242_v17 = vld [vmem:[%s10898_s8 + $0x554] sm:$0xf]  ;;  %v6541_v21 = vld [vmem:[%s10898_s8 + $0x56c] sm:$0xf0] }
 0x32a   :  { %4349 = vmatpush.bf16.msrb.mxu0 %v5956_v28  ;;  %4363 = vmatpush.bf16.msrb.mxu1 %v6180_v29  ;;  %v6320_v28 = vor.u32 %v7186_v41, %v6317_v20  ;;  %v6544_v29 = vor.u32 %v7242_v17, %v6541_v21  ;;  %v6631_v41 = vld [vmem:[%s10898_s8 + $0x600] sm:$0xf]  ;;  %v7267_v20 = vld [vmem:[%s10898_s8 + $0x618] sm:$0xf0]  ;;  %v2899_v17 = vperm.slane %v10785_v5, 0 }
 0x32c   :  { %4376 = vmatpush.bf16.msrb.mxu2 %v6432_v32  ;;  %4390 = vmatpush.bf16.msrb.mxu3 %v6656_v33  ;;  %v6520_v32 = vor.u32 %v7239_v22, %v6519_v37  ;;  %v6744_v33 = vor.u32 %v7295_v25, %v6743_v24  ;;  %v5903_v22 = vld [vmem:[%s10898_s8 + $0x50] sm:$0xf]  ;;  %v7085_v24 = vld [vmem:[%s10898_s8 + $0x68] sm:$0xf0] }
 0x32e   :  { %4350 = vmatpush.bf16.msrb.mxu0 %v5928_v43  ;;  %4364 = vmatpush.bf16.msrb.mxu1 %v6152_v44  ;;  %v6016_v43 = vor.u32 %v7113_v31, %v6015_v30  ;;  %v6240_v44 = vor.u32 %v7169_v35, %v6239_v34  ;;  %v7141_v30 = vld [vmem:[%s10898_s8 + $0x228] sm:$0xf0]  ;;  %v6379_v31 = vld [vmem:[%s10898_s8 + $0x408] sm:$0xf]  ;;  %v7260_v34 = vld [vmem:[%s10898_s8 + $0x5e0] sm:$0xf0] }
 0x330   :  { %4377 = vmatpush.bf16.msrb.mxu2 %v6404_v11  ;;  %4391 = vmatpush.bf16.msrb.mxu3 %v6628_v46  ;;  %v7106_v11 = vld [vmem:[%s10898_s8 + $0x110] sm:$0xf0]  ;;  %v6492_v46 = vor.u32 %v7232_v38, %v6491_v36  ;;  %v5904_v38 = vor.u32 %v7085_v24, %v5903_v22 }
 0x332   :  { %4351 = vmatpush.bf16.msrb.mxu0 %v5900_v53  ;;  %4365 = vmatpush.bf16.msrb.mxu1 %v6124_v54  ;;  %v7281_v53 = vld [vmem:[%s10898_s8 + $0x688] sm:$0xf0]  ;;  %v5988_v54 = vor.u32 %v7106_v11, %v5987_v42  ;;  %v7134_v11 = vld [vmem:[%s10898_s8 + $0x1f0] sm:$0xf0] }
 0x333   :  { %v6688_v51 = vor.u32 %v7281_v53, %v6687_v52  ;;  %v2900_v52 = vperm.slane %v10785_v5, 1 }
 0x334   :  { %4378 = vmatpush.bf16.msrb.mxu2 %v6376_v59  ;;  %4392 = vmatpush.bf16.msrb.mxu3 %v6600_v60  ;;  %v6464_v60 = vor.u32 %v7225_v50, %v6463_v49  ;;  %v7253_v49 = vld [vmem:[%s10898_s8 + $0x5a8] sm:$0xf0] }
 0x335   :  { %v10728_v12 = vpop.f32.mrf.mxu0  ;;  %v10762_v59 = vpop.f32.mrf.mxu1 }
 0x336   :  { %4352 = vmatpush.bf16.msrb.mxu0 %v5872_v7  ;;  %4366 = vmatpush.bf16.msrb.mxu1 %v6096_v8  ;;  %v6184_v7 = vor.u32 %v7155_v62, %v6183_v61  ;;  %v4075_v35 = vadd.f32 %v10728_v12, %v2899_v17  ;;  %v6099_v12 = vld [vmem:[%s10898_s8 + $0x1d8] sm:$0xf] }
 0x337   :  { %v6323_v61 = vld [vmem:[%s10898_s8 + $0x398] sm:$0xf] }
 0x338   :  { %4379 = vmatpush.bf16.msrb.mxu2 %v6348_v18  ;;  %4393 = vmatpush.bf16.msrb.mxu3 %v6572_v19  ;;  %v7148_v18 = vld [vmem:[%s10898_s8 + $0x260] sm:$0xf0]  ;;  %v6407_v19 = vld [vmem:[%s10898_s8 + $0x440] sm:$0xf]  ;;  %v4089_v50 = vadd.f32 %v10762_v59, %v4075_v35  ;;  %v7190_v59 = vld [vmem:[%s10898_s8 + $0x3b0] sm:$0xf0] }
 0x339   :  { %4353 = vmatmul.bf16.vlgmr.msrb.gmra.mxu0 %v9885_v45  ;;  %4367 = vmatmul.bf16.vlgmr.msrb.gmra.mxu1 %v9887_v0  ;;  %v6156_v37 = vor.u32 %v7148_v18, %v6155_v14  ;;  %v6547_v62 = vld [vmem:[%s10898_s8 + $0x558] sm:$0xf] }
 0x33a   :  { %4401 = vmatpush.bf16.msra.mxu0 %v6072_v10  ;;  %4415 = vmatpush.bf16.msra.mxu1 %v6296_v2  ;;  %v5931_v10 = vld [vmem:[%s10898_s8 + $0x88] sm:$0xf]  ;;  %v7092_v2 = vld [vmem:[%s10898_s8 + $0xa0] sm:$0xf0] }
 0x33b   :  { %v5932_v21 = vor.u32 %v7092_v2, %v5931_v10  ;;  %v6548_v10 = vor.u32 %v7246_v63, %v6547_v62 }
 0x33c   :  { %4380 = vmatpush.bf16.msrb.mxu2 %v6320_v28  ;;  %4394 = vmatpush.bf16.msrb.mxu3 %v6544_v29  ;;  %v6632_v28 = vor.u32 %v7267_v20, %v6631_v41  ;;  %v6127_v29 = vld [vmem:[%s10898_s8 + $0x210] sm:$0xf] }
 0x33d   :  { %v10787_v8 = vpop.f32.mrf.mxu0  ;;  %v4090_v36 = vpop.f32.mrf.mxu1  ;;  %v6128_v39 = vor.u32 %v7141_v30, %v6127_v29 }
 0x33e   :  { %4402 = vmatpush.bf16.msra.mxu0 %v6044_v26  ;;  %4416 = vmatpush.bf16.msra.mxu1 %v6268_v27  ;;  %v6408_v27 = vor.u32 %v7211_v9, %v6407_v19  ;;  %v4077_v1 = vadd.f32 %v10787_v8, %v2899_v17 }
 0x33f   :  { %4381 = vmatmul.bf16.vlgmr.msrb.gmra.mxu2 %v9930_v15  ;;  %4395 = vmatmul.bf16.vlgmr.msrb.gmra.mxu3 %v9932_v16 }
 0x340   :  { %4429 = vmatpush.bf16.msra.mxu2 %v6520_v32  ;;  %4443 = vmatpush.bf16.msra.mxu3 %v6744_v33  ;;  %v7204_v32 = vld [vmem:[%s10898_s8 + $0x420] sm:$0xf0]  ;;  %v6603_v33 = vld [vmem:[%s10898_s8 + $0x5c8] sm:$0xf]  ;;  %v4091_v2 = vadd.f32 %v4090_v36, %v4077_v1 }
 0x341   :  { %v6604_v42 = vor.u32 %v7260_v34, %v6603_v33 }
 0x342   :  { %4403 = vmatpush.bf16.msra.mxu0 %v6016_v43  ;;  %4417 = vmatpush.bf16.msra.mxu1 %v6240_v44  ;;  %v4102_v25 = vpop.f32.mrf.mxu2  ;;  %v4116_v26 = vpop.f32.mrf.mxu3  ;;  %v7078_v43 = vld [vmem:[%s10898_s8 + $0x30] sm:$0xf0]  ;;  %v6380_v44 = vor.u32 %v7204_v32, %v6379_v31 }
 0x343   :  { %v5876_v53 = vor.u32 %v7078_v43, %v5875_v40  ;;  %v2901_v40 = vperm.slane %v10785_v5, 2 }
 0x344   :  { %4430 = vmatpush.bf16.msra.mxu2 %v6492_v46  ;;  %4444 = vmatpush.bf16.msra.mxu3 %v6716_v57  ;;  %v6351_v46 = vld [vmem:[%s10898_s8 + $0x3d0] sm:$0xf]  ;;  %s7357_s8 = smov [#allocation2]  }
 0x345   :  { %s4523_s21 = sshll.u32 %s7357_s8, 4  ;;  %s4524_s21 = int_to_ptr.vmem [resolvable:$true] %s4523_s21 }
 0x346   :  { %4404 = vmatpush.bf16.msra.mxu0 %v5988_v54  ;;  %4418 = vmatpush.bf16.msra.mxu1 %v6212_v55  ;;  %v4130_v57 = vpop.f32.mrf.mxu0  ;;  %v6100_v54 = vor.u32 %v7134_v11, %v6099_v12  ;;  %v4103_v55 = vadd.f32 %v4102_v25, %v4089_v50 }
 0x347   :  { %v4131_v3 = vadd.f32 %v4130_v57, %v2900_v52  ;;  %v2902_v57 = vperm.slane %v10785_v5, 3 }
 0x348   :  { %4431 = vmatpush.bf16.msra.mxu2 %v6464_v60  ;;  %4445 = vmatpush.bf16.msra.mxu3 %v6688_v51  ;;  %v6352_v60 = vor.u32 %v7197_v47, %v6351_v46  ;;  %v6576_v51 = vor.u32 %v7253_v49, %v6575_v48  ;;  %v4117_v4 = vadd.f32 %v4116_v26, %v4103_v55 }
 0x34a   :  { %4405 = vmatpush.bf16.msra.mxu0 %v5960_v6  ;;  %4419 = vmatpush.bf16.msra.mxu1 %v6184_v7  ;;  %v4104_v56 = vpop.f32.mrf.mxu2  ;;  %v4118_v58 = vpop.f32.mrf.mxu3  ;;  %v6324_v7 = vor.u32 %v7190_v59, %v6323_v61  ;;  %v4457_v14 = vmul.f32 0.2, %v4117_v4 }
 0x34b   :  { %v4144_v6 = vpop.f32.mrf.mxu1  ;;  %v4105_v18 = vadd.f32 %v4104_v56, %v4091_v2 }
 0x34c   :  { %4432 = vmatpush.bf16.msra.mxu2 %v6436_v23  ;;  %4446 = vmatpush.bf16.msra.mxu3 %v6660_v13  ;;  %v4145_v23 = vadd.f32 %v4144_v6, %v4131_v3  ;;  %v4471_v17 = vmax.f32 %v4117_v4, %v4457_v14 }
 0x34e   :  { %4406 = vmatpush.bf16.msra.mxu0 %v5932_v21  ;;  %4420 = vmatpush.bf16.msra.mxu1 %v6156_v37  ;;  %v4132_v13 = vpop.f32.mrf.mxu0  ;;  %v4119_v21 = vadd.f32 %v4118_v58, %v4105_v18  ;;  %7303 = vtanh.f32 %v4471_v17 }
 0x34f   :  { %v4133_v41 = vadd.f32 %v4132_v13, %v2900_v52 }
 0x350   :  { %4433 = vmatpush.bf16.msra.mxu2 %v6408_v27  ;;  %4447 = vmatpush.bf16.msra.mxu3 %v6632_v28  ;;  %v4464_v24 = vmul.f32 0.2, %v4119_v21 }
 0x352   :  { %4407 = vmatpush.bf16.msra.mxu0 %v5904_v38  ;;  %4421 = vmatpush.bf16.msra.mxu1 %v6128_v39  ;;  %v4158_v8 = vpop.f32.mrf.mxu2  ;;  %v4172_v19 = vpop.f32.mrf.mxu3  ;;  %v4478_v29 = vmax.f32 %v4119_v21, %v4464_v24 }
 0x353   :  { %v4159_v9 = vadd.f32 %v4158_v8, %v4145_v23  ;;  %v4146_v37 = vpop.f32.mrf.mxu1 }
 0x354   :  { %4434 = vmatpush.bf16.msra.mxu2 %v6380_v44  ;;  %4448 = vmatpush.bf16.msra.mxu3 %v6604_v42  ;;  %v7304_v31 = vpop.eup %7303 }
 0x355   :  { %v4173_v20 = vadd.f32 %v4172_v19, %v4159_v9 }
 0x356   :  { %4408 = vmatpush.bf16.msra.mxu0 %v5876_v53  ;;  %4422 = vmatpush.bf16.msra.mxu1 %v6100_v54  ;;  %v4186_v33 = vpop.f32.mrf.mxu0 }
 0x357   :  { %v4187_v42 = vadd.f32 %v4186_v33, %v2901_v40 }
 0x358   :  { %4435 = vmatpush.bf16.msra.mxu2 %v6352_v60  ;;  %4449 = vmatpush.bf16.msra.mxu3 %v6576_v51 }
 0x359   :  { %4409 = vmatmul.bf16.vlgmr.msra.gmra.mxu0 %v9885_v45  ;;  %4423 = vmatmul.bf16.vlgmr.msra.gmra.mxu1 %v9887_v0  ;;  %v4458_v45 = vmul.f32 0.2, %v4173_v20  ;;  %v4147_v0 = vadd.f32 %v4146_v37, %v4133_v41 }
 0x35a   :  { %v4160_v25 = vpop.f32.mrf.mxu2  ;;  %v4174_v27 = vpop.f32.mrf.mxu3 }
 0x35b   :  { %v4472_v22 = vmax.f32 %v4173_v20, %v4458_v45  ;;  %v4161_v26 = vadd.f32 %v4160_v25, %v4147_v0  ;;  %v4200_v36 = vpop.f32.mrf.mxu1 }
 0x35c   :  { %4436 = vmatpush.bf16.msra.mxu2 %v6324_v7  ;;  %4450 = vmatpush.bf16.msra.mxu3 %v6548_v10  ;;  %v4201_v46 = vadd.f32 %v4200_v36, %v4187_v42 }
 0x35d   :  { %7305 = vtanh.f32 %v4472_v22  ;;  %v4175_v28 = vadd.f32 %v4174_v27, %v4161_v26  ;;  %v2903_v26 = vperm.slane %v10785_v5, 4 }
 0x35e   :  { %7307 = vtanh.f32 %v4478_v29  ;;  %v4188_v39 = vpop.f32.mrf.mxu0 }
 0x35f   :  { %4437 = vmatmul.bf16.vlgmr.msra.gmra.mxu2 %v9930_v15  ;;  %4451 = vmatmul.bf16.vlgmr.msra.gmra.mxu3 %v9932_v16  ;;  %v4465_v30 = vmul.f32 0.2, %v4175_v28  ;;  %v4189_v50 = vadd.f32 %v4188_v39, %v2901_v40 }
 0x361   :  { %v4479_v15 = vmax.f32 %v4175_v28, %v4465_v30 }
 0x362   :  { %v4214_v43 = vpop.f32.mrf.mxu2  ;;  %v4228_v44 = vpop.f32.mrf.mxu3 }
 0x363   :  { %v7306_v32 = vpop.eup %7305  ;;  %7309 = vtanh.f32 %v4479_v15  ;;  %v4202_v12 = vpop.f32.mrf.mxu1  ;;  %v4215_v47 = vadd.f32 %v4214_v43, %v4201_v46  ;;  %v2904_v15 = vperm.slane %v10785_v5, 5 }
 0x364   :  { %v4499_v16 = vpack.c.bf16 %v7306_v32, %v7304_v31  ;;  %v7308_v34 = vpop.eup %7307  ;;  %v4203_v55 = vadd.f32 %v4202_v12, %v4189_v50 }
 0x365   :  { %v4229_v53 = vadd.f32 %v4228_v44, %v4215_v47 }
 0x366   :  { %4507 = vst [vmem:[#allocation2] sm:$0xff] %v4499_v16 }
 0x367   :  { %v4459_v60 = vmul.f32 0.2, %v4229_v53 }
 0x369   :  { %v7310_v35 = vpop.eup %7309  ;;  %v4473_v3 = vmax.f32 %v4229_v53, %v4459_v60 }
 0x36a   :  { %v4503_v38 = vpack.c.bf16 %v7310_v35, %v7308_v34  ;;  %v4216_v48 = vpop.f32.mrf.mxu2  ;;  %v4230_v49 = vpop.f32.mrf.mxu3 }
 0x36b   :  { %v4217_v51 = vadd.f32 %v4216_v48, %v4203_v55  ;;  %7311 = vtanh.f32 %v4473_v3 }
 0x36c   :  { %4511 = vst [vmem:[#allocation2 + $0x1c] sm:$0xff] %v4503_v38 }
 0x36d   :  { %v4231_v4 = vadd.f32 %v4230_v49, %v4217_v51 }
 0x36f   :  { %v4466_v23 = vmul.f32 0.2, %v4231_v4 }
 0x371   :  { %v4480_v19 = vmax.f32 %v4231_v4, %v4466_v23  ;;  %v7312_v41 = vpop.eup %7311 }
 0x376   :  { %v4242_v11 = vpop.f32.mrf.mxu0  ;;  %v4256_v54 = vpop.f32.mrf.mxu1 }
 0x377   :  { %v4243_v52 = vadd.f32 %v4242_v11, %v2902_v57 }
 0x379   :  { %v4257_v56 = vadd.f32 %v4256_v54, %v4243_v52 }
 0x37e   :  { %v4244_v58 = vpop.f32.mrf.mxu0  ;;  %v4258_v7 = vpop.f32.mrf.mxu1 }
 0x37f   :  { %v4245_v63 = vadd.f32 %v4244_v58, %v2902_v57 }
 0x381   :  { %v4259_v10 = vadd.f32 %v4258_v7, %v4245_v63  ;;  %v2905_v7 = vperm.slane %v10785_v5, 6 }
 0x382   :  { %v4270_v61 = vpop.f32.mrf.mxu2  ;;  %v4284_v59 = vpop.f32.mrf.mxu3 }
 0x383   :  { %v4271_v62 = vadd.f32 %v4270_v61, %v4257_v56 }
 0x385   :  { %v4285_v1 = vadd.f32 %v4284_v59, %v4271_v62 }
 0x387   :  { %v4460_v6 = vmul.f32 0.2, %v4285_v1 }
 0x389   :  { %v4474_v2 = vmax.f32 %v4285_v1, %v4460_v6 }
 0x38a   :  { %v4272_v13 = vpop.f32.mrf.mxu2  ;;  %v4286_v18 = vpop.f32.mrf.mxu3 }
 0x38b   :  { %7313 = vtanh.f32 %v4474_v2  ;;  %v4273_v14 = vadd.f32 %v4272_v13, %v4259_v10 }
 0x38c   :  { %7315 = vtanh.f32 %v4480_v19 }
 0x38d   :  { %v4287_v8 = vadd.f32 %v4286_v18, %v4273_v14 }
 0x38f   :  { %v4467_v9 = vmul.f32 0.2, %v4287_v8 }
 0x391   :  { %v7314_v20 = vpop.eup %7313  ;;  %v4481_v17 = vmax.f32 %v4287_v8, %v4467_v9 }
 0x392   :  { %v4500_v21 = vpack.c.bf16 %v7314_v20, %v7312_v41  ;;  %v7316_v45 = vpop.eup %7315 }
 0x393   :  { %7317 = vtanh.f32 %v4481_v17 }
 0x394   :  { %4508 = vst [vmem:[#allocation2 + $0x8] sm:$0xff] %v4500_v21 }
 0x396   :  { %v4298_v22 = vpop.f32.mrf.mxu0  ;;  %v4312_v24 = vpop.f32.mrf.mxu1 }
 0x397   :  { %v4299_v29 = vadd.f32 %v4298_v22, %v2903_v26 }
 0x399   :  { %v7318_v37 = vpop.eup %7317  ;;  %v4313_v32 = vadd.f32 %v4312_v24, %v4299_v29 }
 0x39a   :  { %v4504_v0 = vpack.c.bf16 %v7318_v37, %v7316_v45 }
 0x39c   :  { %4512 = vst [vmem:[#allocation2 + $0x24] sm:$0xff] %v4504_v0 }
 0x39e   :  { %v4300_v25 = vpop.f32.mrf.mxu0  ;;  %v4314_v30 = vpop.f32.mrf.mxu1 }
 0x39f   :  { %v4301_v35 = vadd.f32 %v4300_v25, %v2903_v26 }
 0x3a1   :  { %v4315_v40 = vadd.f32 %v4314_v30, %v4301_v35 }
 0x3a2   :  { %v4326_v27 = vpop.f32.mrf.mxu2  ;;  %v4340_v28 = vpop.f32.mrf.mxu3 }
 0x3a3   :  { %v4327_v16 = vadd.f32 %v4326_v27, %v4313_v32 }
 0x3a5   :  { %v4341_v38 = vadd.f32 %v4340_v28, %v4327_v16 }
 0x3a7   :  { %v4461_v42 = vmul.f32 0.2, %v4341_v38 }
 0x3a9   :  { %v4475_v49 = vmax.f32 %v4341_v38, %v4461_v42 }
 0x3aa   :  { %v4328_v33 = vpop.f32.mrf.mxu2  ;;  %v4342_v34 = vpop.f32.mrf.mxu3 }
 0x3ab   :  { %v4329_v12 = vadd.f32 %v4328_v33, %v4315_v40  ;;  %7319 = vtanh.f32 %v4475_v49 }
 0x3ad   :  { %v4343_v50 = vadd.f32 %v4342_v34, %v4329_v12 }
 0x3af   :  { %v4468_v56 = vmul.f32 0.2, %v4343_v50 }
 0x3b1   :  { %v4482_v59 = vmax.f32 %v4343_v50, %v4468_v56  ;;  %v7320_v63 = vpop.eup %7319 }
 0x3b6   :  { %v4354_v31 = vpop.f32.mrf.mxu0  ;;  %v4368_v39 = vpop.f32.mrf.mxu1 }
 0x3b7   :  { %v4355_v36 = vadd.f32 %v4354_v31, %v2904_v15 }
 0x3b9   :  { %v4369_v43 = vadd.f32 %v4368_v39, %v4355_v36 }
 0x3be   :  { %v4356_v44 = vpop.f32.mrf.mxu0  ;;  %v4370_v53 = vpop.f32.mrf.mxu1 }
 0x3bf   :  { %v4357_v47 = vadd.f32 %v4356_v44, %v2904_v15 }
 0x3c1   :  { %v4371_v54 = vadd.f32 %v4370_v53, %v4357_v47 }
 0x3c2   :  { %v4382_v11 = vpop.f32.mrf.mxu2  ;;  %v4396_v46 = vpop.f32.mrf.mxu3 }
 0x3c3   :  { %v4383_v57 = vadd.f32 %v4382_v11, %v4369_v43 }
 0x3c5   :  { %v4397_v48 = vadd.f32 %v4396_v46, %v4383_v57 }
 0x3c7   :  { %v4462_v52 = vmul.f32 0.2, %v4397_v48 }
 0x3c9   :  { %v4476_v55 = vmax.f32 %v4397_v48, %v4462_v52 }
 0x3ca   :  { %v4384_v58 = vpop.f32.mrf.mxu2  ;;  %v4398_v51 = vpop.f32.mrf.mxu3 }
 0x3cb   :  { %7321 = vtanh.f32 %v4476_v55  ;;  %v4385_v60 = vadd.f32 %v4384_v58, %v4371_v54 }
 0x3cc   :  { %7323 = vtanh.f32 %v4482_v59 }
 0x3cd   :  { %v4399_v61 = vadd.f32 %v4398_v51, %v4385_v60 }
 0x3cf   :  { %v4469_v62 = vmul.f32 0.2, %v4399_v61 }
 0x3d1   :  { %v7322_v1 = vpop.eup %7321  ;;  %v4483_v3 = vmax.f32 %v4399_v61, %v4469_v62 }
 0x3d2   :  { %v4501_v4 = vpack.c.bf16 %v7322_v1, %v7320_v63  ;;  %v7324_v10 = vpop.eup %7323 }
 0x3d3   :  { %7325 = vtanh.f32 %v4483_v3 }
 0x3d4   :  { %4509 = vst [vmem:[#allocation2 + $0x10] sm:$0xff] %v4501_v4 }
 0x3d6   :  { %v4410_v6 = vpop.f32.mrf.mxu0  ;;  %v4424_v14 = vpop.f32.mrf.mxu1 }
 0x3d7   :  { %v4411_v13 = vadd.f32 %v4410_v6, %v2905_v7 }
 0x3d9   :  { %v7326_v2 = vpop.eup %7325  ;;  %v4425_v18 = vadd.f32 %v4424_v14, %v4411_v13 }
 0x3da   :  { %v4505_v23 = vpack.c.bf16 %v7326_v2, %v7324_v10 }
 0x3dc   :  { %4513 = vst [vmem:[#allocation2 + $0x2c] sm:$0xff] %v4505_v23 }
 0x3de   :  { %v4412_v8 = vpop.f32.mrf.mxu0  ;;  %v4426_v45 = vpop.f32.mrf.mxu1 }
 0x3df   :  { %v4413_v20 = vadd.f32 %v4412_v8, %v2905_v7 }
 0x3e1   :  { %v4427_v37 = vadd.f32 %v4426_v45, %v4413_v20 }
 0x3e2   :  { %v4438_v19 = vpop.f32.mrf.mxu2  ;;  %v4452_v9 = vpop.f32.mrf.mxu3 }
 0x3e3   :  { %v4439_v41 = vadd.f32 %v4438_v19, %v4425_v18 }
 0x3e5   :  { %v4453_v17 = vadd.f32 %v4452_v9, %v4439_v41 }
 0x3e7   :  { %v4463_v21 = vmul.f32 0.2, %v4453_v17 }
 0x3e9   :  { %v4477_v0 = vmax.f32 %v4453_v17, %v4463_v21 }
 0x3ea   :  { %v4440_v22 = vpop.f32.mrf.mxu2  ;;  %v4454_v24 = vpop.f32.mrf.mxu3 }
 0x3eb   :  { %7327 = vtanh.f32 %v4477_v0  ;;  %v4441_v5 = vadd.f32 %v4440_v22, %v4427_v37 }
 0x3ed   :  { %v4455_v25 = vadd.f32 %v4454_v24, %v4441_v5 }
 0x3ef   :  { %v4470_v26 = vmul.f32 0.2, %v4455_v25 }
 0x3f1   :  { %v7328_v27 = vpop.eup %7327  ;;  %v4484_v28 = vmax.f32 %v4455_v25, %v4470_v26 }
 0x3f2   :  { %v4502_v29 = vpack.c.bf16 %v7328_v27, %v7328_v27 }
 0x3f3   :  { %7329 = vtanh.f32 %v4484_v28 }
 0x3f4   :  { %4510 = vst [vmem:[#allocation2 + $0x18] sm:$0xf] %v4502_v29 }
 0x3f9   :  { %v7330_v30 = vpop.eup %7329 }
 0x3fa   :  { %v4506_v31 = vpack.c.bf16 %v7330_v30, %v7330_v30 }
 0x3fc   :  { %4514 = vst [vmem:[#allocation2 + $0x34] sm:$0xf] %v4506_v31 }
 0x3fd   :  { %4531 = dma.vmem_to_hbm [thread:$0]  %s4524_s21, 896, %s4526_s6, [#allocation3], %s7358_s5, %s7358_s5, %s7359_s2  }
 0x3fe   :  { %7355 = dma.done.wait [#allocation3], 896  }
 0x3ff   :  { %7356 = vsyncadd [#allocation3], 4294966400 }
 0x400   :  { %4540 = vsyncpa [#allocation3], 1 }

</bundles_post_ra>
